<compile_context>
chip_gen: v6e
topology: v6e:2x2x1
jax: 0.10.0
libtpu: 0.0.40
codegen_flags: <defaults>
</compile_context>

<pallas_src>
import jax
import jax.numpy as jnp
from jax import lax
from jax.experimental import pallas as pl
from jax.experimental.pallas import tpu as pltpu
import numpy as np

EPS = 1e-5  # InstanceNorm2d default eps


# ---------------------------------------------------------------------------
# In-kernel helpers (static shapes, VMEM-resident values)
# ---------------------------------------------------------------------------
def _conv3x3_reflect(x, w_ref, H, W, Cp):
    """3x3 conv with reflection padding as 3 accumulated MXU matmuls (K = 3*Cp).

    x:     (H, W, Cp) bf16 activation (no spatial padding).
    w_ref: (9*Cp, Cp) bf16 VMEM ref, rows ordered (kw, kh, cin).
    Returns (H*W, Cp) f32.
    """
    # Reflection pad along H: cheap leading-axis concat.
    xh = jnp.concatenate([x[1:2], x, x[H - 2:H - 1]], axis=0)            # (H+2, W, Cp)

    acc = None
    for kw in range(3):                                                  # static unroll
        if kw == 0:      # padded column -1 -> reflected column 1
            col = jnp.concatenate([xh[:, 1:2], xh[:, :W - 1]], axis=1)
        elif kw == 1:
            col = xh
        else:            # padded column W -> reflected column W-2
            col = jnp.concatenate([xh[:, 1:W], xh[:, W - 2:W - 1]], axis=1)
        # kh taps are free leading-axis slices of `col`; lane-tile concat -> K = 3*Cp.
        patches = jnp.concatenate(
            [col[kh:kh + H].reshape(H * W, Cp) for kh in range(3)], axis=-1)
        part = jnp.dot(patches, w_ref[kw * 3 * Cp:(kw + 1) * 3 * Cp, :],
                       preferred_element_type=jnp.float32)
        acc = part if acc is None else acc + part
    return acc


def _instance_norm(y, relu):
    """Per-channel InstanceNorm over (M, Cp) f32 with centered two-pass variance."""
    inv_m = 1.0 / y.shape[0]
    mean = jnp.sum(y, axis=0, keepdims=True) * inv_m
    d = y - mean
    var = jnp.sum(d * d, axis=0, keepdims=True) * inv_m
    out = d * lax.rsqrt(var + EPS)
    if relu:
        out = jnp.maximum(out, 0.0)
    return out


# ---------------------------------------------------------------------------
# Pallas kernel: one batch element per grid step
# ---------------------------------------------------------------------------
def residual_block_kernel(x_ref, w1_ref, w2_ref, o_ref):
    _, H, W, Cp = o_ref.shape

    # conv1 -> InstanceNorm -> ReLU (fused); activation kept in bf16 for conv2.
    h1 = _conv3x3_reflect(x_ref[0], w1_ref, H, W, Cp)                    # (H*W, Cp) f32
    a = _instance_norm(h1, relu=True).astype(jnp.bfloat16).reshape(H, W, Cp)

    # conv2 -> InstanceNorm fused with the residual add. The input block is
    # VMEM-resident (pipelined), so re-reading it here keeps nothing extra live.
    h2 = _conv3x3_reflect(a, w2_ref, H, W, Cp)                           # (H*W, Cp) f32
    y = _instance_norm(h2, relu=False).reshape(H, W, Cp)
    o_ref[0] = (x_ref[0].astype(jnp.float32) + y).astype(o_ref.dtype)


# ---------------------------------------------------------------------------
# Wrapper (NCHW in / NCHW out, like the PyTorch module)
# ---------------------------------------------------------------------------
def _vmem_limit_bytes():
    # Generation-aware VMEM ceiling (leave headroom for compiler scratch):
    # ~48 MiB on v7x (64 MiB physical), ~96 MiB on v5e/v6e (128 MiB physical).
    try:
        cap = pltpu.get_tpu_info().vmem_capacity_bytes
    except Exception:
        cap = 64 * 1024 * 1024
    return int(max(32 * 1024 * 1024, min(cap * 3 // 4, 100 * 1024 * 1024)))


def residual_block(x_nchw, w1_oihw, b1, w2_oihw, b2):
    # b1/b2 are accepted for API parity but NOT used: the affine-free
    # InstanceNorm following each conv subtracts the per-channel mean, so a
    # per-channel conv bias is mathematically cancelled.
    del b1, b2
    B, C, H, W = x_nchw.shape
    assert H >= 2 and W >= 2, "ReflectionPad2d(1) needs H, W >= 2"
    Cp = max(128, ((C + 127) // 128) * 128)              # lane-dense channel dim

    # NHWC bf16, channels zero-padded to Cp; NO spatial padding (done in-kernel).
    x = jnp.transpose(x_nchw, (0, 2, 3, 1)).astype(jnp.bfloat16)
    x = jnp.pad(x, ((0, 0), (0, 0), (0, 0), (0, Cp - C)))

    def prep_w(w_oihw):
        # OIHW -> (KW, KH, Cin, Cout); flattened rows ordered (kw, kh, cin) so the
        # per-kw K=3*Cp row slice matches the in-kernel tap concat order.
        wk = jnp.transpose(w_oihw, (3, 2, 1, 0)).astype(jnp.bfloat16)
        wk = jnp.pad(wk, ((0, 0), (0, 0), (0, Cp - C), (0, Cp - C)))
        return wk.reshape(9 * Cp, Cp)

    w1f = prep_w(w1_oihw)
    w2f = prep_w(w2_oihw)

    out_nhwc = pl.pallas_call(
        residual_block_kernel,
        out_shape=jax.ShapeDtypeStruct((B, H, W, Cp), jnp.bfloat16),
        grid_spec=pltpu.PrefetchScalarGridSpec(
            num_scalar_prefetch=0,
            grid=(B,),
            in_specs=[
                pl.BlockSpec((1, H, W, Cp), lambda b: (b, 0, 0, 0)),
                pl.BlockSpec((9 * Cp, Cp), lambda b: (0, 0)),
                pl.BlockSpec((9 * Cp, Cp), lambda b: (0, 0)),
            ],
            out_specs=pl.BlockSpec((1, H, W, Cp), lambda b: (b, 0, 0, 0)),
        ),
        compiler_params=pltpu.CompilerParams(
            dimension_semantics=("parallel",),
            vmem_limit_bytes=_vmem_limit_bytes()),
    )(x, w1f, w2f)

    return jnp.transpose(out_nhwc[..., :C].astype(jnp.float32), (0, 3, 1, 2))  # NCHW


# ---------------------------------------------------------------------------
# Pure-JAX reference (matches PyTorch semantics, keeps the biases) for a check
# ---------------------------------------------------------------------------
def residual_block_ref(x, w1, b1, w2, b2):
    def conv(h, w, b):
        hp = jnp.pad(h, ((0, 0), (0, 0), (1, 1), (1, 1)), mode="reflect")
        y = lax.conv_general_dilated(
            hp, w, window_strides=(1, 1), padding="VALID",
            dimension_numbers=("NCHW", "OIHW", "NCHW"),
            precision=lax.Precision.HIGHEST)
        return y + b[None, :, None, None]

    def inorm(y):
        m = jnp.mean(y, axis=(2, 3), keepdims=True)
        v = jnp.mean((y - m) ** 2, axis=(2, 3), keepdims=True)
        return (y - m) / jnp.sqrt(v + EPS)

    h = jax.nn.relu(inorm(conv(x, w1, b1)))
    h = inorm(conv(h, w2, b2))
    return x + h


if __name__ == "__main__":
    B, C, H, W = 2, 4, 16, 16
    key = jax.random.PRNGKey(0)
    kx, kw1, kb1, kw2, kb2 = jax.random.split(key, 5)

    x = jax.random.normal(kx, (B, C, H, W), dtype=jnp.float32)
    # PyTorch Conv2d parameter shapes: OIHW weights + per-channel bias.
    w1 = 0.1 * jax.random.normal(kw1, (C, C, 3, 3), dtype=jnp.float32)
    b1 = 0.1 * jax.random.normal(kb1, (C,), dtype=jnp.float32)
    w2 = 0.1 * jax.random.normal(kw2, (C, C, 3, 3), dtype=jnp.float32)
    b2 = 0.1 * jax.random.normal(kb2, (C,), dtype=jnp.float32)

    out = jax.block_until_ready(jax.jit(residual_block)(x, w1, b1, w2, b2))
    ref = jax.block_until_ready(residual_block_ref(x, w1, b1, w2, b2))

    # bf16 input/weights/activations/output (f32 accumulation) vs f32 HIGHEST
    # reference -> loose-ish tolerance.
    np.testing.assert_allclose(np.asarray(out), np.asarray(ref),
                               rtol=5e-2, atol=5e-2)
    print("KERNEL_OK")
</pallas_src>

<mosaic_0001>
module attributes {stable_mosaic.version = 11 : i64} {
  func.func @residual_block_kernel(%arg0: i32, %arg1: memref<1x16x16x128xbf16, #tpu.memory_space<vmem>>, %arg2: memref<1152x128xbf16, #tpu.memory_space<vmem>>, %arg3: memref<1152x128xbf16, #tpu.memory_space<vmem>>, %arg4: memref<1x16x16x128xbf16, #tpu.memory_space<vmem>>) attributes {dimension_semantics = [#tpu.dimension_semantics<parallel>], iteration_bounds = array<i64: 2>, scalar_prefetch = 0 : i64, scratch_operands = 0 : i64, tpu.core_type = #tpu.core_type<tc>, window_params = [{transform_indices = @transform_0, window_bounds = array<i64: 1, 16, 16, 128>}, {pipeline_mode = #tpu.pipeline_mode<synchronous>, transform_indices = @transform_1, window_bounds = array<i64: 1152, 128>}, {pipeline_mode = #tpu.pipeline_mode<synchronous>, transform_indices = @transform_2, window_bounds = array<i64: 1152, 128>}, {transform_indices = @transform_3, window_bounds = array<i64: 1, 16, 16, 128>}]} {
    %c0 = arith.constant 0 : index
    %c0_0 = arith.constant 0 : index
    %c0_1 = arith.constant 0 : index
    %c0_2 = arith.constant 0 : index
    %0 = vector.load %arg1[%c0, %c0_0, %c0_1, %c0_2] : memref<1x16x16x128xbf16, #tpu.memory_space<vmem>>, vector<1x16x16x128xbf16>
    %1 = vector.shape_cast %0 : vector<1x16x16x128xbf16> to vector<16x16x128xbf16>
    %2 = vector.extract_strided_slice %1 {offsets = [1, 0, 0], sizes = [1, 16, 128], strides = [1, 1, 1]} : vector<16x16x128xbf16> to vector<1x16x128xbf16>
    %3 = vector.extract_strided_slice %1 {offsets = [14, 0, 0], sizes = [1, 16, 128], strides = [1, 1, 1]} : vector<16x16x128xbf16> to vector<1x16x128xbf16>
    %4 = tpu.concatenate %2, %1, %3 in 0 : vector<1x16x128xbf16>, vector<16x16x128xbf16>, vector<1x16x128xbf16> -> vector<18x16x128xbf16>
    %5 = vector.extract_strided_slice %4 {offsets = [0, 1, 0], sizes = [18, 1, 128], strides = [1, 1, 1]} : vector<18x16x128xbf16> to vector<18x1x128xbf16>
    %6 = vector.extract_strided_slice %4 {offsets = [0, 0, 0], sizes = [18, 15, 128], strides = [1, 1, 1]} : vector<18x16x128xbf16> to vector<18x15x128xbf16>
    %7 = tpu.concatenate %5, %6 in 1 : vector<18x1x128xbf16>, vector<18x15x128xbf16> -> vector<18x16x128xbf16>
    %8 = vector.extract_strided_slice %7 {offsets = [0, 0, 0], sizes = [16, 16, 128], strides = [1, 1, 1]} : vector<18x16x128xbf16> to vector<16x16x128xbf16>
    %9 = vector.shape_cast %8 : vector<16x16x128xbf16> to vector<256x128xbf16>
    %10 = vector.extract_strided_slice %7 {offsets = [1, 0, 0], sizes = [16, 16, 128], strides = [1, 1, 1]} : vector<18x16x128xbf16> to vector<16x16x128xbf16>
    %11 = vector.shape_cast %10 : vector<16x16x128xbf16> to vector<256x128xbf16>
    %12 = vector.extract_strided_slice %7 {offsets = [2, 0, 0], sizes = [16, 16, 128], strides = [1, 1, 1]} : vector<18x16x128xbf16> to vector<16x16x128xbf16>
    %13 = vector.shape_cast %12 : vector<16x16x128xbf16> to vector<256x128xbf16>
    %14 = tpu.concatenate %9, %11, %13 in 1 : vector<256x128xbf16>, vector<256x128xbf16>, vector<256x128xbf16> -> vector<256x384xbf16>
    %c0_3 = arith.constant 0 : index
    %c0_4 = arith.constant 0 : index
    %15 = vector.load %arg2[%c0_3, %c0_4] : memref<1152x128xbf16, #tpu.memory_space<vmem>>, vector<384x128xbf16>
    %cst = arith.constant dense<0.000000e+00> : vector<256x128xf32>
    %16 = tpu.matmul %14, %15, %cst {dimension_numbers = #tpu.dot_dimension_numbers<[1], [0], [0], [1], [0, 0, 1, 1], [], []>} : vector<256x384xbf16>, vector<384x128xbf16>, vector<256x128xf32> -> vector<256x128xf32>
    %17 = vector.extract_strided_slice %4 {offsets = [0, 0, 0], sizes = [16, 16, 128], strides = [1, 1, 1]} : vector<18x16x128xbf16> to vector<16x16x128xbf16>
    %18 = vector.shape_cast %17 : vector<16x16x128xbf16> to vector<256x128xbf16>
    %19 = vector.extract_strided_slice %4 {offsets = [1, 0, 0], sizes = [16, 16, 128], strides = [1, 1, 1]} : vector<18x16x128xbf16> to vector<16x16x128xbf16>
    %20 = vector.shape_cast %19 : vector<16x16x128xbf16> to vector<256x128xbf16>
    %21 = vector.extract_strided_slice %4 {offsets = [2, 0, 0], sizes = [16, 16, 128], strides = [1, 1, 1]} : vector<18x16x128xbf16> to vector<16x16x128xbf16>
    %22 = vector.shape_cast %21 : vector<16x16x128xbf16> to vector<256x128xbf16>
    %23 = tpu.concatenate %18, %20, %22 in 1 : vector<256x128xbf16>, vector<256x128xbf16>, vector<256x128xbf16> -> vector<256x384xbf16>
    %c384 = arith.constant 384 : index
    %c0_5 = arith.constant 0 : index
    %24 = vector.load %arg2[%c384, %c0_5] : memref<1152x128xbf16, #tpu.memory_space<vmem>>, vector<384x128xbf16>
    %cst_6 = arith.constant dense<0.000000e+00> : vector<256x128xf32>
    %25 = tpu.matmul %23, %24, %cst_6 {dimension_numbers = #tpu.dot_dimension_numbers<[1], [0], [0], [1], [0, 0, 1, 1], [], []>} : vector<256x384xbf16>, vector<384x128xbf16>, vector<256x128xf32> -> vector<256x128xf32>
    %26 = arith.addf %16, %25 : vector<256x128xf32>
    %27 = vector.extract_strided_slice %4 {offsets = [0, 1, 0], sizes = [18, 15, 128], strides = [1, 1, 1]} : vector<18x16x128xbf16> to vector<18x15x128xbf16>
    %28 = vector.extract_strided_slice %4 {offsets = [0, 14, 0], sizes = [18, 1, 128], strides = [1, 1, 1]} : vector<18x16x128xbf16> to vector<18x1x128xbf16>
    %29 = tpu.concatenate %27, %28 in 1 : vector<18x15x128xbf16>, vector<18x1x128xbf16> -> vector<18x16x128xbf16>
    %30 = vector.extract_strided_slice %29 {offsets = [0, 0, 0], sizes = [16, 16, 128], strides = [1, 1, 1]} : vector<18x16x128xbf16> to vector<16x16x128xbf16>
    %31 = vector.shape_cast %30 : vector<16x16x128xbf16> to vector<256x128xbf16>
    %32 = vector.extract_strided_slice %29 {offsets = [1, 0, 0], sizes = [16, 16, 128], strides = [1, 1, 1]} : vector<18x16x128xbf16> to vector<16x16x128xbf16>
    %33 = vector.shape_cast %32 : vector<16x16x128xbf16> to vector<256x128xbf16>
    %34 = vector.extract_strided_slice %29 {offsets = [2, 0, 0], sizes = [16, 16, 128], strides = [1, 1, 1]} : vector<18x16x128xbf16> to vector<16x16x128xbf16>
    %35 = vector.shape_cast %34 : vector<16x16x128xbf16> to vector<256x128xbf16>
    %36 = tpu.concatenate %31, %33, %35 in 1 : vector<256x128xbf16>, vector<256x128xbf16>, vector<256x128xbf16> -> vector<256x384xbf16>
    %c768 = arith.constant 768 : index
    %c0_7 = arith.constant 0 : index
    %37 = vector.load %arg2[%c768, %c0_7] : memref<1152x128xbf16, #tpu.memory_space<vmem>>, vector<384x128xbf16>
    %cst_8 = arith.constant dense<0.000000e+00> : vector<256x128xf32>
    %38 = tpu.matmul %36, %37, %cst_8 {dimension_numbers = #tpu.dot_dimension_numbers<[1], [0], [0], [1], [0, 0, 1, 1], [], []>} : vector<256x384xbf16>, vector<384x128xbf16>, vector<256x128xf32> -> vector<256x128xf32>
    %39 = arith.addf %26, %38 : vector<256x128xf32>
    %cst_9 = arith.constant dense<0.000000e+00> : vector<128xf32>
    %40 = vector.multi_reduction <add>, %39, %cst_9 [0] : vector<256x128xf32> to vector<128xf32>
    %41 = vector.shape_cast %40 : vector<128xf32> to vector<1x128xf32>
    %cst_10 = arith.constant 3.906250e-03 : f32
    %42 = vector.broadcast %cst_10 : f32 to vector<1x128xf32>
    %43 = arith.mulf %41, %42 : vector<1x128xf32>
    %44 = vector.broadcast %43 : vector<1x128xf32> to vector<256x128xf32>
    %45 = arith.subf %39, %44 : vector<256x128xf32>
    %46 = arith.mulf %45, %45 : vector<256x128xf32>
    %cst_11 = arith.constant dense<0.000000e+00> : vector<128xf32>
    %47 = vector.multi_reduction <add>, %46, %cst_11 [0] : vector<256x128xf32> to vector<128xf32>
    %48 = vector.shape_cast %47 : vector<128xf32> to vector<1x128xf32>
    %cst_12 = arith.constant 3.906250e-03 : f32
    %49 = vector.broadcast %cst_12 : f32 to vector<1x128xf32>
    %50 = arith.mulf %48, %49 : vector<1x128xf32>
    %cst_13 = arith.constant 9.99999974E-6 : f32
    %51 = vector.broadcast %cst_13 : f32 to vector<1x128xf32>
    %52 = arith.addf %50, %51 : vector<1x128xf32>
    %53 = math.rsqrt %52 : vector<1x128xf32>
    %54 = vector.broadcast %53 : vector<1x128xf32> to vector<256x128xf32>
    %55 = arith.mulf %45, %54 : vector<256x128xf32>
    %cst_14 = arith.constant 0.000000e+00 : f32
    %56 = vector.broadcast %cst_14 : f32 to vector<256x128xf32>
    %57 = arith.maximumf %55, %56 : vector<256x128xf32>
    %58 = arith.truncf %57 : vector<256x128xf32> to vector<256x128xbf16>
    %59 = vector.shape_cast %58 : vector<256x128xbf16> to vector<16x16x128xbf16>
    %60 = vector.extract_strided_slice %59 {offsets = [1, 0, 0], sizes = [1, 16, 128], strides = [1, 1, 1]} : vector<16x16x128xbf16> to vector<1x16x128xbf16>
    %61 = vector.extract_strided_slice %59 {offsets = [14, 0, 0], sizes = [1, 16, 128], strides = [1, 1, 1]} : vector<16x16x128xbf16> to vector<1x16x128xbf16>
    %62 = tpu.concatenate %60, %59, %61 in 0 : vector<1x16x128xbf16>, vector<16x16x128xbf16>, vector<1x16x128xbf16> -> vector<18x16x128xbf16>
    %63 = vector.extract_strided_slice %62 {offsets = [0, 1, 0], sizes = [18, 1, 128], strides = [1, 1, 1]} : vector<18x16x128xbf16> to vector<18x1x128xbf16>
    %64 = vector.extract_strided_slice %62 {offsets = [0, 0, 0], sizes = [18, 15, 128], strides = [1, 1, 1]} : vector<18x16x128xbf16> to vector<18x15x128xbf16>
    %65 = tpu.concatenate %63, %64 in 1 : vector<18x1x128xbf16>, vector<18x15x128xbf16> -> vector<18x16x128xbf16>
    %66 = vector.extract_strided_slice %65 {offsets = [0, 0, 0], sizes = [16, 16, 128], strides = [1, 1, 1]} : vector<18x16x128xbf16> to vector<16x16x128xbf16>
    %67 = vector.shape_cast %66 : vector<16x16x128xbf16> to vector<256x128xbf16>
    %68 = vector.extract_strided_slice %65 {offsets = [1, 0, 0], sizes = [16, 16, 128], strides = [1, 1, 1]} : vector<18x16x128xbf16> to vector<16x16x128xbf16>
    %69 = vector.shape_cast %68 : vector<16x16x128xbf16> to vector<256x128xbf16>
    %70 = vector.extract_strided_slice %65 {offsets = [2, 0, 0], sizes = [16, 16, 128], strides = [1, 1, 1]} : vector<18x16x128xbf16> to vector<16x16x128xbf16>
    %71 = vector.shape_cast %70 : vector<16x16x128xbf16> to vector<256x128xbf16>
    %72 = tpu.concatenate %67, %69, %71 in 1 : vector<256x128xbf16>, vector<256x128xbf16>, vector<256x128xbf16> -> vector<256x384xbf16>
    %c0_15 = arith.constant 0 : index
    %c0_16 = arith.constant 0 : index
    %73 = vector.load %arg3[%c0_15, %c0_16] : memref<1152x128xbf16, #tpu.memory_space<vmem>>, vector<384x128xbf16>
    %cst_17 = arith.constant dense<0.000000e+00> : vector<256x128xf32>
    %74 = tpu.matmul %72, %73, %cst_17 {dimension_numbers = #tpu.dot_dimension_numbers<[1], [0], [0], [1], [0, 0, 1, 1], [], []>} : vector<256x384xbf16>, vector<384x128xbf16>, vector<256x128xf32> -> vector<256x128xf32>
    %75 = vector.extract_strided_slice %62 {offsets = [0, 0, 0], sizes = [16, 16, 128], strides = [1, 1, 1]} : vector<18x16x128xbf16> to vector<16x16x128xbf16>
    %76 = vector.shape_cast %75 : vector<16x16x128xbf16> to vector<256x128xbf16>
    %77 = vector.extract_strided_slice %62 {offsets = [1, 0, 0], sizes = [16, 16, 128], strides = [1, 1, 1]} : vector<18x16x128xbf16> to vector<16x16x128xbf16>
    %78 = vector.shape_cast %77 : vector<16x16x128xbf16> to vector<256x128xbf16>
    %79 = vector.extract_strided_slice %62 {offsets = [2, 0, 0], sizes = [16, 16, 128], strides = [1, 1, 1]} : vector<18x16x128xbf16> to vector<16x16x128xbf16>
    %80 = vector.shape_cast %79 : vector<16x16x128xbf16> to vector<256x128xbf16>
    %81 = tpu.concatenate %76, %78, %80 in 1 : vector<256x128xbf16>, vector<256x128xbf16>, vector<256x128xbf16> -> vector<256x384xbf16>
    %c384_18 = arith.constant 384 : index
    %c0_19 = arith.constant 0 : index
    %82 = vector.load %arg3[%c384_18, %c0_19] : memref<1152x128xbf16, #tpu.memory_space<vmem>>, vector<384x128xbf16>
    %cst_20 = arith.constant dense<0.000000e+00> : vector<256x128xf32>
    %83 = tpu.matmul %81, %82, %cst_20 {dimension_numbers = #tpu.dot_dimension_numbers<[1], [0], [0], [1], [0, 0, 1, 1], [], []>} : vector<256x384xbf16>, vector<384x128xbf16>, vector<256x128xf32> -> vector<256x128xf32>
    %84 = arith.addf %74, %83 : vector<256x128xf32>
    %85 = vector.extract_strided_slice %62 {offsets = [0, 1, 0], sizes = [18, 15, 128], strides = [1, 1, 1]} : vector<18x16x128xbf16> to vector<18x15x128xbf16>
    %86 = vector.extract_strided_slice %62 {offsets = [0, 14, 0], sizes = [18, 1, 128], strides = [1, 1, 1]} : vector<18x16x128xbf16> to vector<18x1x128xbf16>
    %87 = tpu.concatenate %85, %86 in 1 : vector<18x15x128xbf16>, vector<18x1x128xbf16> -> vector<18x16x128xbf16>
    %88 = vector.extract_strided_slice %87 {offsets = [0, 0, 0], sizes = [16, 16, 128], strides = [1, 1, 1]} : vector<18x16x128xbf16> to vector<16x16x128xbf16>
    %89 = vector.shape_cast %88 : vector<16x16x128xbf16> to vector<256x128xbf16>
    %90 = vector.extract_strided_slice %87 {offsets = [1, 0, 0], sizes = [16, 16, 128], strides = [1, 1, 1]} : vector<18x16x128xbf16> to vector<16x16x128xbf16>
    %91 = vector.shape_cast %90 : vector<16x16x128xbf16> to vector<256x128xbf16>
    %92 = vector.extract_strided_slice %87 {offsets = [2, 0, 0], sizes = [16, 16, 128], strides = [1, 1, 1]} : vector<18x16x128xbf16> to vector<16x16x128xbf16>
    %93 = vector.shape_cast %92 : vector<16x16x128xbf16> to vector<256x128xbf16>
    %94 = tpu.concatenate %89, %91, %93 in 1 : vector<256x128xbf16>, vector<256x128xbf16>, vector<256x128xbf16> -> vector<256x384xbf16>
    %c768_21 = arith.constant 768 : index
    %c0_22 = arith.constant 0 : index
    %95 = vector.load %arg3[%c768_21, %c0_22] : memref<1152x128xbf16, #tpu.memory_space<vmem>>, vector<384x128xbf16>
    %cst_23 = arith.constant dense<0.000000e+00> : vector<256x128xf32>
    %96 = tpu.matmul %94, %95, %cst_23 {dimension_numbers = #tpu.dot_dimension_numbers<[1], [0], [0], [1], [0, 0, 1, 1], [], []>} : vector<256x384xbf16>, vector<384x128xbf16>, vector<256x128xf32> -> vector<256x128xf32>
    %97 = arith.addf %84, %96 : vector<256x128xf32>
    %cst_24 = arith.constant dense<0.000000e+00> : vector<128xf32>
    %98 = vector.multi_reduction <add>, %97, %cst_24 [0] : vector<256x128xf32> to vector<128xf32>
    %99 = vector.shape_cast %98 : vector<128xf32> to vector<1x128xf32>
    %cst_25 = arith.constant 3.906250e-03 : f32
    %100 = vector.broadcast %cst_25 : f32 to vector<1x128xf32>
    %101 = arith.mulf %99, %100 : vector<1x128xf32>
    %102 = vector.broadcast %101 : vector<1x128xf32> to vector<256x128xf32>
    %103 = arith.subf %97, %102 : vector<256x128xf32>
    %104 = arith.mulf %103, %103 : vector<256x128xf32>
    %cst_26 = arith.constant dense<0.000000e+00> : vector<128xf32>
    %105 = vector.multi_reduction <add>, %104, %cst_26 [0] : vector<256x128xf32> to vector<128xf32>
    %106 = vector.shape_cast %105 : vector<128xf32> to vector<1x128xf32>
    %cst_27 = arith.constant 3.906250e-03 : f32
    %107 = vector.broadcast %cst_27 : f32 to vector<1x128xf32>
    %108 = arith.mulf %106, %107 : vector<1x128xf32>
    %cst_28 = arith.constant 9.99999974E-6 : f32
    %109 = vector.broadcast %cst_28 : f32 to vector<1x128xf32>
    %110 = arith.addf %108, %109 : vector<1x128xf32>
    %111 = math.rsqrt %110 : vector<1x128xf32>
    %112 = vector.broadcast %111 : vector<1x128xf32> to vector<256x128xf32>
    %113 = arith.mulf %103, %112 : vector<256x128xf32>
    %114 = vector.shape_cast %113 : vector<256x128xf32> to vector<16x16x128xf32>
    %c0_29 = arith.constant 0 : index
    %c0_30 = arith.constant 0 : index
    %c0_31 = arith.constant 0 : index
    %c0_32 = arith.constant 0 : index
    %115 = vector.load %arg1[%c0_29, %c0_30, %c0_31, %c0_32] : memref<1x16x16x128xbf16, #tpu.memory_space<vmem>>, vector<1x16x16x128xbf16>
    %116 = vector.shape_cast %115 : vector<1x16x16x128xbf16> to vector<16x16x128xbf16>
    %117 = arith.extf %116 : vector<16x16x128xbf16> to vector<16x16x128xf32>
    %118 = arith.addf %117, %114 : vector<16x16x128xf32>
    %119 = arith.truncf %118 : vector<16x16x128xf32> to vector<16x16x128xbf16>
    %c0_33 = arith.constant 0 : index
    %c0_34 = arith.constant 0 : index
    %c0_35 = arith.constant 0 : index
    %c0_36 = arith.constant 0 : index
    %120 = vector.load %arg4[%c0_33, %c0_34, %c0_35, %c0_36] : memref<1x16x16x128xbf16, #tpu.memory_space<vmem>>, vector<1x16x16x128xbf16>
    %121 = vector.shape_cast %120 : vector<1x16x16x128xbf16> to vector<16x16x128xbf16>
    %122 = vector.shape_cast %119 : vector<16x16x128xbf16> to vector<1x16x16x128xbf16>
    tpu.vector_store %arg4[%c0_33, %c0_34, %c0_35, %c0_36], %122 {strides = array<i32>} : memref<1x16x16x128xbf16, #tpu.memory_space<vmem>>, vector<1x16x16x128xbf16>,
    return
  }
  func.func @transform_0(%arg0: i32) -> (i32, i32, i32, i32) {
    %c0_i32 = arith.constant 0 : i32
    %c0_i32_0 = arith.constant 0 : i32
    %c0_i32_1 = arith.constant 0 : i32
    %c0_i32_2 = arith.constant 0 : i32
    return %arg0, %c0_i32, %c0_i32_0, %c0_i32_1 : i32, i32, i32, i32
  }
  func.func @transform_1(%arg0: i32) -> (i32, i32) {
    %c0_i32 = arith.constant 0 : i32
    %c0_i32_0 = arith.constant 0 : i32
    %c0_i32_1 = arith.constant 0 : i32
    return %c0_i32, %c0_i32_0 : i32, i32
  }
  func.func @transform_2(%arg0: i32) -> (i32, i32) {
    %c0_i32 = arith.constant 0 : i32
    %c0_i32_0 = arith.constant 0 : i32
    %c0_i32_1 = arith.constant 0 : i32
    return %c0_i32, %c0_i32_0 : i32, i32
  }
  func.func @transform_3(%arg0: i32) -> (i32, i32, i32, i32) {
    %c0_i32 = arith.constant 0 : i32
    %c0_i32_0 = arith.constant 0 : i32
    %c0_i32_1 = arith.constant 0 : i32
    %c0_i32_2 = arith.constant 0 : i32
    return %arg0, %c0_i32, %c0_i32_0, %c0_i32_1 : i32, i32, i32, i32
  }
}

</mosaic_0001>

<bundles_post_ra>
// kernel: residual_block.1
= control target key start
LH: loop header
LB: loop body
LE: loop exit
PB: predicated region body
PF: predicated region fallthrough
CT: control target
= control target key end

     0   :  { %s6501_s12 = smov 0   ;;  %s9512_s0 = inlined_call_operand.vmem [shape: bf16[2,16,16,128], index: 0, kind: input, shape index: {}]   ;;  %s9513_s1 = inlined_call_operand.vmem [shape: bf16[1152,128], index: 1, kind: input, shape index: {}]   ;;  %s9514_s2 = inlined_call_operand.vmem [shape: bf16[1152,128], index: 2, kind: input, shape index: {}]   ;;  %s9515_s3 = inlined_call_operand.vmem [shape: bf16[2,16,16,128], index: 3, kind: output, shape index: {}]  }
   0x1 LB: > { %s4753_s13 = sadd.s32 4294967295, %s6479_s12   ;;  %p4757_p0 = scmp.ge.s32.totalorder %s6479_s12, 1  ;;  %s6479_s12 = sphi %s6501_s12, %s13_s12  }
   0x2   : > { %p137_p1 = scmp.lt.s32.totalorder %s6479_s12, 3 }
   0x4   : > { %p138_p2 = pnand %p4757_p0, %p137_p1 }
   0x6   : > { %141 = sbr.rel (%p138_p2) target bundleno = 1352 (0x548), region = 32 }
   0xb   : > { %v6229_v0 = vld [vmem:[%s9513_s1 + $0x138] sm:$0xff]   ;;  %v6232_v3 = vld [vmem:[%s9513_s1 + $0x130] sm:$0xff]   ;;  %v6235_v6 = vld [vmem:[%s9513_s1 + $0x128] sm:$0xff]   ;;  %p161_p3 = scmp.lt.s32.totalorder %s4753_s13, 1  ;;  %vm492_vm0 = vcmask 1040384   ;;  %vm1699_vm3 = vcmask 1047552  }
   0xc   : > { %v6230_v1 = vld [vmem:[%s9513_s1 + $0x178] sm:$0xff]   ;;  %5117 = vmatprep.subr.bf16.mxu0 %v6229_v0  ;;  %v6233_v4 = vld [vmem:[%s9513_s1 + $0x170] sm:$0xff]   ;;  %v6236_v7 = vld [vmem:[%s9513_s1 + $0x168] sm:$0xff]   ;;  %vm493_vm1 = vsmask.f32 256 }
   0xd   : > { %v6231_v2 = vld [vmem:[%s9513_s1 + $0xf8] sm:$0xff]   ;;  %5933 = vmatprep.subr.bf16.mxu1 %v6230_v1  ;;  %v6234_v5 = vld [vmem:[%s9513_s1 + $0xf0] sm:$0xff]   ;;  %v6237_v8 = vld [vmem:[%s9513_s1 + $0xe8] sm:$0xff]   ;;  %s9697_s13 = smov (!%p161_p3, %s4753_s13), 1  ;;  %vm1700_vm4 = vsmask.f32 7424 }
   0xe   : > { %5118 = vmatpush3.bf16.msra.mxu0 %v6231_v2  ;;  %5934 = vmatpush3.bf16.msra.mxu1 %v6230_v1  ;;  %v6238_v9 = vld [vmem:[%s9513_s1 + $0x120] sm:$0xff]   ;;  %v6241_v12 = vld [vmem:[%s9513_s1 + $0x118] sm:$0xff]   ;;  %v6244_v15 = vld [vmem:[%s9513_s1 + $0x110] sm:$0xff]   ;;  %s4988_s23 = sshll.u32 %s9697_s13, 7 }
   0xf   : > { %5119 = vmatprep.subr.bf16.mxu0 %v6232_v3  ;;  %5935 = vmatprep.subr.bf16.mxu1 %v6233_v4  ;;  %v6239_v10 = vld [vmem:[%s9513_s1 + $0x160] sm:$0xff]   ;;  %v6242_v13 = vld [vmem:[%s9513_s1 + $0x158] sm:$0xff]   ;;  %v6245_v16 = vld [vmem:[%s9513_s1 + $0x150] sm:$0xff]   ;;  %s6581_s5 = scalar_lea.vmem %s9512_s0, %s4988_s23  ;;  %s9483_s28 = scalar_lea.vmem %s9515_s3, %s4988_s23 }
  0x10   : > { %v6240_v11 = vld [vmem:[%s9513_s1 + $0xe0] sm:$0xff]   ;;  %v6243_v14 = vld [vmem:[%s9513_s1 + $0xd8] sm:$0xff]   ;;  %v6246_v17 = vld [vmem:[%s9513_s1 + $0xd0] sm:$0xff]  }
  0x11   : > { %v6247_v18 = vld [vmem:[%s9513_s1 + $0x108] sm:$0xff]   ;;  %v6587_v21 = vld [vmem:[%s6581_s5] sm:$0xf]  ;;  %v173_v22 = vld [vmem:[%s6581_s5 + $0x4] sm:$0xf] }
  0x12   : > { %5120 = vmatpush3.bf16.msra.mxu0 %v6234_v5  ;;  %5936 = vmatpush3.bf16.msra.mxu1 %v6233_v4  ;;  %v6248_v19 = vld [vmem:[%s9513_s1 + $0x148] sm:$0xff]   ;;  %v6250_v24 = vld [vmem:[%s9513_s1 + $0x100] sm:$0xff]   ;;  %v6600_v26 = vcombine.low %v6587_v21, %v173_v22  ;;  %v6611_v30 = vld [vmem:[%s6581_s5 + $0x10] sm:$0xf]  ;;  %v9540_v22 = vmov 0 }
  0x13   : > { %5121 = vmatprep.subr.bf16.mxu0 %v6235_v6  ;;  %5937 = vmatprep.subr.bf16.mxu1 %v6236_v7  ;;  %v6249_v20 = vld [vmem:[%s9513_s1 + $0xc8] sm:$0xff]   ;;  %v6251_v25 = vld [vmem:[%s9513_s1 + $0x140] sm:$0xff]   ;;  %v177_v31 = vld [vmem:[%s6581_s5 + $0x14] sm:$0xf]  ;;  %v4764_v0 = vcombine.low %v6611_v30, %v6611_v30 }
  0x14   : > { %v6591_v23 = vld [vmem:[%s6581_s5 + $0x8] sm:$0xf]  ;;  %v175_v27 = vld [vmem:[%s6581_s5 + $0xc] sm:$0xf]  ;;  %799 = vmatprep.mubr.bf16.mxu0 %v6600_v26  ;;  %v6252_v29 = vld [vmem:[%s9513_s1 + $0xc0] sm:$0xff]   ;;  %v6623_v35 = vcombine.low %v6611_v30, %v177_v31 }
  0x15   : > { %v6604_v28 = vcombine.low %v6591_v23, %v175_v27  ;;  %v6256_v32 = vld [vmem:[%s9513_s1 + $0xb8] sm:$0xff]   ;;  %v6261_v37 = vld [vmem:[%s9513_s1 + $0xb0] sm:$0xff]   ;;  %v6632_v38 = vld [vmem:[%s6581_s5 + $0x20] sm:$0xf]  ;;  %v4762_v60 = vcombine.low %v6591_v23, %v6591_v23 }
  0x16   : > { %5122 = vmatpush3.bf16.msra.mxu0 %v6237_v8  ;;  %5938 = vmatpush3.bf16.msra.mxu1 %v6236_v7  ;;  %v6619_v33 = vld [vmem:[%s6581_s5 + $0x18] sm:$0xf]  ;;  %v179_v34 = vld [vmem:[%s6581_s5 + $0x1c] sm:$0xf]  ;;  %v181_v39 = vld [vmem:[%s6581_s5 + $0x24] sm:$0xf] }
  0x17   : > { %5123 = vmatprep.subr.bf16.mxu0 %v6238_v9  ;;  %5939 = vmatprep.subr.bf16.mxu1 %v6239_v10  ;;  %v6626_v36 = vcombine.low %v6619_v33, %v179_v34  ;;  %v6266_v40 = vld [vmem:[%s9513_s1 + $0x78] sm:$0xff]   ;;  %v6641_v41 = vld [vmem:[%s6581_s5 + $0x28] sm:$0xf]  ;;  %v183_v42 = vld [vmem:[%s6581_s5 + $0x2c] sm:$0xf]  ;;  %v6656_v46 = vcombine.low %v6632_v38, %v181_v39  ;;  %v365_v52 = vshrl.u32 %v6604_v28, 16 }
  0x18   : > { %5949 = vmatprep.mubr.bf16.mxu1 %v6604_v28  ;;  %v6267_v43 = vld [vmem:[%s9513_s1 + $0xa8] sm:$0xff]   ;;  %v6268_v44 = vld [vmem:[%s9513_s1 + $0x38] sm:$0xff]   ;;  %v6269_v45 = vld [vmem:[%s9513_s1 + $0x70] sm:$0xff]   ;;  %v6659_v47 = vcombine.low %v6641_v41, %v183_v42  ;;  %v379_v58 = vshrl.u32 %v6623_v35, 16  ;;  %v368_v62 = vshll.u32 %v6604_v28, 16  ;;  %v382_v2 = vshll.u32 %v6623_v35, 16 }
  0x19   : > { %v6270_v48 = vld [vmem:[%s9513_s1 + $0x30] sm:$0xff]   ;;  %v6273_v50 = vld [vmem:[%s9513_s1 + $0x68] sm:$0xff]   ;;  %v6677_v53 = vld [vmem:[%s6581_s5 + $0x38] sm:$0xf]  ;;  %v367_v61 = vrot.slane %v365_v52, 7  ;;  %v253_v9 = vshrl.u32 %v4762_v60, 16 }
  0x1a   : > { %5124 = vmatpush3.bf16.msra.mxu0 %v6240_v11  ;;  %5940 = vmatpush3.bf16.msra.mxu1 %v6239_v10  ;;  %v6665_v49 = vld [vmem:[%s6581_s5 + $0x30] sm:$0xf]  ;;  %v185_v51 = vld [vmem:[%s6581_s5 + $0x34] sm:$0xf]  ;;  %v187_v54 = vld [vmem:[%s6581_s5 + $0x3c] sm:$0xf]  ;;  %v4765_v10 = vcombine.low %v6619_v33, %v6619_v33 }
  0x1b   : > { %5125 = vmatprep.subr.bf16.mxu0 %v6241_v12  ;;  %5941 = vmatprep.subr.bf16.mxu1 %v6242_v13  ;;  %v6274_v55 = vld [vmem:[%s9513_s1 + $0x28] sm:$0xff]   ;;  %v6275_v56 = vld [vmem:[%s9513_s1 + $0x60] sm:$0xff]   ;;  %v6691_v59 = vcombine.low %v6665_v49, %v185_v51  ;;  %v6699_v63 = vcombine.low %v6677_v53, %v187_v54  ;;  %v381_v1 = vrot.slane %v379_v58, 7  ;;  %v6279_v6 = vld [vmem:[%s9513_s1 + $0x58] sm:$0xff]   ;;  %v370_v11 = vor.u32 %v368_v62, %v367_v61 }
  0x1c   : > { %v6280_v57 = vld [vmem:[%s9513_s1 + $0xa0] sm:$0xff]   ;;  %v6719_v7 = vld [vmem:[%s6581_s5 + $0x48] sm:$0xf]  ;;  %v191_v8 = vld [vmem:[%s6581_s5 + $0x4c] sm:$0xf]  ;;  %v259_v12 = vshrl.u32 %v4764_v0, 16 }
  0x1d   : > { %v6276_v3 = vld [vmem:[%s9513_s1 + $0x20] sm:$0xff]   ;;  %vm6747_vm2 = vmand %vm492_vm0, %vm493_vm1  ;;  %v262_v23 = vshrl.u32 %v4765_v10, 16  ;;  %v6293_v30 = vld [vmem:[%s9513_s1 + $0x90] sm:$0xff]   ;;  %v393_v31 = vshrl.u32 %v6656_v46, 16  ;;  %v396_v34 = vshll.u32 %v6656_v46, 16 }
  0x1e   : > { %5126 = vmatpush3.bf16.msra.mxu0 %v6243_v14  ;;  %5942 = vmatpush3.bf16.msra.mxu1 %v6242_v13  ;;  %v6710_v4 = vld [vmem:[%s6581_s5 + $0x40] sm:$0xf]  ;;  %v189_v5 = vld [vmem:[%s6581_s5 + $0x44] sm:$0xf]  ;;  %v384_v13 = vor.u32 %v382_v2, %v381_v1  ;;  %v386_v14 = vshrl.u32 %v6626_v36, 16  ;;  %v9541_v22 = vsel %vm6747_vm2, 4294967295, %v9540_v22  ;;  %v6758_v27 = vsel %vm6747_vm2, %v253_v9, %v370_v11  ;;  %vm7136_vm5 = vmand %vm1699_vm3, %vm1700_vm4 }
  0x1f   : > { %5127 = vmatprep.subr.bf16.mxu0 %v6244_v15  ;;  %5943 = vmatprep.subr.bf16.mxu1 %v6245_v16  ;;  %v6281_v15 = vld [vmem:[%s9513_s1 + $0x18] sm:$0xff]   ;;  %9542 = vst [vmem:[#allocation2_spill] sm:$0xff] %v9541_v22  ;;  %v395_v39 = vrot.slane %v393_v31, 7  ;;  %v6785_v42 = vld [vmem:[%s6581_s5 + $0x50] sm:$0xf]  ;;  %v6286_v51 = vld [vmem:[%s9513_s1 + $0x8] sm:$0xff]  }
  0x20   : > { %v6287_v54 = vld [vmem:[%s9513_s1 + $0x40] sm:$0xff]   ;;  %v6301_v0 = vld [vmem:[%s9513_s1 + $0x238] sm:$0xff]   ;;  %v372_v11 = vshrl.u32 %v6600_v26, 16 }
  0x21   : > { %v6288_v61 = vld [vmem:[%s9513_s1] sm:$0xff]   ;;  %v6303_v1 = vld [vmem:[%s9513_s1 + $0x1f8] sm:$0xff]  }
  0x22   : > { %5128 = vmatpush3.bf16.msra.mxu0 %v6246_v17  ;;  %5944 = vmatpush3.bf16.msra.mxu1 %v6245_v16  ;;  %v389_v16 = vshll.u32 %v6626_v36, 16  ;;  %v6282_v17 = vld [vmem:[%s9513_s1 + $0x50] sm:$0xff]  }
  0x23   : > { %5129 = vmatprep.subr.bf16.mxu0 %v6247_v18  ;;  %5945 = vmatprep.subr.bf16.mxu1 %v6248_v19  ;;  %v6291_v18 = vld [vmem:[%s9513_s1 + $0x98] sm:$0xff]  }
  0x26   : > { %5130 = vmatpush3.bf16.msra.mxu0 %v6249_v20  ;;  %5946 = vmatpush3.bf16.msra.mxu1 %v6248_v19  ;;  %v4766_v19 = vcombine.low %v6632_v38, %v6632_v38  ;;  %v6744_v20 = vcombine.low %v6710_v4, %v189_v5  ;;  %v197_v5 = vld [vmem:[%s6581_s5 + $0x64] sm:$0xf] }
  0x27   : > { %5131 = vmatprep.subr.bf16.mxu0 %v6250_v24  ;;  %5947 = vmatprep.subr.bf16.mxu1 %v6251_v25  ;;  %v388_v24 = vrot.slane %v386_v14, 7 }
  0x28   : > { %v265_v38 = vshrl.u32 %v4766_v19, 16  ;;  %v375_v19 = vshll.u32 %v6600_v26, 16 }
  0x29   : > { %v391_v33 = vor.u32 %v389_v16, %v388_v24 }
  0x2a   : > { %5132 = vmatpush3.bf16.msra.mxu0 %v6252_v29  ;;  %5948 = vmatpush3.bf16.msra.mxu1 %v6251_v25  ;;  %v6754_v25 = vcombine.low %v6719_v7, %v191_v8  ;;  %v6762_v29 = vsel %vm6747_vm2, %v259_v12, %v384_v13  ;;  %v199_v8 = vld [vmem:[%s6581_s5 + $0x6c] sm:$0xf]  ;;  %v6850_v12 = vld [vmem:[%s6581_s5 + $0x70] sm:$0xf]  ;;  %v201_v13 = vld [vmem:[%s6581_s5 + $0x74] sm:$0xf] }
  0x2b   : > { %5981 = vmatprep.subr.bf16.mxu0 %v6256_v32  ;;  %5253 = vmatprep.subr.bf16.mxu1 %v6266_v40  ;;  %v6296_v40 = vld [vmem:[%s9513_s1 + $0x88] sm:$0xff]  }
  0x2d   : > { %800 = vmatmul.mubr.bf16.vlgmr.msra.gmra.mxu0 %v6604_v28  ;;  %5950 = vmatmul.mubr.bf16.vlgmr.msra.gmra.mxu1 %v6623_v35 }
  0x2e   : > { %5982 = vmatpush3.bf16.msra.mxu0 %v6256_v32  ;;  %807 = vmatprep.mubr.bf16.mxu0 %v6604_v28  ;;  %v6283_v32 = vld [vmem:[%s9513_s1 + $0x10] sm:$0xff]  }
  0x2f   : > { %5953 = vmatprep.mubr.bf16.mxu1 %v6626_v36  ;;  %5983 = vmatprep.subr.bf16.mxu0 %v6261_v37 }
  0x30   : > { %5254 = vmatpush3.bf16.msra.mxu1 %v6268_v44  ;;  %v6790_v44 = vsel %vm6747_vm2, %v262_v23, %v391_v33  ;;  %v6861_v23 = vcombine.low %v6850_v12, %v201_v13 }
  0x31   : > { %5255 = vmatprep.subr.bf16.mxu1 %v6269_v45  ;;  %v6795_v45 = vld [vmem:[%s6581_s5 + $0x58] sm:$0xf] }
  0x32   : > { %5984 = vmatpush3.bf16.msra.mxu0 %v6261_v37  ;;  %v6285_v37 = vld [vmem:[%s9513_s1 + $0x48] sm:$0xff]  }
  0x33   : > { %5985 = vmatprep.subr.bf16.mxu0 %v6267_v43 }
  0x34   : > { %5256 = vmatpush3.bf16.msra.mxu1 %v6270_v48  ;;  %v195_v48 = vld [vmem:[%s6581_s5 + $0x5c] sm:$0xf] }
  0x35   : > { %808 = vmatmul.mubr.bf16.gmra.mxu0 %v6600_v26  ;;  %5954 = vmatmul.mubr.bf16.gmra.mxu1 %v6656_v46  ;;  %v6817_v60 = vcombine.low %v6795_v45, %v195_v48  ;;  %v6308_v48 = vld [vmem:[%s9513_s1 + $0x230] sm:$0xff]  }
  0x36   : > { %815 = vmatprep.mubr.bf16.mxu0 %v6623_v35  ;;  %5957 = vmatprep.mubr.bf16.mxu1 %v6659_v47 }
  0x37   : > { %5986 = vmatpush3.bf16.msra.mxu0 %v6267_v43  ;;  %5257 = vmatprep.subr.bf16.mxu1 %v6273_v50  ;;  %v193_v43 = vld [vmem:[%s6581_s5 + $0x54] sm:$0xf]  ;;  %v398_v50 = vor.u32 %v396_v34, %v395_v39  ;;  %v1555_v39 = vrot.slane %v368_v62, 1 }
  0x38   : > { %5987 = vmatprep.subr.bf16.mxu0 %v6280_v57  ;;  %5258 = vmatpush3.bf16.msra.mxu1 %v6274_v55 }
  0x39   : > { %5259 = vmatprep.subr.bf16.mxu1 %v6275_v56  ;;  %v6808_v55 = vsel %vm6747_vm2, %v265_v38, %v398_v50  ;;  %v6299_v56 = vld [vmem:[%s9513_s1 + $0x80] sm:$0xff]   ;;  %v1559_v38 = vrot.slane %v382_v2, 1  ;;  %v1561_v2 = vrot.slane %v389_v16, 1  ;;  %v6327_v16 = vld [vmem:[%s9513_s1 + $0x210] sm:$0xff]  }
  0x3b   : > { %5988 = vmatpush3.bf16.msra.mxu0 %v6280_v57  ;;  %v6814_v57 = vcombine.low %v6785_v42, %v193_v43  ;;  %v400_v43 = vshrl.u32 %v6659_v47, 16  ;;  %v6893_v50 = vor.u32 %v1559_v38, %v379_v58  ;;  %v6326_v58 = vld [vmem:[%s9513_s1 + $0x218] sm:$0xff]   ;;  %v424_v38 = vshll.u32 %v6744_v20, 16 }
  0x3c   : > { %5260 = vmatpush3.bf16.msra.mxu1 %v6276_v3  ;;  %5989 = vmatprep.subr.bf16.mxu0 %v6291_v18  ;;  %v6831_v3 = vld [vmem:[%s6581_s5 + $0x60] sm:$0xf] }
  0x3d   : > { %816 = vmatmul.mubr.bf16.gmra.mxu0 %v6604_v28  ;;  %5958 = vmatmul.mubr.bf16.gmra.mxu1 %v6691_v59  ;;  %v6841_v9 = vcombine.low %v6831_v3, %v197_v5  ;;  %v6315_v28 = vld [vmem:[%s9513_s1 + $0x228] sm:$0xff]  }
  0x3e   : > { %823 = vmatprep.mubr.bf16.mxu0 %v6626_v36  ;;  %5961 = vmatprep.mubr.bf16.mxu1 %v6699_v63 }
  0x3f   : > { %5261 = vmatprep.subr.bf16.mxu1 %v6279_v6  ;;  %5990 = vmatpush3.bf16.msra.mxu0 %v6291_v18  ;;  %v6837_v6 = vld [vmem:[%s6581_s5 + $0x68] sm:$0xf]  ;;  %v374_v18 = vrot.slane %v372_v11, 7 }
  0x40   : > { %5262 = vmatpush3.bf16.msra.mxu1 %v6281_v15  ;;  %5991 = vmatprep.subr.bf16.mxu0 %v6293_v30  ;;  %v6844_v10 = vcombine.low %v6837_v6, %v199_v8  ;;  %v6856_v15 = vld [vmem:[%s6581_s5 + $0x78] sm:$0xf] }
  0x41   : > { %5263 = vmatprep.subr.bf16.mxu1 %v6282_v17  ;;  %v203_v17 = vld [vmem:[%s6581_s5 + $0x7c] sm:$0xf]  ;;  %v377_v33 = vor.u32 %v375_v19, %v374_v18 }
  0x42   : > { %v6864_v24 = vcombine.low %v6856_v15, %v203_v17 }
  0x43   : > { %5992 = vmatpush3.bf16.msra.mxu0 %v6293_v30  ;;  %v4763_v30 = vcombine.low %v6587_v21, %v6587_v21 }
  0x44   : > { %5264 = vmatpush3.bf16.msra.mxu1 %v6283_v32  ;;  %5993 = vmatprep.subr.bf16.mxu0 %v6296_v40 }
  0x45   : > { %824 = vmatmul.mubr.bf16.gmra.mxu0 %v6623_v35  ;;  %5962 = vmatmul.mubr.bf16.gmra.mxu1 %v6744_v20  ;;  %v256_v32 = vshrl.u32 %v4763_v30, 16  ;;  %v6322_v35 = vld [vmem:[%s9513_s1 + $0x220] sm:$0xff]  }
  0x46   : > { %831 = vmatprep.mubr.bf16.mxu0 %v6656_v46  ;;  %5965 = vmatprep.mubr.bf16.mxu1 %v6754_v25 }
  0x47   : > { %5265 = vmatprep.subr.bf16.mxu1 %v6285_v37  ;;  %5994 = vmatpush3.bf16.msra.mxu0 %v6296_v40  ;;  %v496_v26 = vsel %vm6747_vm2, %v256_v32, %v377_v33  ;;  %v1557_v37 = vrot.slane %v375_v19, 1  ;;  %v6885_v40 = vor.u32 %v1555_v39, %v365_v52  ;;  %v4767_v52 = vcombine.low %v6641_v41, %v6641_v41 }
  0x48   : > { %5266 = vmatpush3.bf16.msra.mxu1 %v6286_v51  ;;  %5995 = vmatprep.subr.bf16.mxu0 %v6299_v56  ;;  %v403_v51 = vshll.u32 %v6659_v47, 16  ;;  %v402_v41 = vrot.slane %v400_v43, 7  ;;  %v4769_v19 = vcombine.low %v6677_v53, %v6677_v53  ;;  %v421_v33 = vshrl.u32 %v6744_v20, 16 }
  0x49   : > { %5267 = vmatprep.subr.bf16.mxu1 %v6287_v54  ;;  %v6877_v21 = vor.u32 %v1557_v37, %v372_v11  ;;  %v268_v62 = vshrl.u32 %v4767_v52, 16  ;;  %v1563_v54 = vrot.slane %v396_v34, 1  ;;  %v410_v11 = vshll.u32 %v6691_v59, 16 }
  0x4a   : > { %v274_v30 = vshrl.u32 %v4769_v19, 16  ;;  %v4770_v53 = vcombine.low %v6710_v4, %v6710_v4  ;;  %v423_v37 = vrot.slane %v421_v33, 7  ;;  %v445_v19 = vshll.u32 %v6817_v60, 16 }
  0x4b   : > { %5996 = vmatpush3.bf16.msra.mxu0 %v6299_v56  ;;  %v407_v56 = vshrl.u32 %v6691_v59, 16  ;;  %v6931_v34 = vor.u32 %v1563_v54, %v393_v31  ;;  %v405_v31 = vor.u32 %v403_v51, %v402_v41  ;;  %v435_v54 = vshrl.u32 %v6814_v57, 16 }
  0x4c   : > { %5268 = vmatpush3.bf16.msra.mxu1 %v6288_v61  ;;  %5389 = vmatprep.subr.bf16.mxu0 %v6303_v1  ;;  %v6923_v61 = vor.u32 %v1561_v2, %v386_v14  ;;  %v4768_v14 = vcombine.low %v6665_v49, %v6665_v49  ;;  %v417_v49 = vshll.u32 %v6699_v63, 16  ;;  %v277_v39 = vshrl.u32 %v4770_v53, 16  ;;  %v6314_v53 = vld [vmem:[%s9513_s1 + $0x1a0] sm:$0xff]  }
  0x4d   : > { %832 = vmatmul.mubr.bf16.gmra.mxu0 %v6626_v36  ;;  %5966 = vmatmul.mubr.bf16.gmra.mxu1 %v6814_v57  ;;  %v6331_v36 = vld [vmem:[%s9513_s1 + $0x208] sm:$0xff]   ;;  %v6953_v5 = vsel %vm6747_vm2, %v268_v62, %v405_v31  ;;  %v409_v8 = vrot.slane %v407_v56, 7 }
  0x4e   : > { %839 = vmatprep.mubr.bf16.mxu0 %v6659_v47  ;;  %5969 = vmatprep.mubr.bf16.mxu1 %v6817_v60  ;;  %v271_v1 = vshrl.u32 %v4768_v14, 16  ;;  %v6307_v14 = vld [vmem:[%s9513_s1 + $0x1b0] sm:$0xff]  }
  0x4f   : > { %6029 = vmatprep.subr.bf16.mxu1 %v6301_v0  ;;  %v412_v17 = vor.u32 %v410_v11, %v409_v8 }
  0x51   : > { %v6969_v18 = vsel %vm6747_vm2, %v271_v1, %v412_v17  ;;  %v6310_v1 = vld [vmem:[%s9513_s1 + $0x1e8] sm:$0xff]  }
  0x55   : > { %840 = vmatmul.mubr.bf16.gmra.mxu0 %v6656_v46  ;;  %5970 = vmatmul.mubr.bf16.gmra.mxu1 %v6841_v9  ;;  %v6332_v46 = vld [vmem:[%s9513_s1 + $0x200] sm:$0xff]  }
  0x56   : > { %847 = vmatprep.mubr.bf16.mxu0 %v6691_v59  ;;  %5973 = vmatprep.mubr.bf16.mxu1 %v6844_v10 }
  0x5d   : > { %848 = vmatmul.mubr.bf16.gmra.mxu0 %v6659_v47  ;;  %5974 = vmatmul.mubr.bf16.gmra.mxu1 %v6861_v23 }
  0x5e   : > { %855 = vmatprep.mubr.bf16.mxu0 %v6699_v63  ;;  %5977 = vmatprep.mubr.bf16.mxu1 %v6864_v24 }
  0x65   : > { %856 = vmatmul.mubr.bf16.gmra.mxu0 %v6691_v59  ;;  %5978 = vmatmul.mubr.bf16.gmra.mxu1 %v6861_v23 }
  0x66   : > { %863 = vmatprep.mubr.bf16.mxu0 %v6744_v20  ;;  %1265 = vmatprep.mubr.bf16.mxu1 %v496_v26 }
  0x6d   : > { %864 = vmatmul.mubr.bf16.gmra.mxu0 %v6699_v63  ;;  %1266 = vmatmul.mubr.bf16.vlgmr.msra.gmra.mxu1 %v6758_v27 }
  0x6e   : > { %871 = vmatprep.mubr.bf16.mxu0 %v6754_v25  ;;  %1273 = vmatprep.mubr.bf16.mxu1 %v6758_v27 }
  0x6f   : > { %6030 = vmatpush3.bf16.msra.mxu1 %v6301_v0  ;;  %v414_v0 = vshrl.u32 %v6699_v63, 16 }
  0x70   : > { %6031 = vmatprep.subr.bf16.mxu1 %v6308_v48 }
  0x71   : > { %v416_v13 = vrot.slane %v414_v0, 7 }
  0x73   : > { %6032 = vmatpush3.bf16.msra.mxu1 %v6308_v48  ;;  %v419_v32 = vor.u32 %v417_v49, %v416_v13  ;;  %v426_v48 = vor.u32 %v424_v38, %v423_v37  ;;  %v4773_v13 = vcombine.low %v6795_v45, %v6795_v45  ;;  %v449_v37 = vshrl.u32 %v6841_v9, 16 }
  0x74   : > { %6033 = vmatprep.subr.bf16.mxu1 %v6315_v28 }
  0x75   : > { %872 = vmatmul.mubr.bf16.gmra.mxu0 %v6744_v20  ;;  %1274 = vmatmul.mubr.bf16.gmra.mxu1 %v496_v26  ;;  %v6982_v26 = vsel %vm6747_vm2, %v274_v30, %v419_v32  ;;  %v6998_v4 = vsel %vm6747_vm2, %v277_v39, %v426_v48  ;;  %v6313_v30 = vld [vmem:[%s9513_s1 + $0x1e0] sm:$0xff]   ;;  %v286_v32 = vshrl.u32 %v4773_v13, 16  ;;  %v6317_v39 = vld [vmem:[%s9513_s1 + $0x1d8] sm:$0xff]   ;;  %v451_v48 = vrot.slane %v449_v37, 7 }
  0x76   : > { %879 = vmatprep.mubr.bf16.mxu0 %v6814_v57  ;;  %1281 = vmatprep.mubr.bf16.mxu1 %v6762_v29  ;;  %v6330_v13 = vld [vmem:[%s9513_s1 + $0x180] sm:$0xff]  }
  0x77   : > { %6034 = vmatpush3.bf16.msra.mxu1 %v6315_v28  ;;  %v428_v28 = vshrl.u32 %v6754_v25, 16 }
  0x78   : > { %6035 = vmatprep.subr.bf16.mxu1 %v6322_v35 }
  0x79   : > { %v430_v52 = vrot.slane %v428_v28, 7 }
  0x7b   : > { %6036 = vmatpush3.bf16.msra.mxu1 %v6322_v35  ;;  %v4771_v35 = vcombine.low %v6719_v7, %v6719_v7  ;;  %v6304_v7 = vld [vmem:[%s9513_s1 + $0x1b8] sm:$0xff]  }
  0x7c   : > { %6037 = vmatprep.subr.bf16.mxu1 %v6326_v58 }
  0x7d   : > { %880 = vmatmul.mubr.bf16.gmra.mxu0 %v6754_v25  ;;  %1282 = vmatmul.mubr.bf16.gmra.mxu1 %v6758_v27  ;;  %v280_v62 = vshrl.u32 %v4771_v35, 16  ;;  %v452_v35 = vshll.u32 %v6841_v9, 16 }
  0x7e   : > { %887 = vmatprep.mubr.bf16.mxu0 %v6817_v60  ;;  %1289 = vmatprep.mubr.bf16.mxu1 %v6790_v44 }
  0x7f   : > { %6038 = vmatpush3.bf16.msra.mxu1 %v6326_v58  ;;  %v431_v58 = vshll.u32 %v6754_v25, 16 }
  0x80   : > { %6039 = vmatprep.subr.bf16.mxu1 %v6327_v16 }
  0x81   : > { %v433_v2 = vor.u32 %v431_v58, %v430_v52  ;;  %v6318_v52 = vld [vmem:[%s9513_s1 + $0x198] sm:$0xff]  }
  0x83   : > { %6040 = vmatpush3.bf16.msra.mxu1 %v6327_v16  ;;  %v7017_v41 = vsel %vm6747_vm2, %v280_v62, %v433_v2  ;;  %v6306_v16 = vld [vmem:[%s9513_s1 + $0x1f0] sm:$0xff]   ;;  %v454_v2 = vor.u32 %v452_v35, %v451_v48 }
  0x84   : > { %6041 = vmatprep.subr.bf16.mxu1 %v6331_v36  ;;  %v6320_v62 = vld [vmem:[%s9513_s1 + $0x1d0] sm:$0xff]  }
  0x85   : > { %888 = vmatmul.mubr.bf16.gmra.mxu0 %v6814_v57  ;;  %1290 = vmatmul.mubr.bf16.gmra.mxu1 %v6762_v29 }
  0x86   : > { %895 = vmatprep.mubr.bf16.mxu0 %v6841_v9  ;;  %1297 = vmatprep.mubr.bf16.mxu1 %v6808_v55 }
  0x87   : > { %6042 = vmatpush3.bf16.msra.mxu1 %v6331_v36  ;;  %v437_v36 = vrot.slane %v435_v54, 7 }
  0x88   : > { %6043 = vmatprep.subr.bf16.mxu1 %v6332_v46 }
  0x8b   : > { %6044 = vmatpush3.bf16.msra.mxu1 %v6332_v46  ;;  %v438_v46 = vshll.u32 %v6814_v57, 16 }
  0x8d   : > { %896 = vmatmul.mubr.bf16.gmra.mxu0 %v6817_v60  ;;  %1298 = vmatmul.mubr.bf16.gmra.mxu1 %v6790_v44  ;;  %v440_v31 = vor.u32 %v438_v46, %v437_v36 }
  0x8e   : > { %903 = vmatprep.mubr.bf16.mxu0 %v6844_v10  ;;  %1305 = vmatprep.mubr.bf16.mxu1 %v6953_v5 }
  0x95   : > { %904 = vmatmul.mubr.bf16.gmra.mxu0 %v6841_v9  ;;  %1306 = vmatmul.mubr.bf16.gmra.mxu1 %v6808_v55 }
  0x96   : > { %911 = vmatprep.mubr.bf16.mxu0 %v6861_v23  ;;  %1313 = vmatprep.mubr.bf16.mxu1 %v6969_v18 }
  0x9d   : > { %912 = vmatmul.mubr.bf16.gmra.mxu0 %v6844_v10  ;;  %1314 = vmatmul.mubr.bf16.gmra.mxu1 %v6953_v5 }
  0x9e   : > { %919 = vmatprep.mubr.bf16.mxu0 %v6864_v24  ;;  %1321 = vmatprep.mubr.bf16.mxu1 %v6982_v26 }
  0xa5   : > { %920 = vmatmul.mubr.bf16.gmra.mxu0 %v6861_v23  ;;  %1322 = vmatmul.mubr.bf16.gmra.mxu1 %v6969_v18 }
  0xa6   : > { %1329 = vmatprep.mubr.bf16.mxu1 %v6998_v4  ;;  %5997 = vmatprep.mubr.bf16.mxu0 %v6758_v27  ;;  %v4772_v27 = vcombine.low %v6785_v42, %v6785_v42 }
  0xa8   : > { %v283_v42 = vshrl.u32 %v4772_v27, 16  ;;  %v6324_v27 = vld [vmem:[%s9513_s1 + $0x1c8] sm:$0xff]  }
  0xaa   : > { %v505_v8 = vsel %vm6747_vm2, %v283_v42, %v440_v31  ;;  %v6325_v42 = vld [vmem:[%s9513_s1 + $0x188] sm:$0xff]   ;;  %v6329_v31 = vld [vmem:[%s9513_s1 + $0x1c0] sm:$0xff]  }
  0xad   : > { %1330 = vmatmul.mubr.bf16.gmra.mxu1 %v6982_v26  ;;  %5998 = vmatmul.mubr.bf16.vlgmr.msra.gmra.mxu0 %v6762_v29  ;;  %v442_v29 = vshrl.u32 %v6817_v60, 16 }
  0xae   : > { %5390 = vmatpush3.bf16.msra.mxu0 %v6304_v7  ;;  %1337 = vmatprep.mubr.bf16.mxu1 %v7017_v41  ;;  %v456_v7 = vshrl.u32 %v6844_v10, 16 }
  0xaf   : > { %6001 = vmatprep.mubr.bf16.mxu0 %v6790_v44  ;;  %5391 = vmatprep.subr.bf16.mxu0 %v6306_v16  ;;  %v6311_v44 = vld [vmem:[%s9513_s1 + $0x1a8] sm:$0xff]   ;;  %v444_v17 = vrot.slane %v442_v29, 7  ;;  %v6321_v16 = vld [vmem:[%s9513_s1 + $0x190] sm:$0xff]  }
  0xb0   : > { %v458_v36 = vrot.slane %v456_v7, 7 }
  0xb1   : > { %v447_v45 = vor.u32 %v445_v19, %v444_v17 }
  0xb2   : > { %5392 = vmatpush3.bf16.msra.mxu0 %v6307_v14  ;;  %v459_v14 = vshll.u32 %v6844_v10, 16 }
  0xb3   : > { %5393 = vmatprep.subr.bf16.mxu0 %v6310_v1 }
  0xb4   : > { %v461_v1 = vor.u32 %v459_v14, %v458_v36 }
  0xb5   : > { %1338 = vmatmul.mubr.bf16.gmra.mxu1 %v6998_v4  ;;  %6002 = vmatmul.mubr.bf16.gmra.mxu0 %v6808_v55  ;;  %v506_v55 = vsel %vm6747_vm2, %v286_v32, %v447_v45 }
  0xb6   : > { %1345 = vmatprep.mubr.bf16.mxu1 %v505_v8  ;;  %6005 = vmatprep.mubr.bf16.mxu0 %v6953_v5  ;;  %v4774_v5 = vcombine.low %v6831_v3, %v6831_v3 }
  0xb7   : > { %5394 = vmatpush3.bf16.msra.mxu0 %v6311_v44  ;;  %v463_v44 = vshrl.u32 %v6861_v23, 16 }
  0xb8   : > { %5395 = vmatprep.subr.bf16.mxu0 %v6313_v30  ;;  %v289_v3 = vshrl.u32 %v4774_v5, 16  ;;  %v466_v30 = vshll.u32 %v6861_v23, 16 }
  0xbb   : > { %5396 = vmatpush3.bf16.msra.mxu0 %v6314_v53  ;;  %v470_v53 = vshrl.u32 %v6864_v24, 16 }
  0xbc   : > { %5397 = vmatprep.subr.bf16.mxu0 %v6317_v39  ;;  %v4777_v39 = vcombine.low %v6856_v15, %v6856_v15 }
  0xbd   : > { %1346 = vmatmul.mubr.bf16.gmra.mxu1 %v7017_v41  ;;  %6006 = vmatmul.mubr.bf16.gmra.mxu0 %v6969_v18  ;;  %v507_v18 = vsel %vm6747_vm2, %v289_v3, %v454_v2  ;;  %v472_v5 = vrot.slane %v470_v53, 7  ;;  %v6426_v3 = vld [vmem:[%s6581_s5 + $0xc] sm:$0xf] }
  0xbe   : > { %1353 = vmatprep.mubr.bf16.mxu1 %v506_v55  ;;  %6009 = vmatprep.mubr.bf16.mxu0 %v6982_v26  ;;  %v4775_v26 = vcombine.low %v6837_v6, %v6837_v6  ;;  %v4842_v2 = vcombine.low %v6426_v3, %v6426_v3 }
  0xbf   : > { %5398 = vmatpush3.bf16.msra.mxu0 %v6318_v52  ;;  %v6425_v52 = vld [vmem:[%s6581_s5 + $0x4] sm:$0xf] }
  0xc0   : > { %5399 = vmatprep.subr.bf16.mxu0 %v6320_v62  ;;  %v292_v6 = vshrl.u32 %v4775_v26, 16  ;;  %v4843_v62 = vcombine.low %v6425_v52, %v6425_v52  ;;  %v1565_v52 = vrot.slane %v403_v51, 1 }
  0xc2   : > { %v508_v17 = vsel %vm6747_vm2, %v292_v6, %v461_v1  ;;  %v9543_v1 = vmov 0 }
  0xc3   : > { %5400 = vmatpush3.bf16.msra.mxu0 %v6321_v16  ;;  %v1624_v16 = vshll.u32 %v4843_v62, 16  ;;  %v9544_v1 = vsel %vm7136_vm5, 4294967295, %v9543_v1 }
  0xc4   : > { %5401 = vmatprep.subr.bf16.mxu0 %v6324_v27  ;;  %v1620_v27 = vshll.u32 %v4842_v2, 16  ;;  %9545 = vst [vmem:[#allocation3_spill] sm:$0xff] %v9544_v1 }
  0xc5   : > { %1354 = vmatmul.mubr.bf16.gmra.mxu1 %v505_v8  ;;  %6010 = vmatmul.mubr.bf16.gmra.mxu0 %v6998_v4  ;;  %v4776_v4 = vcombine.low %v6850_v12, %v6850_v12  ;;  %v1626_v36 = vrot.slane %v1624_v16, 4 }
  0xc6   : > { %1361 = vmatprep.mubr.bf16.mxu1 %v507_v18  ;;  %6013 = vmatprep.mubr.bf16.mxu0 %v7017_v41  ;;  %v465_v41 = vrot.slane %v463_v44, 7 }
  0xc7   : > { %5402 = vmatpush3.bf16.msra.mxu0 %v6325_v42  ;;  %v295_v32 = vshrl.u32 %v4776_v4, 16  ;;  %v1622_v42 = vrot.slane %v1620_v27, 4 }
  0xc8   : > { %5403 = vmatprep.subr.bf16.mxu0 %v6329_v31  ;;  %v468_v45 = vor.u32 %v466_v30, %v465_v41  ;;  %v6428_v31 = vld [vmem:[%s6581_s5 + $0x1c] sm:$0xf] }
  0xc9   : > { %v4845_v6 = vcombine.low %v6428_v31, %v6428_v31  ;;  %v7146_v4 = vsel %vm7136_vm5, %v6885_v40, %v1622_v42 }
  0xca   : > { %v509_v12 = vsel %vm6747_vm2, %v295_v32, %v468_v45  ;;  %v6429_v45 = vld [vmem:[%s6581_s5 + $0x24] sm:$0xf] }
  0xcb   : > { %5404 = vmatpush3.bf16.msra.mxu0 %v6330_v13  ;;  %v1632_v41 = vshll.u32 %v4845_v6, 16 }
  0xcd   : > { %1362 = vmatmul.mubr.bf16.gmra.mxu1 %v506_v55  ;;  %6014 = vmatmul.mubr.bf16.gmra.mxu0 %v505_v8  ;;  %v473_v8 = vshll.u32 %v6864_v24, 16 }
  0xce   : > { %1369 = vmatprep.mubr.bf16.mxu1 %v508_v17  ;;  %6017 = vmatprep.mubr.bf16.mxu0 %v506_v55  ;;  %v298_v55 = vshrl.u32 %v4777_v39, 16  ;;  %v4846_v39 = vcombine.low %v6429_v45, %v6429_v45 }
  0xcf   : > { %v475_v48 = vor.u32 %v473_v8, %v472_v5  ;;  %v1634_v5 = vrot.slane %v1632_v41, 4 }
  0xd0   : > { %v1636_v40 = vshll.u32 %v4846_v39, 16 }
  0xd1   : > { %v510_v15 = vsel %vm6747_vm2, %v298_v55, %v475_v48  ;;  %v6430_v55 = vld [vmem:[%s6581_s5 + $0x2c] sm:$0xf] }
  0xd2   : > { %v4847_v48 = vcombine.low %v6430_v55, %v6430_v55 }
  0xd4   : > { %v1640_v62 = vshll.u32 %v4847_v48, 16 }
  0xd5   : > { %1370 = vmatmul.mubr.bf16.gmra.mxu1 %v507_v18  ;;  %6018 = vmatmul.mubr.bf16.gmra.mxu0 %v507_v18  ;;  %v6427_v18 = vld [vmem:[%s6581_s5 + $0x14] sm:$0xf] }
  0xd6   : > { %1377 = vmatprep.mubr.bf16.mxu1 %v509_v12  ;;  %6021 = vmatprep.mubr.bf16.mxu0 %v508_v17  ;;  %v4844_v26 = vcombine.low %v6427_v18, %v6427_v18  ;;  %v1566_v18 = vor.u32 %v1565_v52, %v400_v43  ;;  %v1642_v51 = vrot.slane %v1640_v62, 4 }
  0xd8   : > { %v1628_v13 = vshll.u32 %v4844_v26, 16  ;;  %v6432_v26 = vld [vmem:[%s6581_s5 + $0x3c] sm:$0xf]  ;;  %v7182_v39 = vsel %vm7136_vm5, %v1566_v18, %v1642_v51 }
  0xda   : > { %v1630_v32 = vrot.slane %v1628_v13, 4 }
  0xdd   : > { %1378 = vmatmul.mubr.bf16.gmra.mxu1 %v508_v17  ;;  %6022 = vmatmul.mubr.bf16.gmra.mxu0 %v509_v12  ;;  %v1703_v17 = vsel %vm7136_vm5, %v6877_v21, %v1626_v36  ;;  %v7154_v21 = vsel %vm7136_vm5, %v6893_v50, %v1630_v32  ;;  %v1638_v50 = vrot.slane %v1636_v40, 4  ;;  %v4849_v36 = vcombine.low %v6432_v26, %v6432_v26 }
  0xde   : > { %1385 = vmatprep.mubr.bf16.mxu1 %v510_v15  ;;  %6025 = vmatprep.mubr.bf16.mxu0 %v510_v15  ;;  %v6431_v15 = vld [vmem:[%s6581_s5 + $0x34] sm:$0xf]  ;;  %v1567_v32 = vrot.slane %v410_v11, 1 }
  0xdf   : > { %v4848_v16 = vcombine.low %v6431_v15, %v6431_v15  ;;  %v7176_v41 = vsel %vm7136_vm5, %v6931_v34, %v1638_v50  ;;  %v1648_v55 = vshll.u32 %v4849_v36, 16 }
  0xe0   : > { %v1568_v52 = vor.u32 %v1567_v32, %v407_v56  ;;  %v1571_v56 = vrot.slane %v424_v38, 1  ;;  %v1573_v32 = vrot.slane %v431_v58, 1 }
  0xe1   : > { %v1644_v45 = vshll.u32 %v4848_v16, 16 }
  0xe3   : > { %v1646_v62 = vrot.slane %v1644_v45, 4 }
  0xe5   : > { %1386 = vmatmul.mubr.bf16.gmra.mxu1 %v509_v12  ;;  %6026 = vmatmul.mubr.bf16.gmra.mxu0 %v509_v12  ;;  %v7159_v12 = vsel %vm7136_vm5, %v6923_v61, %v1634_v5  ;;  %v1569_v5 = vrot.slane %v417_v49, 1  ;;  %v6433_v49 = vld [vmem:[%s6581_s5 + $0x44] sm:$0xf]  ;;  %v7205_v59 = vsel %vm7136_vm5, %v1568_v52, %v1646_v62 }
  0xe6   : > { %1942 = vmatprep.mubr.bf16.mxu0 %v1703_v17  ;;  %6045 = vmatprep.mubr.bf16.mxu1 %v7146_v4 }
  0xe7   : > { %v1570_v16 = vor.u32 %v1569_v5, %v414_v0  ;;  %v1572_v5 = vor.u32 %v1571_v56, %v421_v33  ;;  %v1575_v33 = vrot.slane %v438_v46, 1 }
  0xed   : > { %v5133_v3 = vpop.f32.mrf.mxu0  ;;  %v5951_v2 = vpop.f32.mrf.mxu1  ;;  %1943 = vmatmul.mubr.bf16.vlgmr.msra.gmra.mxu0 %v7146_v4  ;;  %6046 = vmatmul.mubr.bf16.vlgmr.msra.gmra.mxu1 %v7154_v21 }
  0xee   : > { %1950 = vmatprep.mubr.bf16.mxu0 %v7146_v4  ;;  %6049 = vmatprep.mubr.bf16.mxu1 %v7159_v12 }
  0xef   : > { %v5134_v61 = vpop.f32.mrf.mxu0  ;;  %v962_v27 = vpop.f32.mrf.mxu1 }
  0xf0   : > { %v5135_v42 = vadd.f32 %v5134_v61, %v5133_v3  ;;  %v4850_v3 = vcombine.low %v6433_v49, %v6433_v49  ;;  %v6434_v61 = vld [vmem:[%s6581_s5 + $0x4c] sm:$0xf]  ;;  %v6436_v49 = vld [vmem:[%s6581_s5 + $0x5c] sm:$0xf] }
  0xf1   : > { %v5136_v31 = vpop.f32.mrf.mxu0  ;;  %v5952_v6 = vpop.f32.mrf.mxu1 }
  0xf2   : > { %v7171_v13 = vadd.f32 %v5135_v42, %v962_v27  ;;  %v4851_v27 = vcombine.low %v6434_v61, %v6434_v61  ;;  %v1652_v42 = vshll.u32 %v4850_v3, 16 }
  0xf3   : > { %v5137_v47 = vpop.f32.mrf.mxu0  ;;  %v965_v43 = vpop.f32.mrf.mxu1 }
  0xf4   : > { %v5138_v48 = vadd.f32 %v5137_v47, %v5136_v31  ;;  %v1654_v58 = vrot.slane %v1652_v42, 4 }
  0xf5   : > { %v5139_v40 = vpop.f32.mrf.mxu0  ;;  %v7186_v34 = vpop.f32.mrf.mxu1  ;;  %1951 = vmatmul.mubr.bf16.gmra.mxu0 %v1703_v17  ;;  %6050 = vmatmul.mubr.bf16.gmra.mxu1 %v7176_v41  ;;  %v1650_v17 = vrot.slane %v1648_v55, 4  ;;  %v6435_v55 = vld [vmem:[%s6581_s5 + $0x54] sm:$0xf] }
  0xf6   : > { %v7189_v11 = vadd.f32 %v5138_v48, %v965_v43  ;;  %1958 = vmatprep.mubr.bf16.mxu0 %v7154_v21  ;;  %6053 = vmatprep.mubr.bf16.mxu1 %v7182_v39  ;;  %v4852_v48 = vcombine.low %v6435_v55, %v6435_v55  ;;  %v7237_v20 = vsel %vm7136_vm5, %v1572_v5, %v1654_v58  ;;  %v6438_v58 = vld [vmem:[%s6581_s5 + $0x6c] sm:$0xf] }
  0xf7   : > { %v5140_v50 = vpop.f32.mrf.mxu0  ;;  %v978_v15 = vpop.f32.mrf.mxu1  ;;  %v7211_v31 = vsel %vm7136_vm5, %v1570_v16, %v1650_v17 }
  0xf8   : > { %v5141_v18 = vadd.f32 %v5140_v50, %v5139_v40  ;;  %v1660_v61 = vshll.u32 %v4852_v48, 16 }
  0xf9   : > { %v5142_v51 = vpop.f32.mrf.mxu0  ;;  %v7199_v26 = vpop.f32.mrf.mxu1 }
  0xfa   : > { %v7201_v36 = vadd.f32 %v5951_v2, %v5141_v18  ;;  %v1656_v2 = vshll.u32 %v4851_v27, 16 }
  0xfb   : > { %v5143_v63 = vpop.f32.mrf.mxu0  ;;  %v981_v0 = vpop.f32.mrf.mxu1 }
  0xfc   : > { %v5144_v45 = vadd.f32 %v5143_v63, %v5142_v51  ;;  %v1658_v62 = vrot.slane %v1656_v2, 4  ;;  %v1576_v63 = vor.u32 %v1575_v33, %v435_v54  ;;  %v1579_v54 = vrot.slane %v452_v35, 1 }
  0xfd   : > { %v5145_v47 = vpop.f32.mrf.mxu0  ;;  %v7215_v43 = vpop.f32.mrf.mxu1  ;;  %1959 = vmatmul.mubr.bf16.gmra.mxu0 %v7146_v4  ;;  %6054 = vmatmul.mubr.bf16.gmra.mxu1 %v7205_v59  ;;  %v1574_v4 = vor.u32 %v1573_v32, %v428_v28  ;;  %v6437_v32 = vld [vmem:[%s6581_s5 + $0x64] sm:$0xf] }
  0xfe   : > { %v7219_v38 = vadd.f32 %v5952_v6, %v5144_v45  ;;  %1966 = vmatprep.mubr.bf16.mxu0 %v7159_v12  ;;  %6057 = vmatprep.mubr.bf16.mxu1 %v7211_v31  ;;  %v4853_v6 = vcombine.low %v6436_v49, %v6436_v49  ;;  %v4854_v2 = vcombine.low %v6437_v32, %v6437_v32 }
  0xff   : > { %v5146_v40 = vpop.f32.mrf.mxu0  ;;  %v7226_v52 = vpop.f32.mrf.mxu1  ;;  %v7245_v27 = vsel %vm7136_vm5, %v1574_v4, %v1658_v62 }
 0x100   : > { %v5147_v3 = vadd.f32 %v5146_v40, %v5145_v47  ;;  %v1664_v18 = vshll.u32 %v4853_v6, 16  ;;  %v1668_v62 = vshll.u32 %v4854_v2, 16 }
 0x101   : > { %v5148_v50 = vpop.f32.mrf.mxu0  ;;  %v7231_v16 = vpop.f32.mrf.mxu1 }
 0x102   : > { %v7233_v17 = vadd.f32 %v5147_v3, %v978_v15  ;;  %v1577_v15 = vrot.slane %v445_v19, 1  ;;  %v1662_v19 = vrot.slane %v1660_v61, 4  ;;  %v1666_v5 = vrot.slane %v1664_v18, 4 }
 0x103   : > { %v5149_v25 = vpop.f32.mrf.mxu0  ;;  %v7241_v28 = vpop.f32.mrf.mxu1  ;;  %v1670_v61 = vrot.slane %v1668_v62, 4 }
 0x104   : > { %v5150_v51 = vadd.f32 %v5149_v25, %v5148_v50  ;;  %v7272_v57 = vsel %vm7136_vm5, %v1576_v63, %v1662_v19  ;;  %v6439_v25 = vld [vmem:[%s6581_s5 + $0x74] sm:$0xf]  ;;  %v6440_v63 = vld [vmem:[%s6581_s5 + $0x7c] sm:$0xf] }
 0x105   : > { %v5151_v56 = vpop.f32.mrf.mxu0  ;;  %v7249_v42 = vpop.f32.mrf.mxu1  ;;  %1967 = vmatmul.mubr.bf16.gmra.mxu0 %v7154_v21  ;;  %6058 = vmatmul.mubr.bf16.gmra.mxu1 %v7237_v20  ;;  %v1578_v21 = vor.u32 %v1577_v15, %v442_v29  ;;  %v4856_v15 = vcombine.low %v6439_v25, %v6439_v25 }
 0x106   : > { %v7253_v46 = vadd.f32 %v5150_v51, %v981_v0  ;;  %1974 = vmatprep.mubr.bf16.mxu0 %v7176_v41  ;;  %6061 = vmatprep.mubr.bf16.mxu1 %v7245_v27  ;;  %v4855_v0 = vcombine.low %v6438_v58, %v6438_v58  ;;  %v1585_v58 = vrot.slane %v473_v8, 1 }
 0x107   : > { %v5152_v45 = vpop.f32.mrf.mxu0  ;;  %v7260_v47 = vpop.f32.mrf.mxu1  ;;  %v7280_v49 = vsel %vm7136_vm5, %v1578_v21, %v1666_v5  ;;  %v1676_v21 = vshll.u32 %v4856_v15, 16 }
 0x108   : > { %v5153_v55 = vadd.f32 %v5152_v45, %v5151_v56  ;;  %v1672_v6 = vshll.u32 %v4855_v0, 16 }
 0x109   : > { %v5154_v48 = vpop.f32.mrf.mxu0  ;;  %v7265_v40 = vpop.f32.mrf.mxu1  ;;  %v1678_v8 = vrot.slane %v1676_v21, 4 }
 0x10a   : > { %v7268_v4 = vadd.f32 %v7186_v34, %v5153_v55  ;;  %v1581_v34 = vrot.slane %v459_v14, 1  ;;  %v1580_v14 = vor.u32 %v1579_v54, %v449_v37  ;;  %v1674_v56 = vrot.slane %v1672_v6, 4 }
 0x10b   : > { %v5155_v60 = vpop.f32.mrf.mxu0  ;;  %v7276_v29 = vpop.f32.mrf.mxu1  ;;  %v1583_v37 = vrot.slane %v466_v30, 1 }
 0x10c   : > { %v5156_v3 = vadd.f32 %v5155_v60, %v5154_v48  ;;  %v7308_v9 = vsel %vm7136_vm5, %v1580_v14, %v1670_v61 }
 0x10d   : > { %v5157_v50 = vpop.f32.mrf.mxu0  ;;  %v7284_v33 = vpop.f32.mrf.mxu1  ;;  %1975 = vmatmul.mubr.bf16.gmra.mxu0 %v7159_v12  ;;  %6062 = vmatmul.mubr.bf16.gmra.mxu1 %v7272_v57  ;;  %v1582_v12 = vor.u32 %v1581_v34, %v456_v7  ;;  %v1584_v54 = vor.u32 %v1583_v37, %v463_v44  ;;  %v1586_v34 = vor.u32 %v1585_v58, %v470_v53 }
 0x10e   : > { %v7289_v35 = vadd.f32 %v7199_v26, %v5156_v3  ;;  %1982 = vmatprep.mubr.bf16.mxu0 %v7182_v39  ;;  %6065 = vmatprep.mubr.bf16.mxu1 %v7280_v49  ;;  %v4857_v26 = vcombine.low %v6440_v63, %v6440_v63 }
 0x10f   : > { %v5158_v18 = vpop.f32.mrf.mxu0  ;;  %v7296_v51 = vpop.f32.mrf.mxu1  ;;  %v7316_v5 = vsel %vm7136_vm5, %v1582_v12, %v1674_v56  ;;  %v7342_v14 = vsel %vm7136_vm5, %v1584_v54, %v1678_v8 }
 0x110   : > { %v5159_v19 = vadd.f32 %v5158_v18, %v5157_v50 }
 0x111   : > { %v5160_v32 = vpop.f32.mrf.mxu0  ;;  %v7301_v2 = vpop.f32.mrf.mxu1 }
 0x112   : > { %v7304_v45 = vadd.f32 %v5159_v19, %v7226_v52  ;;  %v1680_v52 = vshll.u32 %v4857_v26, 16 }
 0x113   : > { %v5161_v10 = vpop.f32.mrf.mxu0  ;;  %v7312_v7 = vpop.f32.mrf.mxu1 }
 0x114   : > { %v5162_v0 = vadd.f32 %v5161_v10, %v5160_v32 }
 0x115   : > { %v5163_v55 = vpop.f32.mrf.mxu0  ;;  %v7320_v48 = vpop.f32.mrf.mxu1  ;;  %1983 = vmatmul.mubr.bf16.gmra.mxu0 %v7176_v41  ;;  %6066 = vmatmul.mubr.bf16.gmra.mxu1 %v7308_v9  ;;  %v1682_v41 = vrot.slane %v1680_v52, 4 }
 0x116   : > { %v7325_v30 = vadd.f32 %v5162_v0, %v7241_v28  ;;  %1990 = vmatprep.mubr.bf16.mxu0 %v7205_v59  ;;  %6069 = vmatprep.mubr.bf16.mxu1 %v7316_v5 }
 0x117   : > { %v5164_v62 = vpop.f32.mrf.mxu0  ;;  %v7331_v60 = vpop.f32.mrf.mxu1  ;;  %v7348_v61 = vsel %vm7136_vm5, %v1586_v34, %v1682_v41 }
 0x118   : > { %v5165_v6 = vadd.f32 %v5164_v62, %v5163_v55 }
 0x119   : > { %v5166_v3 = vpop.f32.mrf.mxu0  ;;  %v7335_v50 = vpop.f32.mrf.mxu1 }
 0x11a   : > { %v7338_v28 = vadd.f32 %v7215_v43, %v5165_v6 }
 0x11b   : > { %v5167_v23 = vpop.f32.mrf.mxu0  ;;  %v7344_v44 = vpop.f32.mrf.mxu1 }
 0x11c   : > { %v5168_v24 = vadd.f32 %v5167_v23, %v5166_v3 }
 0x11d   : > { %v5169_v53 = vpop.f32.mrf.mxu0  ;;  %v7350_v25 = vpop.f32.mrf.mxu1  ;;  %1991 = vmatmul.mubr.bf16.gmra.mxu0 %v7182_v39  ;;  %6070 = vmatmul.mubr.bf16.gmra.mxu1 %v7342_v14 }
 0x11e   : > { %v7355_v43 = vadd.f32 %v7231_v16, %v5168_v24  ;;  %1998 = vmatprep.mubr.bf16.mxu0 %v7211_v31  ;;  %6073 = vmatprep.mubr.bf16.mxu1 %v7348_v61 }
 0x11f   : > { %v5170_v15 = vpop.f32.mrf.mxu0  ;;  %v7359_v18 = vpop.f32.mrf.mxu1 }
 0x120   : > { %v5171_v12 = vadd.f32 %v5170_v15, %v5169_v53 }
 0x121   : > { %v5172_v56 = vpop.f32.mrf.mxu0  ;;  %v7361_v63 = vpop.f32.mrf.mxu1 }
 0x122   : > { %v7364_v26 = vadd.f32 %v5171_v12, %v7260_v47 }
 0x123   : > { %v5173_v39 = vpop.f32.mrf.mxu0  ;;  %v7366_v19 = vpop.f32.mrf.mxu1 }
 0x124   : > { %v5174_v32 = vadd.f32 %v5173_v39, %v5172_v56 }
 0x125   : > { %v5175_v16 = vpop.f32.mrf.mxu0  ;;  %v7368_v37 = vpop.f32.mrf.mxu1  ;;  %1999 = vmatmul.mubr.bf16.gmra.mxu0 %v7205_v59  ;;  %6074 = vmatmul.mubr.bf16.gmra.mxu1 %v7342_v14 }
 0x126   : > { %v7373_v21 = vadd.f32 %v5174_v32, %v7276_v29  ;;  %2006 = vmatprep.mubr.bf16.mxu0 %v7237_v20 }
 0x127   : > { %v5176_v10 = vpop.f32.mrf.mxu0  ;;  %v7376_v58 = vpop.f32.mrf.mxu1 }
 0x128   : > { %v5177_v47 = vadd.f32 %v5176_v10, %v5175_v16 }
 0x129   : > { %v5178_v52 = vpop.f32.mrf.mxu0  ;;  %v7378_v0 = vpop.f32.mrf.mxu1 }
 0x12a   : > { %v7381_v55 = vadd.f32 %v7249_v42, %v5177_v47 }
 0x12b   : > { %v5179_v54 = vpop.f32.mrf.mxu0  ;;  %v7383_v8 = vpop.f32.mrf.mxu1 }
 0x12c   : > { %v5180_v59 = vadd.f32 %v5179_v54, %v5178_v52 }
 0x12d   : > { %v5181_v62 = vpop.f32.mrf.mxu0  ;;  %v5269_v34 = vpop.f32.mrf.mxu1  ;;  %2007 = vmatmul.mubr.bf16.gmra.mxu0 %v7211_v31 }
 0x12e   : > { %v7387_v29 = vadd.f32 %v7265_v40, %v5180_v59  ;;  %2014 = vmatprep.mubr.bf16.mxu0 %v7245_v27 }
 0x12f   : > { %v5182_v41 = vpop.f32.mrf.mxu0  ;;  %v5270_v6 = vpop.f32.mrf.mxu1 }
 0x130   : > { %v5183_v3 = vadd.f32 %v5182_v41, %v5181_v62  ;;  %v5271_v23 = vadd.f32 %v5270_v6, %v5269_v34 }
 0x131   : > { %v5184_v24 = vpop.f32.mrf.mxu0  ;;  %v5272_v42 = vpop.f32.mrf.mxu1 }
 0x132   : > { %v7391_v53 = vadd.f32 %v5183_v3, %v7296_v51  ;;  %v7394_v15 = vadd.f32 %v5271_v23, %v7171_v13 }
 0x133   : > { %v5185_v12 = vpop.f32.mrf.mxu0  ;;  %v5273_v56 = vpop.f32.mrf.mxu1 }
 0x134   : > { %v7396_v31 = vadd.f32 %v5185_v12, %v5184_v24  ;;  %v5274_v40 = vadd.f32 %v5273_v56, %v5272_v42 }
 0x135   : > { %v5187_v39 = vpop.f32.mrf.mxu0  ;;  %v5275_v32 = vpop.f32.mrf.mxu1  ;;  %2015 = vmatmul.mubr.bf16.gmra.mxu0 %v7237_v20 }
 0x136   : > { %2022 = vmatprep.mubr.bf16.mxu0 %v7272_v57  ;;  %v7401_v16 = vadd.f32 %v5274_v40, %v7189_v11 }
 0x137   : > { %v5188_v10 = vpop.f32.mrf.mxu0  ;;  %v5276_v51 = vpop.f32.mrf.mxu1 }
 0x138   : > { %v5189_v47 = vadd.f32 %v5188_v10, %v5187_v39  ;;  %v5277_v52 = vadd.f32 %v5276_v51, %v5275_v32 }
 0x139   : > { %v5190_v13 = vpop.f32.mrf.mxu0  ;;  %v5278_v54 = vpop.f32.mrf.mxu1 }
 0x13a   : > { %v7404_v59 = vadd.f32 %v7284_v33, %v5189_v47  ;;  %v7407_v62 = vadd.f32 %v5277_v52, %v7201_v36 }
 0x13b   : > { %v5191_v34 = vpop.f32.mrf.mxu0  ;;  %v5279_v41 = vpop.f32.mrf.mxu1 }
 0x13c   : > { %v5192_v20 = vadd.f32 %v5191_v34, %v5190_v13  ;;  %v5280_v6 = vadd.f32 %v5279_v41, %v5278_v54 }
 0x13d   : > { %v5193_v3 = vpop.f32.mrf.mxu0  ;;  %v5281_v23 = vpop.f32.mrf.mxu1  ;;  %2023 = vmatmul.mubr.bf16.gmra.mxu0 %v7245_v27 }
 0x13e   : > { %v7411_v11 = vadd.f32 %v7301_v2, %v5192_v20  ;;  %2030 = vmatprep.mubr.bf16.mxu0 %v7280_v49  ;;  %v7415_v24 = vadd.f32 %v5280_v6, %v7219_v38 }
 0x13f   : > { %v5194_v33 = vpop.f32.mrf.mxu0  ;;  %v5282_v42 = vpop.f32.mrf.mxu1 }
 0x140   : > { %v5195_v36 = vadd.f32 %v5194_v33, %v5193_v3  ;;  %v5283_v12 = vadd.f32 %v5282_v42, %v5281_v23 }
 0x141   : > { %v5196_v56 = vpop.f32.mrf.mxu0  ;;  %v5284_v40 = vpop.f32.mrf.mxu1 }
 0x142   : > { %v7418_v39 = vadd.f32 %v5195_v36, %v7331_v60  ;;  %v7421_v32 = vadd.f32 %v5283_v12, %v7233_v17 }
 0x143   : > { %v5197_v27 = vpop.f32.mrf.mxu0  ;;  %v5285_v2 = vpop.f32.mrf.mxu1 }
 0x144   : > { %v7423_v10 = vadd.f32 %v5197_v27, %v5196_v56  ;;  %v5286_v51 = vadd.f32 %v5285_v2, %v5284_v40 }
 0x145   : > { %v5199_v47 = vpop.f32.mrf.mxu0  ;;  %v5287_v38 = vpop.f32.mrf.mxu1  ;;  %2031 = vmatmul.mubr.bf16.gmra.mxu0 %v7272_v57 }
 0x146   : > { %2038 = vmatprep.mubr.bf16.mxu0 %v7308_v9  ;;  %v7428_v52 = vadd.f32 %v5286_v51, %v7253_v46 }
 0x147   : > { %v5200_v13 = vpop.f32.mrf.mxu0  ;;  %v5288_v60 = vpop.f32.mrf.mxu1 }
 0x148   : > { %v5201_v54 = vadd.f32 %v5200_v13, %v5199_v47  ;;  %v5289_v34 = vadd.f32 %v5288_v60, %v5287_v38 }
 0x149   : > { %v5202_v17 = vpop.f32.mrf.mxu0  ;;  %v5290_v41 = vpop.f32.mrf.mxu1 }
 0x14a   : > { %v7431_v20 = vadd.f32 %v7320_v48, %v5201_v54  ;;  %v7434_v6 = vadd.f32 %v5289_v34, %v7268_v4 }
 0x14b   : > { %v5203_v3 = vpop.f32.mrf.mxu0  ;;  %v5291_v23 = vpop.f32.mrf.mxu1 }
 0x14c   : > { %v5204_v57 = vadd.f32 %v5203_v3, %v5202_v17  ;;  %v5292_v33 = vadd.f32 %v5291_v23, %v5290_v41 }
 0x14d   : > { %v5205_v42 = vpop.f32.mrf.mxu0  ;;  %v5293_v36 = vpop.f32.mrf.mxu1  ;;  %2039 = vmatmul.mubr.bf16.gmra.mxu0 %v7280_v49 }
 0x14e   : > { %v7438_v46 = vadd.f32 %v7335_v50, %v5204_v57  ;;  %2046 = vmatprep.mubr.bf16.mxu0 %v7316_v5  ;;  %v7442_v12 = vadd.f32 %v5292_v33, %v7289_v35 }
 0x14f   : > { %v5206_v48 = vpop.f32.mrf.mxu0  ;;  %v5294_v56 = vpop.f32.mrf.mxu1 }
 0x150   : > { %v5207_v4 = vadd.f32 %v5206_v48, %v5205_v42  ;;  %v5295_v40 = vadd.f32 %v5294_v56, %v5293_v36 }
 0x151   : > { %v7444_v27 = vpop.f32.mrf.mxu0  ;;  %v5296_v2 = vpop.f32.mrf.mxu1 }
 0x152   : > { %v7447_v51 = vadd.f32 %v5207_v4, %v7359_v18  ;;  %v7450_v49 = vadd.f32 %v5295_v40, %v7304_v45 }
 0x153   : > { %v7452_v50 = vpop.f32.mrf.mxu0  ;;  %v5297_v47 = vpop.f32.mrf.mxu1 }
 0x154   : > { %v5298_v38 = vadd.f32 %v5297_v47, %v5296_v2 }
 0x155   : > { %v5211_v13 = vpop.f32.mrf.mxu0  ;;  %v5299_v35 = vpop.f32.mrf.mxu1  ;;  %2047 = vmatmul.mubr.bf16.gmra.mxu0 %v7308_v9 }
 0x156   : > { %2054 = vmatprep.mubr.bf16.mxu0 %v7342_v14  ;;  %v7457_v60 = vadd.f32 %v5298_v38, %v7325_v30 }
 0x157   : > { %v5212_v54 = vpop.f32.mrf.mxu0  ;;  %v5300_v34 = vpop.f32.mrf.mxu1 }
 0x158   : > { %v5213_v18 = vadd.f32 %v5212_v54, %v5211_v13  ;;  %v5301_v17 = vadd.f32 %v5300_v34, %v5299_v35 }
 0x159   : > { %v5214_v41 = vpop.f32.mrf.mxu0  ;;  %v5302_v45 = vpop.f32.mrf.mxu1 }
 0x15a   : > { %v7460_v3 = vadd.f32 %v7350_v25, %v5213_v18  ;;  %v7463_v23 = vadd.f32 %v5301_v17, %v7338_v28 }
 0x15b   : > { %v5215_v57 = vpop.f32.mrf.mxu0  ;;  %v5303_v33 = vpop.f32.mrf.mxu1 }
 0x15c   : > { %v5216_v9 = vadd.f32 %v5215_v57, %v5214_v41  ;;  %v5304_v42 = vadd.f32 %v5303_v33, %v5302_v45 }
 0x15d   : > { %v5217_v36 = vpop.f32.mrf.mxu0  ;;  %v5305_v48 = vpop.f32.mrf.mxu1  ;;  %2055 = vmatmul.mubr.bf16.gmra.mxu0 %v7316_v5 }
 0x15e   : > { %v7467_v30 = vadd.f32 %v7361_v63, %v5216_v9  ;;  %2062 = vmatprep.mubr.bf16.mxu0 %v7348_v61  ;;  %v7471_v56 = vadd.f32 %v5304_v42, %v7355_v43 }
 0x15f   : > { %v5218_v25 = vpop.f32.mrf.mxu0  ;;  %v5306_v4 = vpop.f32.mrf.mxu1 }
 0x160   : > { %v5219_v28 = vadd.f32 %v5218_v25, %v5217_v36  ;;  %v5307_v40 = vadd.f32 %v5306_v4, %v5305_v48 }
 0x161   : > { %v7473_v2 = vpop.f32.mrf.mxu0  ;;  %v5308_v47 = vpop.f32.mrf.mxu1 }
 0x162   : > { %v7476_v38 = vadd.f32 %v5219_v28, %v7376_v58  ;;  %v7479_v5 = vadd.f32 %v5307_v40, %v7364_v26 }
 0x163   : > { %v7481_v63 = vpop.f32.mrf.mxu0  ;;  %v5309_v13 = vpop.f32.mrf.mxu1 }
 0x164   : > { %v5310_v61 = vadd.f32 %v5309_v13, %v5308_v47 }
 0x165   : > { %v5223_v35 = vpop.f32.mrf.mxu0  ;;  %v5311_v43 = vpop.f32.mrf.mxu1  ;;  %2063 = vmatmul.mubr.bf16.gmra.mxu0 %v7342_v14 }
 0x166   : > { %v7485_v54 = vadd.f32 %v5310_v61, %v7373_v21 }
 0x167   : > { %v5224_v34 = vpop.f32.mrf.mxu0  ;;  %v5312_v18 = vpop.f32.mrf.mxu1 }
 0x168   : > { %v7487_v17 = vadd.f32 %v5224_v34, %v5223_v35  ;;  %v5313_v58 = vadd.f32 %v5312_v18, %v5311_v43 }
 0x169   : > { %v7489_v41 = vpop.f32.mrf.mxu0  ;;  %v5314_v26 = vpop.f32.mrf.mxu1 }
 0x16a   : > { %v1324_v45 = vadd.f32 %v5313_v58, %v7381_v55 }
 0x16b   : > { %v7492_v57 = vpop.f32.mrf.mxu0  ;;  %v5315_v33 = vpop.f32.mrf.mxu1 }
 0x16c   : > { %v5316_v9 = vadd.f32 %v5315_v33, %v5314_v26 }
 0x16d   : > { %v5317_v42 = vpop.f32.mrf.mxu1  ;;  %v5999_v36 = vpop.f32.mrf.mxu0 }
 0x16e   : > { %v7495_v14 = vadd.f32 %v5999_v36, %v7407_v62  ;;  %v1327_v21 = vadd.f32 %v5316_v9, %v7387_v29  ;;  %v1030_v62 = vadd.f32 %v7396_v31, %v7312_v7 }
 0x16f   : > { %v5318_v48 = vpop.f32.mrf.mxu1  ;;  %v1428_v25 = vpop.f32.mrf.mxu0 }
 0x170   : > { %v5319_v4 = vadd.f32 %v5318_v48, %v5317_v42  ;;  %v7499_v28 = vadd.f32 %v1428_v25, %v7394_v15 }
 0x171   : > { %v5320_v40 = vpop.f32.mrf.mxu1  ;;  %v6000_v47 = vpop.f32.mrf.mxu0 }
 0x172   : > { %v7502_v55 = vadd.f32 %v6000_v47, %v7415_v24  ;;  %v1332_v13 = vadd.f32 %v5319_v4, %v7391_v53 }
 0x173   : > { %v5321_v61 = vpop.f32.mrf.mxu1  ;;  %v7505_v35 = vpop.f32.mrf.mxu0 }
 0x174   : > { %v5322_v29 = vadd.f32 %v5321_v61, %v5320_v40 }
 0x175   : > { %v5323_v43 = vpop.f32.mrf.mxu1  ;;  %v6003_v34 = vpop.f32.mrf.mxu0 }
 0x176   : > { %v7510_v18 = vadd.f32 %v6003_v34, %v7434_v6  ;;  %v7512_v15 = vadd.f32 %v5322_v29, %v1030_v62 }
 0x177   : > { %v5324_v58 = vpop.f32.mrf.mxu1  ;;  %v1444_v26 = vpop.f32.mrf.mxu0 }
 0x178   : > { %9546 = vst [vmem:[#allocation4_spill] sm:$0xff] %v7512_v15  ;;  %v5325_v24 = vadd.f32 %v5324_v58, %v5323_v43  ;;  %v7515_v33 = vadd.f32 %v1444_v26, %v7421_v32 }
 0x179   : > { %v5326_v53 = vpop.f32.mrf.mxu1  ;;  %v6004_v9 = vpop.f32.mrf.mxu0 }
 0x17a   : > { %v7518_v42 = vadd.f32 %v6004_v9, %v7442_v12  ;;  %v1340_v7 = vadd.f32 %v5325_v24, %v7404_v59 }
 0x17b   : > { %v5327_v31 = vpop.f32.mrf.mxu1  ;;  %v7521_v36 = vpop.f32.mrf.mxu0 }
 0x17c   : > { %v5328_v6 = vadd.f32 %v5327_v31, %v5326_v53 }
 0x17d   : > { %v5329_v48 = vpop.f32.mrf.mxu1  ;;  %v6007_v25 = vpop.f32.mrf.mxu0 }
 0x17e   : > { %v7524_v4 = vadd.f32 %v6007_v25, %v7463_v23  ;;  %v1343_v40 = vadd.f32 %v5328_v6, %v7411_v11  ;;  %v1046_v23 = vadd.f32 %v7423_v10, %v7344_v44 }
 0x17f   : > { %v5330_v32 = vpop.f32.mrf.mxu1  ;;  %v1460_v47 = vpop.f32.mrf.mxu0 }
 0x180   : > { %v5331_v61 = vadd.f32 %v5330_v32, %v5329_v48  ;;  %v7528_v62 = vadd.f32 %v1460_v47, %v7450_v49 }
 0x181   : > { %v5332_v12 = vpop.f32.mrf.mxu1  ;;  %v6008_v29 = vpop.f32.mrf.mxu0 }
 0x182   : > { %v7531_v59 = vadd.f32 %v6008_v29, %v7471_v56  ;;  %v1348_v43 = vadd.f32 %v5331_v61, %v7418_v39 }
 0x183   : > { %v5333_v34 = vpop.f32.mrf.mxu1  ;;  %v7534_v58 = vpop.f32.mrf.mxu0 }
 0x184   : > { %v5334_v11 = vadd.f32 %v5333_v34, %v5332_v12 }
 0x185   : > { %v5335_v26 = vpop.f32.mrf.mxu1  ;;  %v6011_v24 = vpop.f32.mrf.mxu0 }
 0x186   : > { %v7538_v53 = vadd.f32 %v6011_v24, %v1324_v45  ;;  %v7540_v49 = vadd.f32 %v5334_v11, %v1046_v23 }
 0x187   : > { %v5336_v9 = vpop.f32.mrf.mxu1  ;;  %v1476_v31 = vpop.f32.mrf.mxu0 }
 0x188   : > { %9547 = vst [vmem:[#allocation5_spill] sm:$0xff] %v7538_v53  ;;  %9548 = vst [vmem:[#allocation6_spill] sm:$0xff] %v7540_v49  ;;  %v5337_v6 = vadd.f32 %v5336_v9, %v5335_v26  ;;  %v7543_v56 = vadd.f32 %v1476_v31, %v7479_v5  ;;  %v5210_v5 = vadd.f32 %v7452_v50, %v7444_v27 }
 0x189   : > { %v5338_v39 = vpop.f32.mrf.mxu1  ;;  %v6012_v48 = vpop.f32.mrf.mxu0 }
 0x18a   : > { %v7545_v25 = vadd.f32 %v6012_v48, %v1327_v21  ;;  %v1356_v32 = vadd.f32 %v5337_v6, %v7431_v20 }
 0x18b   : > { %v5339_v44 = vpop.f32.mrf.mxu1  ;;  %v7548_v10 = vpop.f32.mrf.mxu0 }
 0x18c   : > { %9549 = vst [vmem:[#allocation7_spill] sm:$0xff] %v7545_v25  ;;  %v5340_v47 = vadd.f32 %v5339_v44, %v5338_v39 }
 0x18d   : > { %v5341_v45 = vpop.f32.mrf.mxu1  ;;  %v6015_v61 = vpop.f32.mrf.mxu0 }
 0x18e   : > { %v7550_v12 = vadd.f32 %v6015_v61, %v1340_v7  ;;  %v1359_v29 = vadd.f32 %v5340_v47, %v7438_v46  ;;  %v1062_v7 = vadd.f32 %v5210_v5, %v7366_v19 }
 0x18f   : > { %v5342_v34 = vpop.f32.mrf.mxu1  ;;  %v1492_v23 = vpop.f32.mrf.mxu0 }
 0x190   : > { %9550 = vst [vmem:[#allocation8_spill] sm:$0xff] %v7550_v12  ;;  %v5343_v11 = vadd.f32 %v5342_v34, %v5341_v45  ;;  %v7555_v21 = vadd.f32 %v1492_v23, %v1332_v13 }
 0x191   : > { %v5344_v26 = vpop.f32.mrf.mxu1  ;;  %v6016_v20 = vpop.f32.mrf.mxu0 }
 0x192   : > { %9551 = vst [vmem:[#allocation9_spill] sm:$0xff] %v7555_v21  ;;  %v7557_v24 = vadd.f32 %v6016_v20, %v1343_v40  ;;  %v1364_v9 = vadd.f32 %v5343_v11, %v7447_v51 }
 0x193   : > { %v5345_v31 = vpop.f32.mrf.mxu1  ;;  %v7560_v6 = vpop.f32.mrf.mxu0 }
 0x194   : > { %9552 = vst [vmem:[#allocation10_spill] sm:$0xff] %v7557_v24  ;;  %9553 = vst [vmem:[#allocation11_spill] sm:$0xff] %v7560_v6  ;;  %v5346_v46 = vadd.f32 %v5345_v31, %v5344_v26  ;;  %v1432_v24 = vadd.f32 %v7505_v35, %v7401_v16 }
 0x195   : > { %v5347_v39 = vpop.f32.mrf.mxu1  ;;  %v6019_v48 = vpop.f32.mrf.mxu0 }
 0x196   : > { %v7563_v44 = vadd.f32 %v6019_v48, %v1356_v32  ;;  %v7565_v27 = vadd.f32 %v5346_v46, %v1062_v7 }
 0x197   : > { %v5348_v50 = vpop.f32.mrf.mxu1  ;;  %v1508_v13 = vpop.f32.mrf.mxu0 }
 0x198   : > { %9554 = vst [vmem:[#allocation12_spill] sm:$0xff] %v7563_v44  ;;  %9555 = vst [vmem:[#allocation13_spill] sm:$0xff] %v7565_v27  ;;  %v5349_v47 = vadd.f32 %v5348_v50, %v5347_v39  ;;  %v7567_v45 = vadd.f32 %v1508_v13, %v1348_v43  ;;  %v5222_v43 = vadd.f32 %v7481_v63, %v7473_v2 }
 0x199   : > { %v5350_v40 = vpop.f32.mrf.mxu1  ;;  %v6020_v61 = vpop.f32.mrf.mxu0 }
 0x19a   : > { %9556 = vst [vmem:[#allocation14_spill] sm:$0xff] %v7567_v45  ;;  %v7569_v51 = vadd.f32 %v6020_v61, %v1359_v29  ;;  %v1372_v34 = vadd.f32 %v5349_v47, %v7460_v3 }
 0x19b   : > { %v5351_v23 = vpop.f32.mrf.mxu1  ;;  %v7572_v19 = vpop.f32.mrf.mxu0 }
 0x19c   : > { %9557 = vst [vmem:[#allocation15_spill] sm:$0xff] %v7569_v51  ;;  %9558 = vst [vmem:[#allocation16_spill] sm:$0xff] %v7572_v19  ;;  %v5352_v5 = vadd.f32 %v5351_v23, %v5350_v40  ;;  %v1078_v40 = vadd.f32 %v5222_v43, %v7383_v8 }
 0x19d   : > { %v5353_v11 = vpop.f32.mrf.mxu1  ;;  %v6023_v32 = vpop.f32.mrf.mxu0 }
 0x19e   : > { %v7574_v26 = vadd.f32 %v6023_v32, %v1372_v34  ;;  %v1375_v20 = vadd.f32 %v5352_v5, %v7467_v30  ;;  %v5228_v5 = vadd.f32 %v7492_v57, %v7489_v41 }
 0x19f   : > { %v5354_v31 = vpop.f32.mrf.mxu1  ;;  %v1524_v7 = vpop.f32.mrf.mxu0 }
 0x1a0   : > { %9559 = vst [vmem:[#allocation17_spill] sm:$0xff] %v7574_v26  ;;  %v5355_v46 = vadd.f32 %v5354_v31, %v5353_v11  ;;  %v7579_v29 = vadd.f32 %v1524_v7, %v1364_v9  ;;  %v1083_v9 = vadd.f32 %v7368_v37, %v7487_v17  ;;  %v1086_v43 = vadd.f32 %v7378_v0, %v5228_v5 }
 0x1a1   : > { %v5356_v39 = vpop.f32.mrf.mxu1  ;;  %v6024_v3 = vpop.f32.mrf.mxu0 }
 0x1a2   : > { %9560 = vst [vmem:[#allocation18_spill] sm:$0xff] %v7579_v29  ;;  %v7581_v48 = vadd.f32 %v6024_v3, %v1375_v20  ;;  %v1380_v50 = vadd.f32 %v5355_v46, %v7476_v38 }
 0x1a3   : > { %v5357_v13 = vpop.f32.mrf.mxu1  ;;  %v7584_v47 = vpop.f32.mrf.mxu0 }
 0x1a4   : > { %9561 = vst [vmem:[#allocation19_spill] sm:$0xff] %v7581_v48  ;;  %9562 = vst [vmem:[#allocation20_spill] sm:$0xff] %v7584_v47  ;;  %v5358_v30 = vadd.f32 %v5357_v13, %v5356_v39 }
 0x1a5   : > { %v5359_v61 = vpop.f32.mrf.mxu1  ;;  %v6027_v34 = vpop.f32.mrf.mxu0 }
 0x1a6   : > { %v7587_v23 = vadd.f32 %v5358_v30, %v1078_v40 }
 0x1a7   : > { %v5360_v2 = vpop.f32.mrf.mxu1  ;;  %v1540_v63 = vpop.f32.mrf.mxu0 }
 0x1a8   : > { %9563 = vst [vmem:[#allocation21_spill] sm:$0xff] %v7587_v23  ;;  %v5361_v11 = vadd.f32 %v5360_v2, %v5359_v61  ;;  %v7593_v38 = vadd.f32 %v1540_v63, %v1380_v50 }
 0x1a9   : > { %v5362_v32 = vpop.f32.mrf.mxu1  ;;  %v6028_v20 = vpop.f32.mrf.mxu0 }
 0x1aa   : > { %9564 = vst [vmem:[#allocation22_spill] sm:$0xff] %v7593_v38  ;;  %v1388_v31 = vadd.f32 %v5361_v11, %v1083_v9 }
 0x1ab   : > { %v5363_v8 = vpop.f32.mrf.mxu1  ;;  %v7595_v7 = vpop.f32.mrf.mxu0 }
 0x1ac   : > { %9565 = vst [vmem:[#allocation23_spill] sm:$0xff] %v7595_v7  ;;  %v7598_v46 = vadd.f32 %v6027_v34, %v1388_v31  ;;  %v5364_v39 = vadd.f32 %v5363_v8, %v5362_v32 }
 0x1ad   : > { %v5405_v3 = vpop.f32.mrf.mxu0  ;;  %v6047_v13 = vpop.f32.mrf.mxu1 }
 0x1ae   : > { %9566 = vst [vmem:[#allocation24_spill] sm:$0xff] %v7598_v46  ;;  %v1391_v37 = vadd.f32 %v5364_v39, %v1086_v43 }
 0x1af   : > { %v5406_v17 = vpop.f32.mrf.mxu0  ;;  %v2105_v40 = vpop.f32.mrf.mxu1 }
 0x1b0   : > { %v7600_v41 = vadd.f32 %v6028_v20, %v1391_v37  ;;  %v5407_v57 = vadd.f32 %v5406_v17, %v5405_v3 }
 0x1b1   : > { %v5408_v50 = vpop.f32.mrf.mxu0  ;;  %v6048_v0 = vpop.f32.mrf.mxu1 }
 0x1b2   : > { %9567 = vst [vmem:[#allocation25_spill] sm:$0xff] %v7600_v41  ;;  %v2106_v30 = vadd.f32 %v5407_v57, %v2105_v40 }
 0x1b3   : > { %v5409_v61 = vpop.f32.mrf.mxu0  ;;  %v2108_v11 = vpop.f32.mrf.mxu1 }
 0x1b4   : > { %v7603_v2 = vadd.f32 %v2106_v30, %v7499_v28  ;;  %v5410_v26 = vadd.f32 %v5409_v61, %v5408_v50 }
 0x1b5   : > { %v5411_v63 = vpop.f32.mrf.mxu0  ;;  %v6051_v8 = vpop.f32.mrf.mxu1 }
 0x1b6   : > { %v2109_v45 = vadd.f32 %v5410_v26, %v2108_v11 }
 0x1b7   : > { %v5412_v9 = vpop.f32.mrf.mxu0  ;;  %v2121_v39 = vpop.f32.mrf.mxu1 }
 0x1b8   : > { %v5413_v29 = vadd.f32 %v5412_v9, %v5411_v63  ;;  %v7613_v25 = vadd.f32 %v2109_v45, %v1432_v24  ;;  %v1448_v24 = vadd.f32 %v7521_v36, %v7428_v52 }
 0x1b9   : > { %v5414_v34 = vpop.f32.mrf.mxu0  ;;  %v6052_v3 = vpop.f32.mrf.mxu1 }
 0x1ba   : > { %v2114_v12 = vadd.f32 %v6047_v13, %v5413_v29 }
 0x1bb   : > { %v5415_v5 = vpop.f32.mrf.mxu0  ;;  %v2124_v57 = vpop.f32.mrf.mxu1 }
 0x1bc   : > { %v5416_v19 = vadd.f32 %v5415_v5, %v5414_v34  ;;  %v7616_v63 = vadd.f32 %v2114_v12, %v7495_v14  ;;  %v2264_v5 = vadd.f32 %v7613_v25, %v7603_v2 }
 0x1bd   : > { %v5417_v32 = vpop.f32.mrf.mxu0  ;;  %v7605_v30 = vpop.f32.mrf.mxu1 }
 0x1be   : > { %v2117_v53 = vadd.f32 %v6048_v0, %v5416_v19  ;;  %v2265_v19 = vadd.f32 %v2264_v5, %v7616_v63 }
 0x1bf   : > { %v5418_v31 = vpop.f32.mrf.mxu0  ;;  %v2137_v46 = vpop.f32.mrf.mxu1 }
 0x1c0   : > { %v5419_v21 = vadd.f32 %v5418_v31, %v5417_v32  ;;  %v7621_v16 = vadd.f32 %v2117_v53, %v7502_v55 }
 0x1c1   : > { %v5420_v43 = vpop.f32.mrf.mxu0  ;;  %v7607_v23 = vpop.f32.mrf.mxu1 }
 0x1c2   : > { %v2122_v9 = vadd.f32 %v5419_v21, %v2121_v39  ;;  %v2266_v11 = vadd.f32 %v2265_v19, %v7621_v16 }
 0x1c3   : > { %v5421_v20 = vpop.f32.mrf.mxu0  ;;  %v2140_v47 = vpop.f32.mrf.mxu1 }
 0x1c4   : > { %v5422_v50 = vadd.f32 %v5421_v20, %v5420_v43  ;;  %v7627_v14 = vadd.f32 %v2122_v9, %v7515_v33 }
 0x1c5   : > { %v5423_v37 = vpop.f32.mrf.mxu0  ;;  %v7609_v44 = vpop.f32.mrf.mxu1 }
 0x1c6   : > { %9568 = vst [vmem:[#allocation26_spill] sm:$0xff] %v7609_v44  ;;  %v2125_v35 = vadd.f32 %v5422_v50, %v2124_v57  ;;  %v2267_v52 = vadd.f32 %v2266_v11, %v7627_v14 }
 0x1c7   : > { %v5424_v17 = vpop.f32.mrf.mxu0  ;;  %v2153_v15 = vpop.f32.mrf.mxu1 }
 0x1c8   : > { %v5425_v44 = vadd.f32 %v5424_v17, %v5423_v37  ;;  %v7630_v32 = vadd.f32 %v2125_v35, %v1448_v24 }
 0x1c9   : > { %v5426_v40 = vpop.f32.mrf.mxu0  ;;  %v6060_v34 = vpop.f32.mrf.mxu1 }
 0x1ca   : > { %v2130_v12 = vadd.f32 %v6051_v8, %v5425_v44 }
 0x1cb   : > { %v5427_v22 = vpop.f32.mrf.mxu0  ;;  %v2156_v13 = vpop.f32.mrf.mxu1 }
 0x1cc   : > { %v5428_v29 = vadd.f32 %v5427_v22, %v5426_v40  ;;  %v7634_v36 = vadd.f32 %v2130_v12, %v7510_v18 }
 0x1cd   : > { %v5429_v28 = vpop.f32.mrf.mxu0  ;;  %v6063_v31 = vpop.f32.mrf.mxu1 }
 0x1ce   : > { %v2133_v55 = vadd.f32 %v6052_v3, %v5428_v29 }
 0x1cf   : > { %v5430_v1 = vpop.f32.mrf.mxu0  ;;  %v2169_v37 = vpop.f32.mrf.mxu1 }
 0x1d0   : > { %v5431_v21 = vadd.f32 %v5430_v1, %v5429_v28  ;;  %v2268_v1 = vadd.f32 %v2267_v52, %v7630_v32  ;;  %v7638_v44 = vadd.f32 %v2133_v55, %v7518_v42 }
 0x1d1   : > { %v5432_v41 = vpop.f32.mrf.mxu0 }
 0x1d2   : > { %v2138_v43 = vadd.f32 %v5431_v21, %v2137_v46  ;;  %v2269_v3 = vadd.f32 %v2268_v1, %v7634_v36  ;;  %v9573_v1 = vld [vmem:[#allocation11_spill] sm:$0xff] }
 0x1d3   : > { %v5433_v7 = vpop.f32.mrf.mxu0 }
 0x1d4   : > { %v5434_v53 = vadd.f32 %v5433_v7, %v5432_v41  ;;  %v1464_v7 = vadd.f32 %v7534_v58, %v7457_v60  ;;  %v7644_v18 = vadd.f32 %v2138_v43, %v7528_v62  ;;  %v2270_v17 = vadd.f32 %v2269_v3, %v7638_v44  ;;  %v6064_v60 = vpop.f32.mrf.mxu1 }
 0x1d5   : > { %v5435_v38 = vpop.f32.mrf.mxu0 }
 0x1d6   : > { %v2141_v8 = vadd.f32 %v5434_v53, %v2140_v47  ;;  %v2271_v58 = vadd.f32 %v2270_v17, %v7644_v18  ;;  %v2172_v9 = vpop.f32.mrf.mxu1 }
 0x1d7   : > { %v5436_v48 = vpop.f32.mrf.mxu0 }
 0x1d8   : > { %v5437_v33 = vadd.f32 %v5436_v48, %v5435_v38  ;;  %v7648_v42 = vadd.f32 %v2141_v8, %v1464_v7  ;;  %v6067_v24 = vpop.f32.mrf.mxu1  ;;  %v9574_v7 = vld [vmem:[#allocation9_spill] sm:$0xff] }
 0x1d9   : > { %v5438_v27 = vpop.f32.mrf.mxu0 }
 0x1da   : > { %v2146_v48 = vadd.f32 %v7605_v30, %v5437_v33  ;;  %v2185_v55 = vpop.f32.mrf.mxu1 }
 0x1db   : > { %v5439_v51 = vpop.f32.mrf.mxu0 }
 0x1dc   : > { %v5440_v20 = vadd.f32 %v5439_v51, %v5438_v27  ;;  %v7653_v40 = vadd.f32 %v2146_v48, %v7524_v4  ;;  %v6068_v48 = vpop.f32.mrf.mxu1 }
 0x1dd   : > { %v5441_v49 = vpop.f32.mrf.mxu0 }
 0x1de   : > { %v2149_v27 = vadd.f32 %v7607_v23, %v5440_v20  ;;  %v1480_v23 = vadd.f32 %v7548_v10, %v7485_v54  ;;  %v9570_v10 = vld [vmem:[#allocation5_spill] sm:$0xff] }
 0x1df   : > { %v5442_v6 = vpop.f32.mrf.mxu0 }
 0x1e0   : > { %v5443_v38 = vadd.f32 %v5442_v6, %v5441_v49  ;;  %v2272_v49 = vadd.f32 %v2271_v58, %v7648_v42  ;;  %v7657_v6 = vadd.f32 %v2149_v27, %v7531_v59  ;;  %v9575_v58 = vld [vmem:[#allocation8_spill] sm:$0xff] }
 0x1e1   : > { %v5444_v61 = vpop.f32.mrf.mxu0 }
 0x1e2   : > { %v2154_v62 = vadd.f32 %v5443_v38, %v2153_v15  ;;  %v9569_v15 = vld [vmem:[#allocation26_spill] sm:$0xff] }
 0x1e3   : > { %v5445_v26 = vpop.f32.mrf.mxu0 }
 0x1e4   : > { %v5446_v51 = vadd.f32 %v5445_v26, %v5444_v61  ;;  %v2273_v26 = vadd.f32 %v2272_v49, %v7653_v40  ;;  %v7663_v4 = vadd.f32 %v2154_v62, %v7543_v56  ;;  %v2188_v49 = vpop.f32.mrf.mxu1 }
 0x1e5   : > { %v5447_v45 = vpop.f32.mrf.mxu0 }
 0x1e6   : > { %v2157_v30 = vadd.f32 %v5446_v51, %v2156_v13  ;;  %v2274_v59 = vadd.f32 %v2273_v26, %v7657_v6  ;;  %v9578_v26 = vld [vmem:[#allocation16_spill] sm:$0xff] }
 0x1e7   : > { %v5448_v0 = vpop.f32.mrf.mxu0 }
 0x1e8   : > { %v5449_v57 = vadd.f32 %v5448_v0, %v5447_v45  ;;  %v7667_v45 = vadd.f32 %v2157_v30, %v1480_v23  ;;  %v2275_v54 = vadd.f32 %v2274_v59, %v7663_v4 }
 0x1e9   : > { %v5450_v22 = vpop.f32.mrf.mxu0 }
 0x1ea   : > { %v2162_v5 = vadd.f32 %v9569_v15, %v5449_v57  ;;  %v2276_v53 = vadd.f32 %v2275_v54, %v7667_v45 }
 0x1eb   : > { %v5451_v39 = vpop.f32.mrf.mxu0 }
 0x1ec   : > { %v5452_v50 = vadd.f32 %v5451_v39, %v5450_v22  ;;  %v7671_v13 = vadd.f32 %v2162_v5, %v9570_v10  ;;  %v9571_v22 = vld [vmem:[#allocation7_spill] sm:$0xff]  ;;  %v9579_v5 = vld [vmem:[#allocation14_spill] sm:$0xff] }
 0x1ed   : > { %v5453_v41 = vpop.f32.mrf.mxu0 }
 0x1ee   : > { %v2165_v19 = vadd.f32 %v6060_v34, %v5452_v50  ;;  %v9572_v34 = vld [vmem:[#allocation4_spill] sm:$0xff]  ;;  %v2277_v20 = vadd.f32 %v2276_v53, %v7671_v13 }
 0x1ef   : > { %v5454_v46 = vpop.f32.mrf.mxu0  ;;  %v1496_v8 = vadd.f32 %v9573_v1, %v9572_v34 }
 0x1f0   : > { %v5455_v35 = vadd.f32 %v5454_v46, %v5453_v41  ;;  %v7675_v52 = vadd.f32 %v2165_v19, %v9571_v22  ;;  %v6071_v19 = vpop.f32.mrf.mxu1  ;;  %v9580_v22 = vld [vmem:[#allocation12_spill] sm:$0xff] }
 0x1f1   : > { %v5456_v47 = vpop.f32.mrf.mxu0 }
 0x1f2   : > { %v2170_v0 = vadd.f32 %v5455_v35, %v2169_v37  ;;  %v2278_v38 = vadd.f32 %v2277_v20, %v7675_v52 }
 0x1f3   : > { %v5457_v28 = vpop.f32.mrf.mxu0 }
 0x1f4   : > { %v5458_v12 = vadd.f32 %v5457_v28, %v5456_v47  ;;  %v7681_v41 = vadd.f32 %v2170_v0, %v9574_v7  ;;  %v9581_v7 = vld [vmem:[#allocation15_spill] sm:$0xff] }
 0x1f5   : > { %v5459_v61 = vpop.f32.mrf.mxu0 }
 0x1f6   : > { %v2173_v43 = vadd.f32 %v5458_v12, %v2172_v9  ;;  %v2279_v47 = vadd.f32 %v2278_v38, %v7681_v41  ;;  %v9577_v9 = vld [vmem:[#allocation6_spill] sm:$0xff] }
 0x1f7   : > { %v5460_v29 = vpop.f32.mrf.mxu0 }
 0x1f8   : > { %v5461_v56 = vadd.f32 %v5460_v29, %v5459_v61  ;;  %v7684_v46 = vadd.f32 %v2173_v43, %v1496_v8 }
 0x1f9   : > { %v5462_v21 = vpop.f32.mrf.mxu0 }
 0x1fa   : > { %v2178_v37 = vadd.f32 %v6063_v31, %v5461_v56  ;;  %v2280_v30 = vadd.f32 %v2279_v47, %v7684_v46  ;;  %v9576_v31 = vld [vmem:[#allocation10_spill] sm:$0xff] }
 0x1fb   : > { %v5463_v11 = vpop.f32.mrf.mxu0  ;;  %v9582_v47 = vld [vmem:[#allocation18_spill] sm:$0xff] }
 0x1fc   : > { %v5464_v33 = vadd.f32 %v5463_v11, %v5462_v21  ;;  %v7688_v62 = vadd.f32 %v2178_v37, %v9575_v58 }
 0x1fd   : > { %v5465_v39 = vpop.f32.mrf.mxu0 }
 0x1fe   : > { %v2181_v17 = vadd.f32 %v6064_v60, %v5464_v33  ;;  %v1512_v60 = vadd.f32 %v9578_v26, %v9577_v9  ;;  %v2281_v15 = vadd.f32 %v2280_v30, %v7688_v62  ;;  %v9584_v30 = vld [vmem:[#allocation20_spill] sm:$0xff] }
 0x1ff   : > { %v5466_v3 = vpop.f32.mrf.mxu0 }
 0x200   : > { %v5467_v27 = vadd.f32 %v5466_v3, %v5465_v39  ;;  %v7692_v50 = vadd.f32 %v2181_v17, %v9576_v31 }
 0x201   : > { %v5468_v51 = vpop.f32.mrf.mxu0 }
 0x202   : > { %v2186_v57 = vadd.f32 %v5467_v27, %v2185_v55  ;;  %v2282_v12 = vadd.f32 %v2281_v15, %v7692_v50  ;;  %v2201_v55 = vpop.f32.mrf.mxu1 }
 0x203   : > { %v5469_v28 = vpop.f32.mrf.mxu0 }
 0x204   : > { %v5470_v23 = vadd.f32 %v5469_v28, %v5468_v51  ;;  %v7698_v35 = vadd.f32 %v2186_v57, %v9579_v5  ;;  %v6072_v20 = vpop.f32.mrf.mxu1 }
 0x205   : > { %v5471_v61 = vpop.f32.mrf.mxu0 }
 0x206   : > { %v2189_v29 = vadd.f32 %v5470_v23, %v2188_v49  ;;  %v2283_v0 = vadd.f32 %v2282_v12, %v7698_v35  ;;  %v2204_v51 = vpop.f32.mrf.mxu1  ;;  %v9583_v49 = vld [vmem:[#allocation13_spill] sm:$0xff] }
 0x207   : > { %v5472_v59 = vpop.f32.mrf.mxu0 }
 0x208   : > { %v7701_v21 = vadd.f32 %v2189_v29, %v1512_v60  ;;  %v5473_v54 = vadd.f32 %v5472_v59, %v5471_v61  ;;  %v6075_v15 = vpop.f32.mrf.mxu1  ;;  %v6349_v59 = vld [vmem:[%s9514_s2 + $0x178] sm:$0xff]  }
 0x209   : > { %v5474_v10 = vpop.f32.mrf.mxu0  ;;  %6077 = vmatprep.subr.bf16.mxu0 %v6349_v59 }
 0x20a   : > { %v2194_v56 = vadd.f32 %v6067_v24, %v5473_v54  ;;  %v2284_v53 = vadd.f32 %v2283_v0, %v7701_v21  ;;  %v9585_v54 = vld [vmem:[#allocation17_spill] sm:$0xff]  ;;  %6078 = vmatpush3.bf16.msra.mxu0 %v6349_v59  ;;  %v6359_v59 = vld [vmem:[%s9514_s2 + $0x168] sm:$0xff]  }
 0x20b   : > { %v5475_v11 = vpop.f32.mrf.mxu0 }
 0x20c   : > { %v7706_v43 = vadd.f32 %v2194_v56, %v9580_v22  ;;  %v5476_v33 = vadd.f32 %v5475_v11, %v5474_v10  ;;  %v2217_v11 = vpop.f32.mrf.mxu1 }
 0x20d   : > { %v5477_v39 = vpop.f32.mrf.mxu0 }
 0x20e   : > { %v2285_v34 = vadd.f32 %v2284_v53, %v7706_v43  ;;  %v2197_v1 = vadd.f32 %v6068_v48, %v5476_v33  ;;  %v1528_v48 = vadd.f32 %v9584_v30, %v9583_v49  ;;  %v9586_v33 = vld [vmem:[#allocation19_spill] sm:$0xff]  ;;  %v6353_v49 = vld [vmem:[%s9514_s2 + $0xf0] sm:$0xff]   ;;  %v9588_v30 = vld [vmem:[#allocation21_spill] sm:$0xff] }
 0x20f   : > { %v5478_v8 = vpop.f32.mrf.mxu0 }
 0x210   : > { %v7710_v37 = vadd.f32 %v2197_v1, %v9581_v7  ;;  %v5479_v3 = vadd.f32 %v5478_v8, %v5477_v39  ;;  %v6076_v8 = vpop.f32.mrf.mxu1  ;;  %v6351_v7 = vld [vmem:[%s9514_s2 + $0xf8] sm:$0xff]  }
 0x211   : > { %v5480_v38 = vpop.f32.mrf.mxu0 }
 0x212   : > { %v2202_v24 = vadd.f32 %v5479_v3, %v2201_v55  ;;  %v2286_v17 = vadd.f32 %v2285_v34, %v7710_v37  ;;  %v6350_v34 = vld [vmem:[%s9514_s2 + $0x138] sm:$0xff]  }
 0x213   : > { %v5481_v27 = vpop.f32.mrf.mxu0  ;;  %5525 = vmatprep.subr.bf16.mxu1 %v6350_v34 }
 0x214   : > { %v7714_v58 = vadd.f32 %v2202_v24, %v9582_v47  ;;  %v5482_v57 = vadd.f32 %v5481_v27, %v5480_v38  ;;  %5526 = vmatpush3.bf16.msra.mxu1 %v6351_v7  ;;  %v9587_v24 = vld [vmem:[#allocation22_spill] sm:$0xff]  ;;  %v6354_v47 = vld [vmem:[%s9514_s2 + $0x170] sm:$0xff]   ;;  %v9591_v7 = vld [vmem:[#allocation25_spill] sm:$0xff] }
 0x215   : > { %v5483_v28 = vpop.f32.mrf.mxu0  ;;  %6079 = vmatprep.subr.bf16.mxu0 %v6354_v47 }
 0x216   : > { %v2287_v31 = vadd.f32 %v2286_v17, %v7714_v58  ;;  %v2205_v23 = vadd.f32 %v5482_v57, %v2204_v51  ;;  %v6352_v51 = vld [vmem:[%s9514_s2 + $0x130] sm:$0xff]   ;;  %v2220_v57 = vpop.f32.mrf.mxu1  ;;  %6080 = vmatpush3.bf16.msra.mxu0 %v6354_v47 }
 0x217   : > { %v5484_v61 = vpop.f32.mrf.mxu0  ;;  %5527 = vmatprep.subr.bf16.mxu1 %v6352_v51  ;;  %6081 = vmatprep.subr.bf16.mxu0 %v6359_v59  ;;  %v6362_v51 = vld [vmem:[%s9514_s2 + $0x110] sm:$0xff]  }
 0x218   : > { %v7719_v9 = vadd.f32 %v2205_v23, %v1528_v48  ;;  %v5485_v26 = vadd.f32 %v5484_v61, %v5483_v28  ;;  %v9589_v48 = vld [vmem:[#allocation23_spill] sm:$0xff]  ;;  %5528 = vmatpush3.bf16.msra.mxu1 %v6353_v49  ;;  %v6368_v47 = vld [vmem:[%s9514_s2 + $0x150] sm:$0xff]  }
 0x219   : > { %v5486_v60 = vpop.f32.mrf.mxu0 }
 0x21a   : > { %v2288_v5 = vadd.f32 %v2287_v31, %v7719_v9  ;;  %v2210_v29 = vadd.f32 %v6071_v19, %v5485_v26  ;;  %v1544_v31 = vadd.f32 %v9589_v48, %v9588_v30  ;;  %6082 = vmatpush3.bf16.msra.mxu0 %v6359_v59  ;;  %v6365_v30 = vld [vmem:[%s9514_s2 + $0x108] sm:$0xff]  }
 0x21b   : > { %v5487_v12 = vpop.f32.mrf.mxu0  ;;  %v6370_v48 = vld [vmem:[%s9514_s2 + $0x148] sm:$0xff]  }
 0x21c   : > { %v7726_v10 = vadd.f32 %v2210_v29, %v9585_v54  ;;  %v5488_v0 = vadd.f32 %v5487_v12, %v5486_v60  ;;  %v6355_v29 = vld [vmem:[%s9514_s2 + $0x128] sm:$0xff]  }
 0x21d   : > { %v5489_v56 = vpop.f32.mrf.mxu0  ;;  %v6356_v54 = vld [vmem:[%s9514_s2 + $0xe8] sm:$0xff]   ;;  %5529 = vmatprep.subr.bf16.mxu1 %v6355_v29  ;;  %v6371_v29 = vld [vmem:[%s9514_s2 + $0xc0] sm:$0xff]  }
 0x21e   : > { %v2289_v55 = vadd.f32 %v2288_v5, %v7726_v10  ;;  %v2213_v53 = vadd.f32 %v6072_v20, %v5488_v0  ;;  %5530 = vmatpush3.bf16.msra.mxu1 %v6356_v54 }
 0x21f   : > { %v5490_v22 = vpop.f32.mrf.mxu0 }
 0x220   : > { %v7730_v39 = vadd.f32 %v2213_v53, %v9586_v33  ;;  %v5491_v19 = vadd.f32 %v5490_v22, %v5489_v56  ;;  %v6357_v33 = vld [vmem:[%s9514_s2 + $0x120] sm:$0xff]  }
 0x221   : > { %v5492_v1 = vpop.f32.mrf.mxu0  ;;  %5531 = vmatprep.subr.bf16.mxu1 %v6357_v33 }
 0x222   : > { %v2218_v3 = vadd.f32 %v5491_v19, %v2217_v11  ;;  %v2290_v38 = vadd.f32 %v2289_v55, %v7730_v39  ;;  %v9590_v55 = vld [vmem:[#allocation24_spill] sm:$0xff]  ;;  %v6364_v19 = vld [vmem:[%s9514_s2 + $0x160] sm:$0xff]  }
 0x223   : > { %v5493_v20 = vpop.f32.mrf.mxu0  ;;  %6083 = vmatprep.subr.bf16.mxu0 %v6364_v19 }
 0x224   : > { %v7740_v17 = vadd.f32 %v2218_v3, %v9587_v24  ;;  %v5494_v27 = vadd.f32 %v5493_v20, %v5492_v1  ;;  %6084 = vmatpush3.bf16.msra.mxu0 %v6364_v19  ;;  %v6366_v20 = vld [vmem:[%s9514_s2 + $0x158] sm:$0xff]  }
 0x225   : > { %v5495_v28 = vpop.f32.mrf.mxu0  ;;  %v6361_v24 = vld [vmem:[%s9514_s2 + $0xd8] sm:$0xff]   ;;  %6085 = vmatprep.subr.bf16.mxu0 %v6366_v20 }
 0x226   : > { %v2291_v23 = vadd.f32 %v2290_v38, %v7740_v17  ;;  %v2221_v61 = vadd.f32 %v5494_v27, %v2220_v57  ;;  %v6360_v38 = vld [vmem:[%s9514_s2 + $0x118] sm:$0xff]   ;;  %v6363_v57 = vld [vmem:[%s9514_s2 + $0xd0] sm:$0xff]  }
 0x227   : > { %v5496_v26 = vpop.f32.mrf.mxu0 }
 0x228   : > { %v7754_v60 = vadd.f32 %v2221_v61, %v1544_v31  ;;  %v5497_v5 = vadd.f32 %v5496_v26, %v5495_v28  ;;  %6086 = vmatpush3.bf16.msra.mxu0 %v6366_v20  ;;  %v6367_v31 = vld [vmem:[%s9514_s2 + $0xc8] sm:$0xff]   ;;  %v6369_v26 = vld [vmem:[%s9514_s2 + $0x100] sm:$0xff]  }
 0x229   : > { %v5498_v12 = vpop.f32.mrf.mxu0  ;;  %6087 = vmatprep.subr.bf16.mxu0 %v6368_v47 }
 0x22a   : > { %v2292_v0 = vadd.f32 %v2291_v23, %v7754_v60  ;;  %v2226_v56 = vadd.f32 %v6075_v15, %v5497_v5  ;;  %v6358_v15 = vld [vmem:[%s9514_s2 + $0xe0] sm:$0xff]  }
 0x22b   : > { %v5499_v11 = vpop.f32.mrf.mxu0  ;;  %5532 = vmatpush3.bf16.msra.mxu1 %v6358_v15  ;;  %v6372_v5 = vld [vmem:[%s9514_s2 + $0x140] sm:$0xff]  }
 0x22c   : > { %v2262_v53 = vadd.f32 %v2226_v56, %v9590_v55  ;;  %v5500_v22 = vadd.f32 %v5499_v11, %v5498_v12  ;;  %5533 = vmatprep.subr.bf16.mxu1 %v6360_v38  ;;  %6088 = vmatpush3.bf16.msra.mxu0 %v6368_v47  ;;  %v7816_v12 = vld [vmem:[%s9514_s2 + $0xb8] sm:$0xff]  }
 0x22d   : > { %6089 = vmatprep.subr.bf16.mxu0 %v6370_v48 }
 0x22e   : > { %v2293_v34 = vadd.f32 %v2292_v0, %v2262_v53  ;;  %v2229_v1 = vadd.f32 %v6076_v8, %v5500_v22 }
 0x22f   : > { %5534 = vmatpush3.bf16.msra.mxu1 %v6361_v24 }
 0x230   : > { %v2263_v3 = vadd.f32 %v2229_v1, %v9591_v7  ;;  %5535 = vmatprep.subr.bf16.mxu1 %v6362_v51  ;;  %6090 = vmatpush3.bf16.msra.mxu0 %v6370_v48 }
 0x231   : > { %6091 = vmatprep.subr.bf16.mxu0 %v6372_v5 }
 0x232   : > { %v2294_v27 = vadd.f32 %v2293_v34, %v2263_v3 }
 0x233   : > { %5536 = vmatpush3.bf16.msra.mxu1 %v6363_v57 }
 0x234   : > { %v2295_v8 = vrot.slane %v2294_v27, 4  ;;  %5537 = vmatprep.subr.bf16.mxu1 %v6365_v30  ;;  %6092 = vmatpush3.bf16.msra.mxu0 %v6372_v5 }
 0x236   : > { %v2296_v28 = vadd.f32 %v2295_v8, %v2294_v27 }
 0x237   : > { %5538 = vmatpush3.bf16.msra.mxu1 %v6367_v31 }
 0x238   : > { %v2297_v49 = vrot.slane %v2296_v28, 2  ;;  %5539 = vmatprep.subr.bf16.mxu1 %v6369_v26 }
 0x23a   : > { %v2298_v23 = vadd.f32 %v2297_v49, %v2296_v28  ;;  %v6375_v49 = vld [vmem:[%s9514_s2 + $0x78] sm:$0xff]  }
 0x23b   : > { %5540 = vmatpush3.bf16.msra.mxu1 %v6371_v29  ;;  %5661 = vmatprep.subr.bf16.mxu0 %v6375_v49 }
 0x23c   : > { %v2299_v61 = vrot.slane %v2298_v23, 1  ;;  %6125 = vmatprep.subr.bf16.mxu1 %v7816_v12 }
 0x23e   : > { %v2300_v59 = vadd.f32 %v2299_v61, %v2298_v23 }
 0x240   : > { %v7818_v54 = vmul.f32 0.00390625, %v2300_v59 }
 0x242   : > { %v7823_v0 = vsub.f32 %v7701_v21, %v7818_v54  ;;  %v7827_v56 = vsub.f32 %v7706_v43, %v7818_v54  ;;  %v7831_v11 = vsub.f32 %v7710_v37, %v7818_v54  ;;  %v7835_v55 = vsub.f32 %v7714_v58, %v7818_v54 }
 0x243   : > { %v7839_v22 = vsub.f32 %v7719_v9, %v7818_v54  ;;  %v7843_v21 = vsub.f32 %v7726_v10, %v7818_v54  ;;  %v7847_v43 = vsub.f32 %v7730_v39, %v7818_v54  ;;  %v7851_v37 = vsub.f32 %v7740_v17, %v7818_v54 }
 0x244   : > { %v7855_v58 = vsub.f32 %v7754_v60, %v7818_v54  ;;  %v7858_v33 = vsub.f32 %v2262_v53, %v7818_v54  ;;  %v7861_v9 = vsub.f32 %v2263_v3, %v7818_v54  ;;  %v7865_v10 = vsub.f32 %v7603_v2, %v7818_v54 }
 0x245   : > { %v7869_v39 = vsub.f32 %v7613_v25, %v7818_v54  ;;  %v7873_v17 = vsub.f32 %v7616_v63, %v7818_v54  ;;  %v7881_v19 = vsub.f32 %v7621_v16, %v7818_v54  ;;  %v7885_v2 = vsub.f32 %v7627_v14, %v7818_v54 }
 0x246   : > { %v2334_v60 = vmul.f32 %v7865_v10, %v7865_v10  ;;  %v7891_v63 = vsub.f32 %v7630_v32, %v7818_v54  ;;  %v7897_v16 = vsub.f32 %v7634_v36, %v7818_v54  ;;  %v7903_v3 = vsub.f32 %v7638_v44, %v7818_v54 }
 0x247   : > { %v2335_v53 = vmul.f32 %v7869_v39, %v7869_v39  ;;  %v2336_v25 = vmul.f32 %v7873_v17, %v7873_v17  ;;  %v2337_v34 = vmul.f32 %v7881_v19, %v7881_v19  ;;  %v2338_v14 = vmul.f32 %v7885_v2, %v7885_v2 }
 0x248   : > { %v2339_v32 = vmul.f32 %v7891_v63, %v7891_v63  ;;  %v7909_v20 = vsub.f32 %v7644_v18, %v7818_v54  ;;  %v2340_v36 = vmul.f32 %v7897_v16, %v7897_v16  ;;  %v7915_v27 = vsub.f32 %v7648_v42, %v7818_v54 }
 0x249   : > { %v2366_v15 = vadd.f32 %v2335_v53, %v2334_v60  ;;  %v2341_v44 = vmul.f32 %v7903_v3, %v7903_v3  ;;  %v7921_v51 = vsub.f32 %v7653_v40, %v7818_v54  ;;  %v7927_v57 = vsub.f32 %v7657_v6, %v7818_v54 }
 0x24a   : > { %v2342_v18 = vmul.f32 %v7909_v20, %v7909_v20  ;;  %v2343_v42 = vmul.f32 %v7915_v27, %v7915_v27  ;;  %v7936_v40 = vsub.f32 %v7663_v4, %v7818_v54  ;;  %v7942_v6 = vsub.f32 %v7667_v45, %v7818_v54 }
 0x24b   : > { %v2367_v1 = vadd.f32 %v2366_v15, %v2336_v25  ;;  %v2344_v30 = vmul.f32 %v7921_v51, %v7921_v51  ;;  %v2345_v31 = vmul.f32 %v7927_v57, %v7927_v57  ;;  %v7948_v61 = vsub.f32 %v7671_v13, %v7818_v54 }
 0x24c   : > { %v2346_v4 = vmul.f32 %v7936_v40, %v7936_v40  ;;  %v7954_v5 = vsub.f32 %v7675_v52, %v7818_v54  ;;  %v2347_v45 = vmul.f32 %v7942_v6, %v7942_v6  ;;  %v7960_v59 = vsub.f32 %v7681_v41, %v7818_v54 }
 0x24d   : > { %v2368_v7 = vadd.f32 %v2367_v1, %v2337_v34  ;;  %v2348_v13 = vmul.f32 %v7948_v61, %v7948_v61  ;;  %v7966_v53 = vsub.f32 %v7684_v46, %v7818_v54  ;;  %v7972_v15 = vsub.f32 %v7688_v62, %v7818_v54 }
 0x24e   : > { %v2349_v52 = vmul.f32 %v7954_v5, %v7954_v5  ;;  %v2350_v41 = vmul.f32 %v7960_v59, %v7960_v59  ;;  %v7978_v1 = vsub.f32 %v7692_v50, %v7818_v54  ;;  %v2359_v49 = vmul.f32 %v7839_v22, %v7839_v22 }
 0x24f   : > { %v2369_v38 = vadd.f32 %v2368_v7, %v2338_v14  ;;  %v2351_v46 = vmul.f32 %v7966_v53, %v7966_v53  ;;  %v7984_v7 = vsub.f32 %v7698_v35, %v7818_v54  ;;  %v2352_v62 = vmul.f32 %v7972_v15, %v7972_v15 }
 0x250   : > { %v2356_v35 = vmul.f32 %v7827_v56, %v7827_v56 }
 0x251   : > { %v2370_v24 = vadd.f32 %v2369_v38, %v2339_v32  ;;  %v2353_v38 = vmul.f32 %v7978_v1, %v7978_v1  ;;  %v2354_v50 = vmul.f32 %v7984_v7, %v7984_v7 }
 0x253   : > { %v2371_v8 = vadd.f32 %v2370_v24, %v2340_v36 }
 0x255   : > { %v2372_v47 = vadd.f32 %v2371_v8, %v2341_v44  ;;  %v2355_v44 = vmul.f32 %v7823_v0, %v7823_v0 }
 0x257   : > { %v2373_v28 = vadd.f32 %v2372_v47, %v2342_v18  ;;  %v2357_v18 = vmul.f32 %v7831_v11, %v7831_v11 }
 0x259   : > { %v2374_v48 = vadd.f32 %v2373_v28, %v2343_v42  ;;  %v2358_v42 = vmul.f32 %v7835_v55, %v7835_v55 }
 0x25b   : > { %v2375_v23 = vadd.f32 %v2374_v48, %v2344_v30  ;;  %v2360_v48 = vmul.f32 %v7843_v21, %v7843_v21 }
 0x25d   : > { %v2376_v26 = vadd.f32 %v2375_v23, %v2345_v31  ;;  %v2361_v23 = vmul.f32 %v7847_v43, %v7847_v43 }
 0x25f   : > { %v2377_v29 = vadd.f32 %v2376_v26, %v2346_v4  ;;  %v2362_v26 = vmul.f32 %v7851_v37, %v7851_v37 }
 0x261   : > { %v2378_v60 = vadd.f32 %v2377_v29, %v2347_v45  ;;  %v2363_v29 = vmul.f32 %v7855_v58, %v7855_v58 }
 0x263   : > { %v2379_v25 = vadd.f32 %v2378_v60, %v2348_v13  ;;  %v2364_v60 = vmul.f32 %v7858_v33, %v7858_v33 }
 0x265   : > { %v2380_v34 = vadd.f32 %v2379_v25, %v2349_v52  ;;  %v2365_v25 = vmul.f32 %v7861_v9, %v7861_v9 }
 0x267   : > { %v2381_v14 = vadd.f32 %v2380_v34, %v2350_v41 }
 0x269   : > { %v2382_v32 = vadd.f32 %v2381_v14, %v2351_v46 }
 0x26b   : > { %v2383_v36 = vadd.f32 %v2382_v32, %v2352_v62 }
 0x26d   : > { %v2384_v24 = vadd.f32 %v2383_v36, %v2353_v38 }
 0x26f   : > { %v2385_v8 = vadd.f32 %v2384_v24, %v2354_v50 }
 0x271   : > { %v2386_v54 = vadd.f32 %v2385_v8, %v2355_v44 }
 0x273   : > { %v2387_v47 = vadd.f32 %v2386_v54, %v2356_v35 }
 0x275   : > { %v2388_v28 = vadd.f32 %v2387_v47, %v2357_v18 }
 0x277   : > { %v2389_v30 = vadd.f32 %v2388_v28, %v2358_v42 }
 0x279   : > { %v2390_v31 = vadd.f32 %v2389_v30, %v2359_v49 }
 0x27b   : > { %v2391_v4 = vadd.f32 %v2390_v31, %v2360_v48 }
 0x27d   : > { %v2392_v45 = vadd.f32 %v2391_v4, %v2361_v23 }
 0x27f   : > { %v2393_v13 = vadd.f32 %v2392_v45, %v2362_v26 }
 0x281   : > { %v2394_v52 = vadd.f32 %v2393_v13, %v2363_v29  ;;  %v6374_v13 = vld [vmem:[%s9514_s2 + $0xb0] sm:$0xff]  }
 0x283   : > { %v2395_v41 = vadd.f32 %v2394_v52, %v2364_v60  ;;  %v6379_v52 = vld [vmem:[%s9514_s2 + $0x30] sm:$0xff]  }
 0x285   : > { %v2396_v34 = vadd.f32 %v2395_v41, %v2365_v25 }
 0x287   : > { %v2397_v46 = vrot.slane %v2396_v34, 4 }
 0x289   : > { %v2398_v14 = vadd.f32 %v2397_v46, %v2396_v34 }
 0x28b   : > { %v2399_v62 = vrot.slane %v2398_v14, 2 }
 0x28d   : > { %v2400_v32 = vadd.f32 %v2399_v62, %v2398_v14 }
 0x28f   : > { %v2401_v38 = vrot.slane %v2400_v32, 1 }
 0x291   : > { %v2402_v36 = vadd.f32 %v2401_v38, %v2400_v32 }
 0x293   : > { %v2403_v50 = vmul.f32 0.00390625, %v2402_v36 }
 0x295   : > { %v2404_v24 = vadd.f32 1e-05, %v2403_v50 }
 0x297   : > { %6421 = vrsqrt.f32 %v2404_v24 }
 0x2a4   : > { %v8014_v44 = vpop.eup %6421 }
 0x2a5   : > { %v2408_v8 = vmul.f32 %v8014_v44, %v7873_v17  ;;  %v2409_v35 = vmul.f32 %v8014_v44, %v7881_v19  ;;  %v2410_v54 = vmul.f32 %v8014_v44, %v7885_v2  ;;  %v2411_v18 = vmul.f32 %v8014_v44, %v7891_v63 }
 0x2a6   : > { %v2406_v47 = vmul.f32 %v8014_v44, %v7865_v10  ;;  %v2407_v42 = vmul.f32 %v8014_v44, %v7869_v39  ;;  %v2412_v28 = vmul.f32 %v8014_v44, %v7897_v16  ;;  %v2413_v17 = vmul.f32 %v8014_v44, %v7903_v3 }
 0x2a7   : > { %v2440_v49 = vmax.f32 %v2408_v8, 0.0  ;;  %v2441_v19 = vmax.f32 %v2409_v35, 0.0  ;;  %v2442_v30 = vmax.f32 %v2410_v54, 0.0  ;;  %v2443_v48 = vmax.f32 %v2411_v18, 0.0 }
 0x2a8   : > { %v2438_v2 = vmax.f32 %v2406_v47, 0.0  ;;  %v2439_v31 = vmax.f32 %v2407_v42, 0.0  ;;  %v8034_v63 = vmul.f32 %v8014_v44, %v7861_v9  ;;  %v2414_v10 = vmul.f32 %v8014_v44, %v7909_v20  ;;  %v6377_v9 = vld [vmem:[%s9514_s2 + $0x38] sm:$0xff]  }
 0x2a9   : > { %v2444_v39 = vmax.f32 %v2412_v28, 0.0  ;;  %v2445_v23 = vmax.f32 %v2413_v17, 0.0  ;;  %v2415_v16 = vmul.f32 %v8014_v44, %v7915_v27  ;;  %v2416_v3 = vmul.f32 %v8014_v44, %v7921_v51 }
 0x2aa   : > { %v2417_v4 = vmul.f32 %v8014_v44, %v7927_v57  ;;  %v8044_v26 = vpack.c.bf16 %v2441_v19, %v2440_v49  ;;  %v8051_v20 = vmul.f32 %v8014_v44, %v7936_v40  ;;  %v8055_v45 = vmul.f32 %v8014_v44, %v7942_v6  ;;  %v6385_v49 = vld [vmem:[%s9514_s2 + $0xa0] sm:$0xff]  }
 0x2ab   : > { %v8059_v27 = vmul.f32 %v8014_v44, %v7948_v61  ;;  %v8061_v51 = vpack.c.bf16 %v2443_v48, %v2442_v30  ;;  %v8065_v57 = vmul.f32 %v8014_v44, %v7954_v5  ;;  %v8069_v29 = vmul.f32 %v8014_v44, %v7960_v59 }
 0x2ac   : > { %v8073_v40 = vmul.f32 %v8014_v44, %v7966_v53  ;;  %v8075_v6 = vpack.c.bf16 %v2439_v31, %v2438_v2  ;;  %6093 = vmatprep.mubr.bf16.mxu0 %v8044_v26  ;;  %v8080_v61 = vmul.f32 %v8014_v44, %v7972_v15  ;;  %v8084_v5 = vmul.f32 %v8014_v44, %v7978_v1  ;;  %v6378_v15 = vld [vmem:[%s9514_s2 + $0x70] sm:$0xff]   ;;  %v6383_v31 = vld [vmem:[%s9514_s2 + $0x20] sm:$0xff]  }
 0x2ad   : > { %v8088_v59 = vmul.f32 %v8014_v44, %v7984_v7  ;;  %6094 = vmatmul.mubr.bf16.vlgmr.msra.gmra.mxu0 %v8061_v51  ;;  %v8091_v53 = vpack.c.bf16 %v2445_v23, %v2444_v39  ;;  %v8101_v1 = vmul.f32 %v8014_v44, %v7823_v0  ;;  %v8105_v7 = vmul.f32 %v8014_v44, %v7827_v56 }
 0x2ae   : > { %v8109_v60 = vmul.f32 %v8014_v44, %v7831_v11  ;;  %2918 = vmatprep.mubr.bf16.mxu1 %v8075_v6  ;;  %5662 = vmatpush3.bf16.msra.mxu0 %v6377_v9  ;;  %v8117_v25 = vmul.f32 %v8014_v44, %v7835_v55  ;;  %v8121_v0 = vmul.f32 %v8014_v44, %v7839_v22  ;;  %v2446_v56 = vmax.f32 %v2414_v10, 0.0  ;;  %v6380_v11 = vld [vmem:[%s9514_s2 + $0x68] sm:$0xff]  }
 0x2af   : > { %v2447_v41 = vmax.f32 %v2415_v16, 0.0  ;;  %2919 = vmatmul.mubr.bf16.vlgmr.msra.gmra.mxu1 %v8044_v26  ;;  %6097 = vmatprep.mubr.bf16.mxu0 %v8091_v53  ;;  %v8130_v34 = vmul.f32 %v8014_v44, %v7843_v21  ;;  %v2448_v55 = vmax.f32 %v2416_v3, 0.0  ;;  %v2449_v46 = vmax.f32 %v2417_v4, 0.0  ;;  %v6376_v21 = vld [vmem:[%s9514_s2 + $0xa8] sm:$0xff]   ;;  %v6384_v3 = vld [vmem:[%s9514_s2 + $0x58] sm:$0xff]  }
 0x2b0   : > { %2926 = vmatprep.mubr.bf16.mxu1 %v8044_v26  ;;  %6126 = vmatpush3.bf16.msra.mxu1 %v7816_v12  ;;  %v8135_v22 = vshll.u32 %v8061_v51, 16  ;;  %v2433_v14 = vmul.f32 %v8014_v44, %v7847_v43  ;;  %v2434_v62 = vmul.f32 %v8014_v44, %v7851_v37  ;;  %v2435_v32 = vmul.f32 %v8014_v44, %v7855_v58  ;;  %v6381_v43 = vld [vmem:[%s9514_s2 + $0x28] sm:$0xff]  }
 0x2b1   : > { %6127 = vmatprep.subr.bf16.mxu1 %v6374_v13  ;;  %5663 = vmatprep.subr.bf16.mxu0 %v6378_v15  ;;  %v2436_v12 = vmul.f32 %v8014_v44, %v7858_v33  ;;  %v2450_v38 = vmax.f32 %v8051_v20, 0.0  ;;  %v8153_v37 = vshrl.u32 %v8061_v51, 16  ;;  %v2451_v36 = vmax.f32 %v8055_v45, 0.0  ;;  %v6382_v33 = vld [vmem:[%s9514_s2 + $0x60] sm:$0xff]   ;;  %v6387_v15 = vld [vmem:[%s9514_s2 + $0x50] sm:$0xff]  }
 0x2b2   : > { %5664 = vmatpush3.bf16.msra.mxu0 %v6379_v52  ;;  %v3678_v58 = vrot.slane %v8135_v22, 1  ;;  %v2452_v50 = vmax.f32 %v8059_v27, 0.0  ;;  %v2453_v24 = vmax.f32 %v8065_v57, 0.0  ;;  %v8159_v8 = vpack.c.bf16 %v2447_v41, %v2446_v56  ;;  %v6393_v27 = vld [vmem:[%s9514_s2 + $0x98] sm:$0xff]  }
 0x2b3   : > { %5665 = vmatprep.subr.bf16.mxu0 %v6380_v11  ;;  %v2454_v44 = vmax.f32 %v8069_v29, 0.0  ;;  %v2455_v35 = vmax.f32 %v8073_v40, 0.0  ;;  %v8166_v54 = vpack.c.bf16 %v2449_v46, %v2448_v55  ;;  %v2456_v47 = vmax.f32 %v8080_v61, 0.0 }
 0x2b4   : > { %6128 = vmatpush3.bf16.msra.mxu1 %v6374_v13  ;;  %v8169_v18 = vor.u32 %v3678_v58, %v8153_v37  ;;  %v2457_v42 = vmax.f32 %v8084_v5, 0.0  ;;  %v2458_v28 = vmax.f32 %v8088_v59, 0.0  ;;  %v2459_v17 = vmax.f32 %v8101_v1, 0.0 }
 0x2b5   : > { %6098 = vmatmul.mubr.bf16.gmra.mxu0 %v8159_v8  ;;  %6129 = vmatprep.subr.bf16.mxu1 %v6376_v21  ;;  %v2462_v19 = vmax.f32 %v8117_v25, 0.0  ;;  %v2463_v30 = vmax.f32 %v8121_v0, 0.0  ;;  %v2466_v48 = vmax.f32 %v2434_v62, 0.0  ;;  %v2467_v2 = vmax.f32 %v2435_v32, 0.0  ;;  %v6394_v0 = vld [vmem:[%s9514_s2 + $0x90] sm:$0xff]   ;;  %v6389_v32 = vld [vmem:[%s9514_s2 + $0x48] sm:$0xff]  }
 0x2b6   : > { %6101 = vmatprep.mubr.bf16.mxu0 %v8166_v54  ;;  %5666 = vmatpush3.bf16.msra.mxu0 %v6381_v43  ;;  %v2460_v10 = vmax.f32 %v8105_v7, 0.0  ;;  %v2461_v39 = vmax.f32 %v8109_v60, 0.0  ;;  %v2464_v23 = vmax.f32 %v8130_v34, 0.0  ;;  %v2465_v16 = vmax.f32 %v2433_v14, 0.0  ;;  %v6388_v34 = vld [vmem:[%s9514_s2 + $0x10] sm:$0xff]  }
 0x2b7   : > { %2927 = vmatmul.mubr.bf16.gmra.mxu1 %v8075_v6  ;;  %5667 = vmatprep.subr.bf16.mxu0 %v6382_v33  ;;  %v2468_v4 = vmax.f32 %v2436_v12, 0.0  ;;  %v2469_v9 = vmax.f32 %v8034_v63, 0.0  ;;  %v8194_v20 = vpack.c.bf16 %v2451_v36, %v2450_v38  ;;  %v8196_v45 = vpack.c.bf16 %v2455_v35, %v2454_v44  ;;  %v6386_v63 = vld [vmem:[%s9514_s2 + $0x18] sm:$0xff]  }
 0x2b8   : > { %2934 = vmatprep.mubr.bf16.mxu1 %v8061_v51  ;;  %6130 = vmatpush3.bf16.msra.mxu1 %v6376_v21  ;;  %v8201_v57 = vpack.c.bf16 %v2459_v17, %v2458_v28  ;;  %v8203_v29 = vpack.c.bf16 %v2463_v30, %v2462_v19  ;;  %v8205_v40 = vpack.c.bf16 %v2467_v2, %v2466_v48  ;;  %v8222_v1 = vshrl.u32 %v8075_v6, 16  ;;  %v6391_v48 = vld [vmem:[%s9514_s2 + $0x40] sm:$0xff]  }
 0x2b9   : > { %6131 = vmatprep.subr.bf16.mxu1 %v6385_v49  ;;  %v8207_v61 = vpack.c.bf16 %v2453_v24, %v2452_v50  ;;  %v8212_v5 = vpack.c.bf16 %v2457_v42, %v2456_v47  ;;  %v8214_v59 = vpack.c.bf16 %v2461_v39, %v2460_v10  ;;  %v8216_v13 = vpack.c.bf16 %v2465_v16, %v2464_v23  ;;  %v6395_v24 = vld [vmem:[%s9514_s2 + $0x88] sm:$0xff]  }
 0x2ba   : > { %5668 = vmatpush3.bf16.msra.mxu0 %v6383_v31  ;;  %v8224_v7 = vpack.c.bf16 %v2469_v9, %v2468_v4  ;;  %v8227_v60 = vshll.u32 %v8075_v6, 16  ;;  %v8230_v52 = vshrl.u32 %v8044_v26, 16  ;;  %v8233_v25 = vshll.u32 %v8044_v26, 16  ;;  %v6390_v42 = vld [vmem:[%s9514_s2 + $0x8] sm:$0xff]   ;;  %v6396_v4 = vld [vmem:[%s9514_s2 + $0x80] sm:$0xff]  }
 0x2bb   : > { %5669 = vmatprep.subr.bf16.mxu0 %v6384_v3  ;;  %v8240_v56 = vshrl.u32 %v8091_v53, 16  ;;  %v8243_v41 = vshll.u32 %v8091_v53, 16  ;;  %v8246_v6 = vshrl.u32 %v8159_v8, 16  ;;  %v8249_v11 = vshll.u32 %v8159_v8, 16 }
 0x2bc   : > { %6132 = vmatpush3.bf16.msra.mxu1 %v6385_v49  ;;  %v8256_v55 = vshrl.u32 %v8166_v54, 16  ;;  %v8259_v46 = vshll.u32 %v8166_v54, 16  ;;  %v8262_v14 = vshrl.u32 %v8194_v20, 16  ;;  %v8265_v62 = vshll.u32 %v8194_v20, 16 }
 0x2bd   : > { %6102 = vmatmul.mubr.bf16.gmra.mxu0 %v8194_v20  ;;  %6133 = vmatprep.subr.bf16.mxu1 %v6393_v27  ;;  %v8272_v21 = vshrl.u32 %v8207_v61, 16  ;;  %v8275_v12 = vshll.u32 %v8207_v61, 16  ;;  %v8278_v38 = vshrl.u32 %v8196_v45, 16  ;;  %v8281_v43 = vshll.u32 %v8196_v45, 16 }
 0x2be   : > { %6105 = vmatprep.mubr.bf16.mxu0 %v8207_v61  ;;  %5670 = vmatpush3.bf16.msra.mxu0 %v6386_v63  ;;  %v8288_v58 = vshll.u32 %v8212_v5, 16  ;;  %v8291_v36 = vshrl.u32 %v8201_v57, 16  ;;  %v8294_v50 = vshll.u32 %v8201_v57, 16  ;;  %v8300_v33 = vshrl.u32 %v8214_v59, 16 }
 0x2bf   : > { %2935 = vmatmul.mubr.bf16.gmra.mxu1 %v8044_v26  ;;  %5671 = vmatprep.subr.bf16.mxu0 %v6387_v15  ;;  %v8285_v26 = vshrl.u32 %v8212_v5, 16  ;;  %v8303_v44 = vshll.u32 %v8214_v59, 16  ;;  %v3676_v35 = vrot.slane %v8227_v60, 1  ;;  %v3674_v47 = vrot.slane %v8233_v25, 1 }
 0x2c0   : > { %2942 = vmatprep.mubr.bf16.mxu1 %v8091_v53  ;;  %6134 = vmatpush3.bf16.msra.mxu1 %v6393_v27  ;;  %v8311_v28 = vshrl.u32 %v8203_v29, 16  ;;  %v8314_v17 = vshll.u32 %v8203_v29, 16  ;;  %v8317_v49 = vshrl.u32 %v8216_v13, 16  ;;  %v8323_v30 = vsel %vm7136_vm5, %v8169_v18, %v8135_v22 }
 0x2c1   : > { %6135 = vmatprep.subr.bf16.mxu1 %v6394_v0  ;;  %9593 = vst [vmem:[#allocation26_spill] sm:$0xff] %v8323_v30  ;;  %v8329_v2 = vshll.u32 %v8216_v13, 16  ;;  %v3677_v31 = vor.u32 %v3676_v35, %v8222_v1  ;;  %v3675_v10 = vor.u32 %v3674_v47, %v8230_v52  ;;  %v3680_v39 = vrot.slane %v8243_v41, 1 }
 0x2c2   : > { %5672 = vmatpush3.bf16.msra.mxu0 %v6388_v34  ;;  %v8335_v23 = vshrl.u32 %v8205_v40, 16  ;;  %v8338_v18 = vshll.u32 %v8205_v40, 16  ;;  %v3682_v16 = vrot.slane %v8249_v11, 1  ;;  %v3684_v3 = vrot.slane %v8259_v46, 1 }
 0x2c3   : > { %5673 = vmatprep.subr.bf16.mxu0 %v6389_v32  ;;  %v8347_v9 = vshrl.u32 %v8224_v7, 16  ;;  %v8352_v27 = vsel %vm7136_vm5, %v3677_v31, %v8227_v60  ;;  %v8357_v63 = vsel %vm7136_vm5, %v3675_v10, %v8233_v25  ;;  %v3686_v15 = vrot.slane %v8265_v62, 1 }
 0x2c4   : > { %6136 = vmatpush3.bf16.msra.mxu1 %v6394_v0  ;;  %v6392_v0 = vld [vmem:[%s9514_s2] sm:$0xff]   ;;  %v8365_v34 = vshll.u32 %v8224_v7, 16  ;;  %v3681_v32 = vor.u32 %v3680_v39, %v8240_v56  ;;  %v3683_v35 = vor.u32 %v3682_v16, %v8246_v6  ;;  %v3688_v47 = vrot.slane %v8275_v12, 1 }
 0x2c5   : > { %6106 = vmatmul.mubr.bf16.gmra.mxu0 %v8196_v45  ;;  %6137 = vmatprep.subr.bf16.mxu1 %v6395_v24  ;;  %v3685_v31 = vor.u32 %v3684_v3, %v8256_v55  ;;  %v3687_v10 = vor.u32 %v3686_v15, %v8262_v14  ;;  %v3690_v30 = vrot.slane %v8281_v43, 1  ;;  %v3692_v39 = vrot.slane %v8288_v58, 1  ;;  %v6398_v15 = vld [vmem:[%s9514_s2 + $0x1f8] sm:$0xff]  }
 0x2c6   : > { %6109 = vmatprep.mubr.bf16.mxu0 %v8212_v5  ;;  %5674 = vmatpush3.bf16.msra.mxu0 %v6390_v42  ;;  %v8374_v42 = vld [vmem:[%s9514_s2 + $0x238] sm:$0xff]   ;;  %v3689_v16 = vor.u32 %v3688_v47, %v8272_v21  ;;  %v3694_v3 = vrot.slane %v8294_v50, 1 }
 0x2c7   : > { %2943 = vmatmul.mubr.bf16.gmra.mxu1 %v8061_v51  ;;  %5675 = vmatprep.subr.bf16.mxu0 %v6391_v48  ;;  %v8384_v51 = vsel %vm7136_vm5, %v3681_v32, %v8243_v41  ;;  %v8389_v48 = vsel %vm7136_vm5, %v3683_v35, %v8249_v11  ;;  %v8404_v32 = vsel %vm7136_vm5, %v3687_v10, %v8265_v62  ;;  %v3700_v10 = vrot.slane %v8329_v2, 1 }
 0x2c8   : > { %2950 = vmatprep.mubr.bf16.mxu1 %v8159_v8  ;;  %6138 = vmatpush3.bf16.msra.mxu1 %v6395_v24  ;;  %9594 = vst [vmem:[#allocation5_spill] sm:$0xff] %v8384_v51  ;;  %9595 = vst [vmem:[#allocation7_spill] sm:$0xff] %v8389_v48  ;;  %v8399_v24 = vsel %vm7136_vm5, %v3685_v31, %v8259_v46  ;;  %v3691_v35 = vor.u32 %v3690_v30, %v8278_v38  ;;  %v3696_v31 = vrot.slane %v8303_v44, 1 }
 0x2c9   : > { %6139 = vmatprep.subr.bf16.mxu1 %v6396_v4  ;;  %9596 = vst [vmem:[#allocation4_spill] sm:$0xff] %v8399_v24  ;;  %v3693_v47 = vor.u32 %v3692_v39, %v8285_v26  ;;  %v8411_v48 = vsel %vm7136_vm5, %v3689_v16, %v8275_v12  ;;  %v3695_v51 = vor.u32 %v3694_v3, %v8291_v36  ;;  %v3698_v24 = vrot.slane %v8314_v17, 1 }
 0x2ca   : > { %5676 = vmatpush3.bf16.msra.mxu0 %v6392_v0  ;;  %v8420_v30 = vsel %vm7136_vm5, %v3691_v35, %v8281_v43  ;;  %v3702_v39 = vrot.slane %v8338_v18, 1  ;;  %v3697_v3 = vor.u32 %v3696_v31, %v8300_v33 }
 0x2cb   : > { %6173 = vmatprep.subr.bf16.mxu0 %v8374_v42  ;;  %9597 = vst [vmem:[#allocation11_spill] sm:$0xff] %v8420_v30  ;;  %v8425_v0 = vsel %vm7136_vm5, %v3693_v47, %v8288_v58  ;;  %v8432_v16 = vsel %vm7136_vm5, %v3695_v51, %v8294_v50  ;;  %v3699_v35 = vor.u32 %v3698_v24, %v8311_v28  ;;  %v3704_v30 = vrot.slane %v8365_v34, 1 }
 0x2cc   : > { %9598 = vst [vmem:[#allocation9_spill] sm:$0xff] %v8425_v0  ;;  %6140 = vmatpush3.bf16.msra.mxu1 %v6396_v4  ;;  %v3701_v47 = vor.u32 %v3700_v10, %v8317_v49  ;;  %v3703_v0 = vor.u32 %v3702_v39, %v8335_v23  ;;  %v8444_v4 = vsel %vm7136_vm5, %v3697_v3, %v8303_v44 }
 0x2cd   : > { %6110 = vmatmul.mubr.bf16.gmra.mxu0 %v8201_v57  ;;  %5797 = vmatprep.subr.bf16.mxu1 %v6398_v15  ;;  %v8449_v51 = vsel %vm7136_vm5, %v3699_v35, %v8314_v17  ;;  %v3705_v24 = vor.u32 %v3704_v30, %v8347_v9  ;;  %v2550_v30 = vrot.slane %v8230_v52, 7  ;;  %v2566_v35 = vrot.slane %v8246_v6, 7 }
 0x2ce   : > { %6113 = vmatprep.mubr.bf16.mxu0 %v8214_v59  ;;  %v8456_v15 = vsel %vm7136_vm5, %v3701_v47, %v8329_v2  ;;  %v8461_v31 = vsel %vm7136_vm5, %v3703_v0, %v8338_v18 }
 0x2cf   : > { %2951 = vmatmul.mubr.bf16.gmra.mxu1 %v8091_v53  ;;  %v8467_v10 = vsel %vm7136_vm5, %v3705_v24, %v8365_v34  ;;  %v2554_v53 = vrot.slane %v8222_v1, 7  ;;  %v2553_v39 = vor.u32 %v8233_v25, %v2550_v30  ;;  %v6412_v25 = vld [vmem:[%s9514_s2 + $0x220] sm:$0xff]   ;;  %v2569_v47 = vor.u32 %v8249_v11, %v2566_v35  ;;  %v6404_v30 = vld [vmem:[%s9514_s2 + $0x1a8] sm:$0xff]  }
 0x2d0   : > { %2958 = vmatprep.mubr.bf16.mxu1 %v8166_v54  ;;  %v2570_v24 = vrot.slane %v8256_v55, 7  ;;  %v2606_v35 = vrot.slane %v8335_v23, 7 }
 0x2d1   : > { %v2557_v19 = vor.u32 %v8227_v60, %v2554_v53  ;;  %v8493_v60 = vsel %vm6747_vm2, %v8230_v52, %v2553_v39  ;;  %v2594_v39 = vrot.slane %v8300_v33, 7 }
 0x2d2   : > { %v2573_v11 = vor.u32 %v8259_v46, %v2570_v24  ;;  %v2578_v46 = vrot.slane %v8272_v21, 7 }
 0x2d3   : > { %v2631_v0 = vsel %vm6747_vm2, %v8222_v1, %v2557_v19  ;;  %v2558_v1 = vrot.slane %v8153_v37, 7  ;;  %v2574_v19 = vrot.slane %v8262_v14, 7 }
 0x2d4   : > { %v2635_v53 = vsel %vm6747_vm2, %v8256_v55, %v2573_v11  ;;  %v2581_v55 = vor.u32 %v8275_v12, %v2578_v46  ;;  %v2586_v12 = vrot.slane %v8285_v26, 7 }
 0x2d5   : > { %6114 = vmatmul.mubr.bf16.gmra.mxu0 %v8203_v29  ;;  %v2561_v52 = vor.u32 %v8135_v22, %v2558_v1  ;;  %v6414_v22 = vld [vmem:[%s9514_s2 + $0x218] sm:$0xff]  }
 0x2d6   : > { %6117 = vmatprep.mubr.bf16.mxu0 %v8216_v13  ;;  %v6409_v1 = vld [vmem:[%s9514_s2 + $0x198] sm:$0xff]  }
 0x2d7   : > { %2959 = vmatmul.mubr.bf16.gmra.mxu1 %v8159_v8 }
 0x2d8   : > { %2966 = vmatprep.mubr.bf16.mxu1 %v8194_v20 }
 0x2dd   : > { %6118 = vmatmul.mubr.bf16.gmra.mxu0 %v8205_v40 }
 0x2de   : > { %6121 = vmatprep.mubr.bf16.mxu0 %v8224_v7 }
 0x2df   : > { %2967 = vmatmul.mubr.bf16.gmra.mxu1 %v8166_v54  ;;  %v6402_v54 = vld [vmem:[%s9514_s2 + $0x230] sm:$0xff]  }
 0x2e0   : > { %2974 = vmatprep.mubr.bf16.mxu1 %v8207_v61 }
 0x2e5   : > { %6122 = vmatmul.mubr.bf16.gmra.mxu0 %v8205_v40 }
 0x2e6   : > { %3384 = vmatprep.mubr.bf16.mxu0 %v2631_v0 }
 0x2e7   : > { %2975 = vmatmul.mubr.bf16.gmra.mxu1 %v8194_v20  ;;  %v6407_v20 = vld [vmem:[%s9514_s2 + $0x228] sm:$0xff]  }
 0x2e8   : > { %2982 = vmatprep.mubr.bf16.mxu1 %v8196_v45 }
 0x2ed   : > { %3385 = vmatmul.mubr.bf16.vlgmr.msra.gmra.mxu0 %v8493_v60 }
 0x2ee   : > { %3392 = vmatprep.mubr.bf16.mxu0 %v8493_v60  ;;  %6174 = vmatpush3.bf16.msra.mxu0 %v8374_v42  ;;  %v2562_v42 = vrot.slane %v8240_v56, 7 }
 0x2ef   : > { %2983 = vmatmul.mubr.bf16.gmra.mxu1 %v8207_v61  ;;  %6175 = vmatprep.subr.bf16.mxu0 %v6402_v54  ;;  %v8511_v61 = vsel %vm6747_vm2, %v8153_v37, %v2561_v52  ;;  %v6416_v37 = vld [vmem:[%s9514_s2 + $0x210] sm:$0xff]   ;;  %v2598_v52 = vrot.slane %v8311_v28, 7 }
 0x2f0   : > { %2990 = vmatprep.mubr.bf16.mxu1 %v8212_v5  ;;  %v2565_v3 = vor.u32 %v8243_v41, %v2562_v42  ;;  %v6418_v41 = vld [vmem:[%s9514_s2 + $0x208] sm:$0xff]  }
 0x2f1   : > { %v6415_v42 = vld [vmem:[%s9514_s2 + $0x188] sm:$0xff]  }
 0x2f2   : > { %6176 = vmatpush3.bf16.msra.mxu0 %v6402_v54  ;;  %v6406_v54 = vld [vmem:[%s9514_s2 + $0x1a0] sm:$0xff]  }
 0x2f3   : > { %6177 = vmatprep.subr.bf16.mxu0 %v6407_v20 }
 0x2f5   : > { %3393 = vmatmul.mubr.bf16.gmra.mxu0 %v2631_v0 }
 0x2f6   : > { %3400 = vmatprep.mubr.bf16.mxu0 %v8511_v61  ;;  %6178 = vmatpush3.bf16.msra.mxu0 %v6407_v20 }
 0x2f7   : > { %2991 = vmatmul.mubr.bf16.gmra.mxu1 %v8196_v45  ;;  %6179 = vmatprep.subr.bf16.mxu0 %v6412_v25  ;;  %v2633_v45 = vsel %vm6747_vm2, %v8240_v56, %v2565_v3  ;;  %v6420_v56 = vld [vmem:[%s9514_s2 + $0x200] sm:$0xff]   ;;  %v2602_v3 = vrot.slane %v8317_v49, 7 }
 0x2f8   : > { %2998 = vmatprep.mubr.bf16.mxu1 %v8201_v57 }
 0x2fa   : > { %6180 = vmatpush3.bf16.msra.mxu0 %v6412_v25  ;;  %v6411_v25 = vld [vmem:[%s9514_s2 + $0x190] sm:$0xff]  }
 0x2fb   : > { %6181 = vmatprep.subr.bf16.mxu0 %v6414_v22 }
 0x2fd   : > { %3401 = vmatmul.mubr.bf16.gmra.mxu0 %v8493_v60 }
 0x2fe   : > { %3408 = vmatprep.mubr.bf16.mxu0 %v2633_v45  ;;  %6182 = vmatpush3.bf16.msra.mxu0 %v6414_v22 }
 0x2ff   : > { %2999 = vmatmul.mubr.bf16.gmra.mxu1 %v8212_v5  ;;  %6183 = vmatprep.subr.bf16.mxu0 %v6416_v37  ;;  %v2634_v5 = vsel %vm6747_vm2, %v8246_v6, %v2569_v47 }
 0x300   : > { %3006 = vmatprep.mubr.bf16.mxu1 %v8214_v59 }
 0x302   : > { %6184 = vmatpush3.bf16.msra.mxu0 %v6416_v37  ;;  %v6419_v37 = vld [vmem:[%s9514_s2 + $0x180] sm:$0xff]  }
 0x303   : > { %6185 = vmatprep.subr.bf16.mxu0 %v6418_v41 }
 0x305   : > { %3409 = vmatmul.mubr.bf16.gmra.mxu0 %v8511_v61 }
 0x306   : > { %3416 = vmatprep.mubr.bf16.mxu0 %v2634_v5  ;;  %6186 = vmatpush3.bf16.msra.mxu0 %v6418_v41  ;;  %v2609_v41 = vor.u32 %v8338_v18, %v2606_v35  ;;  %v9600_v18 = vld [vmem:[#allocation26_spill] sm:$0xff] }
 0x307   : > { %3007 = vmatmul.mubr.bf16.gmra.mxu1 %v8201_v57  ;;  %6187 = vmatprep.subr.bf16.mxu0 %v6420_v56  ;;  %v2577_v57 = vor.u32 %v8265_v62, %v2574_v19  ;;  %v2582_v62 = vrot.slane %v8278_v38, 7 }
 0x308   : > { %3014 = vmatprep.mubr.bf16.mxu1 %v8203_v29  ;;  %v2644_v47 = vsel %vm6747_vm2, %v8335_v23, %v2609_v41 }
 0x309   : > { %v2636_v6 = vsel %vm6747_vm2, %v8262_v14, %v2577_v57  ;;  %v2585_v14 = vor.u32 %v8281_v43, %v2582_v62  ;;  %v2590_v43 = vrot.slane %v8291_v36, 7  ;;  %v9603_v62 = vld [vmem:[#allocation4_spill] sm:$0xff] }
 0x30a   : > { %6188 = vmatpush3.bf16.msra.mxu0 %v6420_v56 }
 0x30d   : > { %3417 = vmatmul.mubr.bf16.gmra.mxu0 %v2633_v45 }
 0x30e   : > { %3424 = vmatprep.mubr.bf16.mxu0 %v2635_v53 }
 0x30f   : > { %3015 = vmatmul.mubr.bf16.gmra.mxu1 %v8214_v59  ;;  %v2637_v59 = vsel %vm6747_vm2, %v8272_v21, %v2581_v55  ;;  %v2589_v21 = vor.u32 %v8288_v58, %v2586_v12  ;;  %v2593_v58 = vor.u32 %v8294_v50, %v2590_v43  ;;  %v6405_v50 = vld [vmem:[%s9514_s2 + $0x1e0] sm:$0xff]   ;;  %v9602_v55 = vld [vmem:[#allocation7_spill] sm:$0xff] }
 0x310   : > { %3022 = vmatprep.mubr.bf16.mxu1 %v8216_v13 }
 0x311   : > { %v2640_v0 = vsel %vm6747_vm2, %v8291_v36, %v2593_v58  ;;  %v6408_v36 = vld [vmem:[%s9514_s2 + $0x1d8] sm:$0xff]  }
 0x315   : > { %3425 = vmatmul.mubr.bf16.gmra.mxu0 %v2634_v5 }
 0x316   : > { %3432 = vmatprep.mubr.bf16.mxu0 %v2636_v6 }
 0x317   : > { %3023 = vmatmul.mubr.bf16.gmra.mxu1 %v8203_v29  ;;  %v2638_v29 = vsel %vm6747_vm2, %v8278_v38, %v2585_v14  ;;  %v6400_v38 = vld [vmem:[%s9514_s2 + $0x1f0] sm:$0xff]  }
 0x318   : > { %3030 = vmatprep.mubr.bf16.mxu1 %v8205_v40 }
 0x31d   : > { %3433 = vmatmul.mubr.bf16.gmra.mxu0 %v2635_v53 }
 0x31e   : > { %3440 = vmatprep.mubr.bf16.mxu0 %v2637_v59 }
 0x31f   : > { %3031 = vmatmul.mubr.bf16.gmra.mxu1 %v8216_v13  ;;  %v6399_v13 = vld [vmem:[%s9514_s2 + $0x1b8] sm:$0xff]  }
 0x320   : > { %3038 = vmatprep.mubr.bf16.mxu1 %v8224_v7  ;;  %v2639_v7 = vsel %vm6747_vm2, %v8285_v26, %v2589_v21  ;;  %v6403_v26 = vld [vmem:[%s9514_s2 + $0x1e8] sm:$0xff]  }
 0x325   : > { %3441 = vmatmul.mubr.bf16.gmra.mxu0 %v2636_v6 }
 0x326   : > { %3448 = vmatprep.mubr.bf16.mxu0 %v2638_v29 }
 0x327   : > { %3039 = vmatmul.mubr.bf16.gmra.mxu1 %v8205_v40  ;;  %v6401_v40 = vld [vmem:[%s9514_s2 + $0x1b0] sm:$0xff]  }
 0x328   : > { %6141 = vmatprep.mubr.bf16.mxu1 %v8493_v60  ;;  %v2597_v60 = vor.u32 %v8303_v44, %v2594_v39  ;;  %v6410_v44 = vld [vmem:[%s9514_s2 + $0x1d0] sm:$0xff]  }
 0x32a   : > { %v2641_v20 = vsel %vm6747_vm2, %v8300_v33, %v2597_v60  ;;  %v6413_v33 = vld [vmem:[%s9514_s2 + $0x1c8] sm:$0xff]  }
 0x32d   : > { %3449 = vmatmul.mubr.bf16.gmra.mxu0 %v2637_v59 }
 0x32e   : > { %3456 = vmatprep.mubr.bf16.mxu0 %v2639_v7 }
 0x32f   : > { %6142 = vmatmul.mubr.bf16.vlgmr.msra.gmra.mxu1 %v8511_v61  ;;  %v2601_v61 = vor.u32 %v8314_v17, %v2598_v52  ;;  %v6417_v17 = vld [vmem:[%s9514_s2 + $0x1c0] sm:$0xff]  }
 0x330   : > { %6145 = vmatprep.mubr.bf16.mxu1 %v2633_v45  ;;  %5798 = vmatpush3.bf16.msra.mxu1 %v6399_v13  ;;  %v2605_v45 = vor.u32 %v8329_v2, %v2602_v3  ;;  %v2610_v2 = vrot.slane %v8347_v9, 7 }
 0x331   : > { %5799 = vmatprep.subr.bf16.mxu1 %v6400_v38  ;;  %v2642_v22 = vsel %vm6747_vm2, %v8311_v28, %v2601_v61 }
 0x332   : > { %v2643_v28 = vsel %vm6747_vm2, %v8317_v49, %v2605_v45  ;;  %v2613_v56 = vor.u32 %v8365_v34, %v2610_v2 }
 0x334   : > { %5800 = vmatpush3.bf16.msra.mxu1 %v6401_v40  ;;  %v2645_v49 = vsel %vm6747_vm2, %v8347_v9, %v2613_v56 }
 0x335   : > { %3457 = vmatmul.mubr.bf16.gmra.mxu0 %v2638_v29  ;;  %5801 = vmatprep.subr.bf16.mxu1 %v6403_v26 }
 0x336   : > { %3464 = vmatprep.mubr.bf16.mxu0 %v2640_v0 }
 0x337   : > { %6146 = vmatmul.mubr.bf16.gmra.mxu1 %v2634_v5  ;;  %v9601_v5 = vld [vmem:[#allocation5_spill] sm:$0xff] }
 0x338   : > { %6149 = vmatprep.mubr.bf16.mxu1 %v2635_v53  ;;  %5802 = vmatpush3.bf16.msra.mxu1 %v6404_v30 }
 0x339   : > { %5803 = vmatprep.subr.bf16.mxu1 %v6405_v50 }
 0x33c   : > { %5804 = vmatpush3.bf16.msra.mxu1 %v6406_v54 }
 0x33d   : > { %3465 = vmatmul.mubr.bf16.gmra.mxu0 %v2639_v7  ;;  %5805 = vmatprep.subr.bf16.mxu1 %v6408_v36 }
 0x33e   : > { %3472 = vmatprep.mubr.bf16.mxu0 %v2641_v20 }
 0x33f   : > { %6150 = vmatmul.mubr.bf16.gmra.mxu1 %v2636_v6 }
 0x340   : > { %6153 = vmatprep.mubr.bf16.mxu1 %v2637_v59  ;;  %5806 = vmatpush3.bf16.msra.mxu1 %v6409_v1 }
 0x341   : > { %5807 = vmatprep.subr.bf16.mxu1 %v6410_v44 }
 0x344   : > { %5808 = vmatpush3.bf16.msra.mxu1 %v6411_v25  ;;  %v9604_v25 = vld [vmem:[#allocation11_spill] sm:$0xff] }
 0x345   : > { %3473 = vmatmul.mubr.bf16.gmra.mxu0 %v2640_v0  ;;  %5809 = vmatprep.subr.bf16.mxu1 %v6413_v33  ;;  %v9605_v33 = vld [vmem:[#allocation9_spill] sm:$0xff] }
 0x346   : > { %3480 = vmatprep.mubr.bf16.mxu0 %v2642_v22 }
 0x347   : > { %6154 = vmatmul.mubr.bf16.gmra.mxu1 %v2638_v29 }
 0x348   : > { %6157 = vmatprep.mubr.bf16.mxu1 %v2639_v7  ;;  %5810 = vmatpush3.bf16.msra.mxu1 %v6415_v42 }
 0x349   : > { %5811 = vmatprep.subr.bf16.mxu1 %v6417_v17 }
 0x34c   : > { %5812 = vmatpush3.bf16.msra.mxu1 %v6419_v37 }
 0x34d   : > { %3481 = vmatmul.mubr.bf16.gmra.mxu0 %v2641_v20 }
 0x34e   : > { %3488 = vmatprep.mubr.bf16.mxu0 %v2643_v28 }
 0x34f   : > { %6158 = vmatmul.mubr.bf16.gmra.mxu1 %v2640_v0 }
 0x350   : > { %6161 = vmatprep.mubr.bf16.mxu1 %v2641_v20 }
 0x355   : > { %3489 = vmatmul.mubr.bf16.gmra.mxu0 %v2642_v22 }
 0x356   : > { %3496 = vmatprep.mubr.bf16.mxu0 %v2644_v47 }
 0x357   : > { %6162 = vmatmul.mubr.bf16.gmra.mxu1 %v2642_v22 }
 0x358   : > { %6165 = vmatprep.mubr.bf16.mxu1 %v2643_v28 }
 0x35d   : > { %3497 = vmatmul.mubr.bf16.gmra.mxu0 %v2643_v28 }
 0x35e   : > { %3504 = vmatprep.mubr.bf16.mxu0 %v2645_v49 }
 0x35f   : > { %6166 = vmatmul.mubr.bf16.gmra.mxu1 %v2644_v47 }
 0x360   : > { %6169 = vmatprep.mubr.bf16.mxu1 %v2645_v49 }
 0x365   : > { %3505 = vmatmul.mubr.bf16.gmra.mxu0 %v2644_v47 }
 0x366   : > { %6189 = vmatprep.mubr.bf16.mxu0 %v8357_v63 }
 0x367   : > { %6170 = vmatmul.mubr.bf16.gmra.mxu1 %v2644_v47 }
 0x368   : > { %3978 = vmatprep.mubr.bf16.mxu1 %v8352_v27 }
 0x36d   : > { %v6095_v23 = vpop.f32.mrf.mxu0  ;;  %6190 = vmatmul.mubr.bf16.vlgmr.msra.gmra.mxu0 %v9600_v18 }
 0x36e   : > { %6193 = vmatprep.mubr.bf16.mxu0 %v9601_v5 }
 0x36f   : > { %v5541_v34 = vpop.f32.mrf.mxu1  ;;  %3979 = vmatmul.mubr.bf16.vlgmr.msra.gmra.mxu1 %v8357_v63  ;;  %v3081_v24 = vpop.f32.mrf.mxu0 }
 0x370   : > { %3986 = vmatprep.mubr.bf16.mxu1 %v8357_v63 }
 0x371   : > { %v5542_v9 = vpop.f32.mrf.mxu1  ;;  %v6096_v8 = vpop.f32.mrf.mxu0 }
 0x372   : > { %v5543_v11 = vadd.f32 %v5542_v9, %v5541_v34 }
 0x373   : > { %v5544_v53 = vpop.f32.mrf.mxu1  ;;  %v3084_v19 = vpop.f32.mrf.mxu0 }
 0x374   : > { %v8659_v57 = vadd.f32 %v5543_v11, %v3081_v24 }
 0x375   : > { %v5545_v6 = vpop.f32.mrf.mxu1  ;;  %v6099_v46 = vpop.f32.mrf.mxu0  ;;  %6194 = vmatmul.mubr.bf16.gmra.mxu0 %v9602_v55 }
 0x376   : > { %v5546_v59 = vadd.f32 %v5545_v6, %v5544_v53  ;;  %6197 = vmatprep.mubr.bf16.mxu0 %v9603_v62 }
 0x377   : > { %v5547_v14 = vpop.f32.mrf.mxu1  ;;  %3987 = vmatmul.mubr.bf16.gmra.mxu1 %v8352_v27  ;;  %v3097_v29 = vpop.f32.mrf.mxu0 }
 0x378   : > { %v8664_v12 = vadd.f32 %v5546_v59, %v3084_v19  ;;  %3994 = vmatprep.mubr.bf16.mxu1 %v9600_v18 }
 0x379   : > { %v5548_v21 = vpop.f32.mrf.mxu1  ;;  %v6100_v13 = vpop.f32.mrf.mxu0 }
 0x37a   : > { %v5549_v7 = vadd.f32 %v5548_v21, %v5547_v14 }
 0x37b   : > { %v5550_v38 = vpop.f32.mrf.mxu1  ;;  %v3100_v43 = vpop.f32.mrf.mxu0 }
 0x37c   : > { %v8667_v40 = vadd.f32 %v6095_v23, %v5549_v7 }
 0x37d   : > { %v5551_v58 = vpop.f32.mrf.mxu1  ;;  %v6103_v26 = vpop.f32.mrf.mxu0  ;;  %6198 = vmatmul.mubr.bf16.gmra.mxu0 %v8404_v32 }
 0x37e   : > { %v5552_v30 = vadd.f32 %v5551_v58, %v5550_v38  ;;  %6201 = vmatprep.mubr.bf16.mxu0 %v8411_v48 }
 0x37f   : > { %v5553_v27 = vpop.f32.mrf.mxu1  ;;  %3995 = vmatmul.mubr.bf16.gmra.mxu1 %v8357_v63  ;;  %v3113_v0 = vpop.f32.mrf.mxu0 }
 0x380   : > { %v8672_v39 = vadd.f32 %v6096_v8, %v5552_v30  ;;  %4002 = vmatprep.mubr.bf16.mxu1 %v9601_v5 }
 0x381   : > { %v5554_v50 = vpop.f32.mrf.mxu1  ;;  %v6104_v54 = vpop.f32.mrf.mxu0 }
 0x382   : > { %v5555_v60 = vadd.f32 %v5554_v50, %v5553_v27 }
 0x383   : > { %v5556_v36 = vpop.f32.mrf.mxu1  ;;  %v3116_v1 = vpop.f32.mrf.mxu0 }
 0x384   : > { %v8675_v20 = vadd.f32 %v5555_v60, %v3097_v29 }
 0x385   : > { %v5557_v52 = vpop.f32.mrf.mxu1  ;;  %v8677_v44 = vpop.f32.mrf.mxu0  ;;  %6202 = vmatmul.mubr.bf16.gmra.mxu0 %v9604_v25 }
 0x386   : > { %v5558_v61 = vadd.f32 %v5557_v52, %v5556_v36  ;;  %6205 = vmatprep.mubr.bf16.mxu0 %v9605_v33 }
 0x387   : > { %v5559_v63 = vpop.f32.mrf.mxu1  ;;  %4003 = vmatmul.mubr.bf16.gmra.mxu1 %v9600_v18  ;;  %v3129_v42 = vpop.f32.mrf.mxu0 }
 0x388   : > { %v8682_v22 = vadd.f32 %v5558_v61, %v3100_v43  ;;  %4010 = vmatprep.mubr.bf16.mxu1 %v9602_v55 }
 0x389   : > { %v5560_v3 = vpop.f32.mrf.mxu1  ;;  %v8685_v17 = vpop.f32.mrf.mxu0 }
 0x38a   : > { %v5561_v37 = vadd.f32 %v5560_v3, %v5559_v63 }
 0x38b   : > { %v5562_v45 = vpop.f32.mrf.mxu1  ;;  %v3132_v28 = vpop.f32.mrf.mxu0 }
 0x38c   : > { %v8687_v35 = vadd.f32 %v6099_v46, %v5561_v37 }
 0x38d   : > { %v5563_v41 = vpop.f32.mrf.mxu1  ;;  %v8689_v47 = vpop.f32.mrf.mxu0  ;;  %6206 = vmatmul.mubr.bf16.gmra.mxu0 %v8432_v16 }
 0x38e   : > { %v5564_v2 = vadd.f32 %v5563_v41, %v5562_v45  ;;  %6209 = vmatprep.mubr.bf16.mxu0 %v8444_v4 }
 0x38f   : > { %v5565_v56 = vpop.f32.mrf.mxu1  ;;  %4011 = vmatmul.mubr.bf16.gmra.mxu1 %v9601_v5  ;;  %v8694_v49 = vpop.f32.mrf.mxu0 }
 0x390   : > { %v8696_v23 = vadd.f32 %v6100_v13, %v5564_v2  ;;  %4018 = vmatprep.mubr.bf16.mxu1 %v9603_v62 }
 0x391   : > { %v5566_v18 = vpop.f32.mrf.mxu1  ;;  %v8699_v34 = vpop.f32.mrf.mxu0 }
 0x392   : > { %v5567_v24 = vadd.f32 %v5566_v18, %v5565_v56 }
 0x393   : > { %v5568_v9 = vpop.f32.mrf.mxu1  ;;  %v8701_v8 = vpop.f32.mrf.mxu0 }
 0x394   : > { %v8703_v11 = vadd.f32 %v5567_v24, %v3113_v0 }
 0x395   : > { %v5569_v53 = vpop.f32.mrf.mxu1  ;;  %v8705_v19 = vpop.f32.mrf.mxu0  ;;  %6210 = vmatmul.mubr.bf16.gmra.mxu0 %v8449_v51 }
 0x396   : > { %v5570_v5 = vadd.f32 %v5569_v53, %v5568_v9  ;;  %6213 = vmatprep.mubr.bf16.mxu0 %v8456_v15 }
 0x397   : > { %v5571_v6 = vpop.f32.mrf.mxu1  ;;  %4019 = vmatmul.mubr.bf16.gmra.mxu1 %v9602_v55  ;;  %v8710_v46 = vpop.f32.mrf.mxu0 }
 0x398   : > { %v8712_v59 = vadd.f32 %v5570_v5, %v3116_v1  ;;  %4026 = vmatprep.mubr.bf16.mxu1 %v8404_v32 }
 0x399   : > { %v5572_v14 = vpop.f32.mrf.mxu1  ;;  %v8715_v29 = vpop.f32.mrf.mxu0 }
 0x39a   : > { %v5573_v21 = vadd.f32 %v5572_v14, %v5571_v6 }
 0x39b   : > { %v5574_v13 = vpop.f32.mrf.mxu1  ;;  %v8717_v7 = vpop.f32.mrf.mxu0 }
 0x39c   : > { %v8719_v38 = vadd.f32 %v6103_v26, %v5573_v21 }
 0x39d   : > { %v5575_v43 = vpop.f32.mrf.mxu1  ;;  %v8721_v58 = vpop.f32.mrf.mxu0  ;;  %6214 = vmatmul.mubr.bf16.gmra.mxu0 %v8461_v31 }
 0x39e   : > { %v5576_v55 = vadd.f32 %v5575_v43, %v5574_v13  ;;  %6217 = vmatprep.mubr.bf16.mxu0 %v8467_v10 }
 0x39f   : > { %v5577_v30 = vpop.f32.mrf.mxu1  ;;  %4027 = vmatmul.mubr.bf16.gmra.mxu1 %v9603_v62  ;;  %v8726_v27 = vpop.f32.mrf.mxu0 }
 0x3a0   : > { %v8728_v0 = vadd.f32 %v6104_v54, %v5576_v55  ;;  %4034 = vmatprep.mubr.bf16.mxu1 %v8411_v48 }
 0x3a1   : > { %v5578_v50 = vpop.f32.mrf.mxu1  ;;  %v8731_v26 = vpop.f32.mrf.mxu0 }
 0x3a2   : > { %v5579_v60 = vadd.f32 %v5578_v50, %v5577_v30 }
 0x3a3   : > { %v5580_v36 = vpop.f32.mrf.mxu1  ;;  %v8733_v1 = vpop.f32.mrf.mxu0 }
 0x3a4   : > { %v8735_v52 = vadd.f32 %v5579_v60, %v3129_v42 }
 0x3a5   : > { %v5581_v61 = vpop.f32.mrf.mxu1  ;;  %v8737_v63 = vpop.f32.mrf.mxu0  ;;  %6218 = vmatmul.mubr.bf16.gmra.mxu0 %v8461_v31 }
 0x3a6   : > { %v5582_v62 = vadd.f32 %v5581_v61, %v5580_v36 }
 0x3a7   : > { %v5583_v3 = vpop.f32.mrf.mxu1  ;;  %4035 = vmatmul.mubr.bf16.gmra.mxu1 %v8404_v32  ;;  %v8741_v54 = vpop.f32.mrf.mxu0 }
 0x3a8   : > { %v8743_v37 = vadd.f32 %v5582_v62, %v3132_v28  ;;  %4042 = vmatprep.mubr.bf16.mxu1 %v9604_v25 }
 0x3a9   : > { %v5584_v45 = vpop.f32.mrf.mxu1  ;;  %v8746_v41 = vpop.f32.mrf.mxu0 }
 0x3aa   : > { %v5585_v42 = vadd.f32 %v5584_v45, %v5583_v3 }
 0x3ab   : > { %v5586_v2 = vpop.f32.mrf.mxu1  ;;  %v8748_v56 = vpop.f32.mrf.mxu0 }
 0x3ac   : > { %v8751_v18 = vadd.f32 %v8677_v44, %v5585_v42 }
 0x3ad   : > { %v5587_v24 = vpop.f32.mrf.mxu1  ;;  %v5677_v9 = vpop.f32.mrf.mxu0 }
 0x3ae   : > { %v5588_v53 = vadd.f32 %v5587_v24, %v5586_v2 }
 0x3af   : > { %v5589_v32 = vpop.f32.mrf.mxu1  ;;  %4043 = vmatmul.mubr.bf16.gmra.mxu1 %v8411_v48  ;;  %v5678_v28 = vpop.f32.mrf.mxu0 }
 0x3b0   : > { %v8755_v5 = vadd.f32 %v8685_v17, %v5588_v53  ;;  %4050 = vmatprep.mubr.bf16.mxu1 %v9605_v33  ;;  %v5679_v6 = vadd.f32 %v5678_v28, %v5677_v9 }
 0x3b1   : > { %v5590_v14 = vpop.f32.mrf.mxu1  ;;  %v5680_v21 = vpop.f32.mrf.mxu0 }
 0x3b2   : > { %v5591_v13 = vadd.f32 %v5590_v14, %v5589_v32  ;;  %v8759_v43 = vadd.f32 %v5679_v6, %v8659_v57 }
 0x3b3   : > { %v5592_v44 = vpop.f32.mrf.mxu1  ;;  %v5681_v55 = vpop.f32.mrf.mxu0 }
 0x3b4   : > { %v8762_v30 = vadd.f32 %v5591_v13, %v8694_v49  ;;  %v5682_v50 = vadd.f32 %v5681_v55, %v5680_v21 }
 0x3b5   : > { %v5593_v48 = vpop.f32.mrf.mxu1  ;;  %v5683_v60 = vpop.f32.mrf.mxu0 }
 0x3b6   : > { %v5594_v36 = vadd.f32 %v5593_v48, %v5592_v44  ;;  %v8765_v17 = vadd.f32 %v5682_v50, %v8664_v12 }
 0x3b7   : > { %v5595_v61 = vpop.f32.mrf.mxu1  ;;  %4051 = vmatmul.mubr.bf16.gmra.mxu1 %v9604_v25  ;;  %v5684_v62 = vpop.f32.mrf.mxu0 }
 0x3b8   : > { %v8769_v3 = vadd.f32 %v5594_v36, %v8701_v8  ;;  %4058 = vmatprep.mubr.bf16.mxu1 %v8432_v16  ;;  %v5685_v57 = vadd.f32 %v5684_v62, %v5683_v60 }
 0x3b9   : > { %v5596_v45 = vpop.f32.mrf.mxu1  ;;  %v5686_v49 = vpop.f32.mrf.mxu0 }
 0x3ba   : > { %v5597_v42 = vadd.f32 %v5596_v45, %v5595_v61  ;;  %v8773_v2 = vadd.f32 %v5685_v57, %v8667_v40 }
 0x3bb   : > { %v5598_v24 = vpop.f32.mrf.mxu1  ;;  %v5687_v9 = vpop.f32.mrf.mxu0 }
 0x3bc   : > { %v8776_v12 = vadd.f32 %v8689_v47, %v5597_v42  ;;  %v5688_v53 = vadd.f32 %v5687_v9, %v5686_v49 }
 0x3bd   : > { %v5599_v25 = vpop.f32.mrf.mxu1  ;;  %v5689_v32 = vpop.f32.mrf.mxu0 }
 0x3be   : > { %v5600_v28 = vadd.f32 %v5599_v25, %v5598_v24  ;;  %v8779_v8 = vadd.f32 %v5688_v53, %v8672_v39 }
 0x3bf   : > { %v5601_v6 = vpop.f32.mrf.mxu1  ;;  %4059 = vmatmul.mubr.bf16.gmra.mxu1 %v9605_v33  ;;  %v5690_v14 = vpop.f32.mrf.mxu0 }
 0x3c0   : > { %v8783_v21 = vadd.f32 %v8699_v34, %v5600_v28  ;;  %4066 = vmatprep.mubr.bf16.mxu1 %v8444_v4  ;;  %v5691_v40 = vadd.f32 %v5690_v14, %v5689_v32 }
 0x3c1   : > { %v5602_v13 = vpop.f32.mrf.mxu1  ;;  %v5692_v47 = vpop.f32.mrf.mxu0 }
 0x3c2   : > { %v5603_v44 = vadd.f32 %v5602_v13, %v5601_v6  ;;  %v8787_v55 = vadd.f32 %v5691_v40, %v8675_v20 }
 0x3c3   : > { %v5604_v50 = vpop.f32.mrf.mxu1  ;;  %v5693_v48 = vpop.f32.mrf.mxu0 }
 0x3c4   : > { %v8790_v39 = vadd.f32 %v5603_v44, %v8710_v46  ;;  %v5694_v60 = vadd.f32 %v5693_v48, %v5692_v47 }
 0x3c5   : > { %v5605_v33 = vpop.f32.mrf.mxu1  ;;  %v5695_v36 = vpop.f32.mrf.mxu0 }
 0x3c6   : > { %v5606_v61 = vadd.f32 %v5605_v33, %v5604_v50  ;;  %v8793_v34 = vadd.f32 %v5694_v60, %v8682_v22 }
 0x3c7   : > { %v5607_v62 = vpop.f32.mrf.mxu1  ;;  %4067 = vmatmul.mubr.bf16.gmra.mxu1 %v8432_v16  ;;  %v5696_v57 = vpop.f32.mrf.mxu0 }
 0x3c8   : > { %v8797_v45 = vadd.f32 %v5606_v61, %v8717_v7  ;;  %4074 = vmatprep.mubr.bf16.mxu1 %v8449_v51  ;;  %v5697_v20 = vadd.f32 %v5696_v57, %v5695_v36 }
 0x3c9   : > { %v5608_v49 = vpop.f32.mrf.mxu1  ;;  %v5698_v46 = vpop.f32.mrf.mxu0 }
 0x3ca   : > { %v5609_v42 = vadd.f32 %v5608_v49, %v5607_v62  ;;  %v8801_v24 = vadd.f32 %v5697_v20, %v8687_v35 }
 0x3cb   : > { %v5610_v9 = vpop.f32.mrf.mxu1  ;;  %v5699_v53 = vpop.f32.mrf.mxu0 }
 0x3cc   : > { %v8804_v22 = vadd.f32 %v8705_v19, %v5609_v42  ;;  %v5700_v25 = vadd.f32 %v5699_v53, %v5698_v46 }
 0x3cd   : > { %v5611_v16 = vpop.f32.mrf.mxu1  ;;  %v5701_v32 = vpop.f32.mrf.mxu0 }
 0x3ce   : > { %v5612_v28 = vadd.f32 %v5611_v16, %v5610_v9  ;;  %v8807_v7 = vadd.f32 %v5700_v25, %v8696_v23 }
 0x3cf   : > { %v5613_v6 = vpop.f32.mrf.mxu1  ;;  %4075 = vmatmul.mubr.bf16.gmra.mxu1 %v8444_v4  ;;  %v5702_v14 = vpop.f32.mrf.mxu0 }
 0x3d0   : > { %v8811_v40 = vadd.f32 %v8715_v29, %v5612_v28  ;;  %4082 = vmatprep.mubr.bf16.mxu1 %v8456_v15  ;;  %v5703_v35 = vadd.f32 %v5702_v14, %v5701_v32 }
 0x3d1   : > { %v5614_v13 = vpop.f32.mrf.mxu1  ;;  %v5704_v19 = vpop.f32.mrf.mxu0 }
 0x3d2   : > { %v5615_v47 = vadd.f32 %v5614_v13, %v5613_v6  ;;  %v8815_v44 = vadd.f32 %v5703_v35, %v8703_v11 }
 0x3d3   : > { %v5616_v50 = vpop.f32.mrf.mxu1  ;;  %v5705_v48 = vpop.f32.mrf.mxu0 }
 0x3d4   : > { %v8818_v23 = vadd.f32 %v5615_v47, %v8726_v27  ;;  %v5706_v60 = vadd.f32 %v5705_v48, %v5704_v19 }
 0x3d5   : > { %v5617_v4 = vpop.f32.mrf.mxu1  ;;  %v5707_v33 = vpop.f32.mrf.mxu0 }
 0x3d6   : > { %v5618_v36 = vadd.f32 %v5617_v4, %v5616_v50  ;;  %v8821_v29 = vadd.f32 %v5706_v60, %v8712_v59 }
 0x3d7   : > { %v5619_v61 = vpop.f32.mrf.mxu1  ;;  %4083 = vmatmul.mubr.bf16.gmra.mxu1 %v8449_v51  ;;  %v5708_v62 = vpop.f32.mrf.mxu0 }
 0x3d8   : > { %v8825_v57 = vadd.f32 %v5618_v36, %v8733_v1  ;;  %4090 = vmatprep.mubr.bf16.mxu1 %v8461_v31  ;;  %v5709_v11 = vadd.f32 %v5708_v62, %v5707_v33 }
 0x3d9   : > { %v5620_v20 = vpop.f32.mrf.mxu1  ;;  %v5710_v27 = vpop.f32.mrf.mxu0 }
 0x3da   : > { %v5621_v49 = vadd.f32 %v5620_v20, %v5619_v61  ;;  %v8829_v46 = vadd.f32 %v5709_v11, %v8719_v38 }
 0x3db   : > { %v5622_v42 = vpop.f32.mrf.mxu1  ;;  %v5711_v9 = vpop.f32.mrf.mxu0 }
 0x3dc   : > { %v8832_v59 = vadd.f32 %v8721_v58, %v5621_v49  ;;  %v5712_v53 = vadd.f32 %v5711_v9, %v5710_v27 }
 0x3dd   : > { %v5623_v51 = vpop.f32.mrf.mxu1  ;;  %v5713_v25 = vpop.f32.mrf.mxu0 }
 0x3de   : > { %v5624_v16 = vadd.f32 %v5623_v51, %v5622_v42  ;;  %v8835_v1 = vadd.f32 %v5712_v53, %v8728_v0 }
 0x3df   : > { %v5625_v32 = vpop.f32.mrf.mxu1  ;;  %4091 = vmatmul.mubr.bf16.gmra.mxu1 %v8456_v15  ;;  %v5714_v28 = vpop.f32.mrf.mxu0 }
 0x3e0   : > { %v8839_v6 = vadd.f32 %v8731_v26, %v5624_v16  ;;  %4098 = vmatprep.mubr.bf16.mxu1 %v8467_v10  ;;  %v5715_v38 = vadd.f32 %v5714_v28, %v5713_v25 }
 0x3e1   : > { %v5626_v14 = vpop.f32.mrf.mxu1  ;;  %v5716_v58 = vpop.f32.mrf.mxu0 }
 0x3e2   : > { %v5627_v35 = vadd.f32 %v5626_v14, %v5625_v32  ;;  %v8843_v13 = vadd.f32 %v5715_v38, %v8735_v52 }
 0x3e3   : > { %v5628_v19 = vpop.f32.mrf.mxu1  ;;  %v5717_v47 = vpop.f32.mrf.mxu0 }
 0x3e4   : > { %v8846_v0 = vadd.f32 %v5627_v35, %v8741_v54  ;;  %v5718_v50 = vadd.f32 %v5717_v47, %v5716_v58 }
 0x3e5   : > { %v5629_v15 = vpop.f32.mrf.mxu1  ;;  %v5719_v48 = vpop.f32.mrf.mxu0 }
 0x3e6   : > { %v5630_v60 = vadd.f32 %v5629_v15, %v5628_v19  ;;  %v8849_v26 = vadd.f32 %v5718_v50, %v8743_v37 }
 0x3e7   : > { %v5631_v10 = vpop.f32.mrf.mxu1  ;;  %4099 = vmatmul.mubr.bf16.gmra.mxu1 %v8461_v31  ;;  %v5720_v4 = vpop.f32.mrf.mxu0 }
 0x3e8   : > { %v8853_v33 = vadd.f32 %v5630_v60, %v8748_v56  ;;  %v5721_v52 = vadd.f32 %v5720_v4, %v5719_v48 }
 0x3e9   : > { %v5632_v36 = vpop.f32.mrf.mxu1  ;;  %v5722_v61 = vpop.f32.mrf.mxu0 }
 0x3ea   : > { %v8855_v62 = vadd.f32 %v5632_v36, %v5631_v10  ;;  %v3443_v54 = vadd.f32 %v5721_v52, %v8751_v18 }
 0x3eb   : > { %v5634_v11 = vpop.f32.mrf.mxu1  ;;  %v5723_v20 = vpop.f32.mrf.mxu0 }
 0x3ec   : > { %v5724_v27 = vadd.f32 %v5723_v20, %v5722_v61 }
 0x3ed   : > { %v5635_v49 = vpop.f32.mrf.mxu1  ;;  %v5725_v37 = vpop.f32.mrf.mxu0 }
 0x3ee   : > { %v8858_v42 = vadd.f32 %v5635_v49, %v5634_v11  ;;  %v3446_v31 = vadd.f32 %v5724_v27, %v8755_v5 }
 0x3ef   : > { %v6143_v9 = vpop.f32.mrf.mxu1  ;;  %v5726_v53 = vpop.f32.mrf.mxu0 }
 0x3f0   : > { %v8862_v56 = vadd.f32 %v6143_v9, %v8773_v2  ;;  %v5727_v51 = vadd.f32 %v5726_v53, %v5725_v37 }
 0x3f1   : > { %v3547_v25 = vpop.f32.mrf.mxu1  ;;  %v5728_v16 = vpop.f32.mrf.mxu0 }
 0x3f2   : > { %v8865_v32 = vadd.f32 %v3547_v25, %v8759_v43  ;;  %v8868_v18 = vadd.f32 %v5727_v51, %v8762_v30 }
 0x3f3   : > { %v6144_v28 = vpop.f32.mrf.mxu1  ;;  %v5729_v38 = vpop.f32.mrf.mxu0 }
 0x3f4   : > { %v8871_v14 = vadd.f32 %v6144_v28, %v8779_v8  ;;  %v5730_v5 = vadd.f32 %v5729_v38, %v5728_v16 }
 0x3f5   : > { %v3550_v58 = vpop.f32.mrf.mxu1  ;;  %v5731_v35 = vpop.f32.mrf.mxu0 }
 0x3f6   : > { %v8874_v2 = vadd.f32 %v3550_v58, %v8765_v17  ;;  %v8877_v19 = vadd.f32 %v5730_v5, %v8769_v3 }
 0x3f7   : > { %v6147_v47 = vpop.f32.mrf.mxu1  ;;  %v5732_v43 = vpop.f32.mrf.mxu0 }
 0x3f8   : > { %v8880_v50 = vadd.f32 %v6147_v47, %v8801_v24  ;;  %v5733_v30 = vadd.f32 %v5732_v43, %v5731_v35 }
 0x3f9   : > { %v3563_v15 = vpop.f32.mrf.mxu1  ;;  %v5734_v48 = vpop.f32.mrf.mxu0 }
 0x3fa   : > { %v8883_v8 = vadd.f32 %v3563_v15, %v8787_v55  ;;  %v3459_v60 = vadd.f32 %v5733_v30, %v8776_v12 }
 0x3fb   : > { %v6148_v10 = vpop.f32.mrf.mxu1  ;;  %v5735_v4 = vpop.f32.mrf.mxu0 }
 0x3fc   : > { %v8887_v17 = vadd.f32 %v6148_v10, %v8807_v7  ;;  %v5736_v3 = vadd.f32 %v5735_v4, %v5734_v48 }
 0x3fd   : > { %v3566_v52 = vpop.f32.mrf.mxu1  ;;  %v5737_v36 = vpop.f32.mrf.mxu0 }
 0x3fe   : > { %v8890_v61 = vadd.f32 %v3566_v52, %v8793_v34  ;;  %v3462_v24 = vadd.f32 %v5736_v3, %v8783_v21 }
 0x3ff   : > { %v6151_v11 = vpop.f32.mrf.mxu1  ;;  %v5738_v20 = vpop.f32.mrf.mxu0 }
 0x400   : > { %v8894_v55 = vadd.f32 %v6151_v11, %v8829_v46  ;;  %v5739_v27 = vadd.f32 %v5738_v20, %v5737_v36 }
 0x401   : > { %v3579_v12 = vpop.f32.mrf.mxu1  ;;  %v5740_v49 = vpop.f32.mrf.mxu0 }
 0x402   : > { %v8897_v37 = vadd.f32 %v3579_v12, %v8815_v44  ;;  %v3467_v7 = vadd.f32 %v5739_v27, %v8790_v39 }
 0x403   : > { %v6152_v9 = vpop.f32.mrf.mxu1  ;;  %v5741_v53 = vpop.f32.mrf.mxu0 }
 0x404   : > { %v8901_v34 = vadd.f32 %v6152_v9, %v8835_v1  ;;  %v5742_v51 = vadd.f32 %v5741_v53, %v5740_v49 }
 0x405   : > { %v3582_v21 = vpop.f32.mrf.mxu1  ;;  %v5743_v25 = vpop.f32.mrf.mxu0 }
 0x406   : > { %v8904_v16 = vadd.f32 %v3582_v21, %v8821_v29  ;;  %v3470_v46 = vadd.f32 %v5742_v51, %v8797_v45 }
 0x407   : > { %v6155_v28 = vpop.f32.mrf.mxu1  ;;  %v5744_v38 = vpop.f32.mrf.mxu0 }
 0x408   : > { %v8907_v5 = vadd.f32 %v6155_v28, %v3443_v54  ;;  %v5745_v44 = vadd.f32 %v5744_v38, %v5743_v25 }
 0x409   : > { %v3595_v58 = vpop.f32.mrf.mxu1  ;;  %v5746_v39 = vpop.f32.mrf.mxu0 }
 0x40a   : > { %v8910_v35 = vadd.f32 %v3595_v58, %v8843_v13  ;;  %v3475_v1 = vadd.f32 %v5745_v44, %v8804_v22 }
 0x40b   : > { %v6156_v47 = vpop.f32.mrf.mxu1  ;;  %v5747_v43 = vpop.f32.mrf.mxu0 }
 0x40c   : > { %v8913_v30 = vadd.f32 %v6156_v47, %v3446_v31  ;;  %v5748_v29 = vadd.f32 %v5747_v43, %v5746_v39 }
 0x40d   : > { %v3598_v15 = vpop.f32.mrf.mxu1  ;;  %v5749_v48 = vpop.f32.mrf.mxu0 }
 0x40e   : > { %v8916_v45 = vadd.f32 %v3598_v15, %v8849_v26  ;;  %v3478_v54 = vadd.f32 %v5748_v29, %v8811_v40 }
 0x40f   : > { %v6159_v10 = vpop.f32.mrf.mxu1  ;;  %v5750_v4 = vpop.f32.mrf.mxu0 }
 0x410   : > { %v8919_v3 = vadd.f32 %v6159_v10, %v3459_v60  ;;  %v5751_v13 = vadd.f32 %v5750_v4, %v5749_v48 }
 0x411   : > { %v3611_v52 = vpop.f32.mrf.mxu1  ;;  %v5752_v36 = vpop.f32.mrf.mxu0 }
 0x412   : > { %9606 = vst [vmem:[#allocation8_spill] sm:$0xff] %v8919_v3  ;;  %v8922_v22 = vadd.f32 %v3611_v52, %v8868_v18  ;;  %v3483_v31 = vadd.f32 %v5751_v13, %v8818_v23 }
 0x413   : > { %v6160_v11 = vpop.f32.mrf.mxu1  ;;  %v5753_v20 = vpop.f32.mrf.mxu0 }
 0x414   : > { %v8925_v27 = vadd.f32 %v6160_v11, %v3462_v24  ;;  %v5754_v26 = vadd.f32 %v5753_v20, %v5752_v36 }
 0x415   : > { %v3614_v12 = vpop.f32.mrf.mxu1  ;;  %v5755_v49 = vpop.f32.mrf.mxu0 }
 0x416   : > { %9607 = vst [vmem:[#allocation10_spill] sm:$0xff] %v8925_v27  ;;  %v8928_v40 = vadd.f32 %v3614_v12, %v8877_v19  ;;  %v3486_v60 = vadd.f32 %v5754_v26, %v8825_v57  ;;  %v3202_v12 = vadd.f32 %v8737_v63, %v8855_v62 }
 0x417   : > { %v6163_v9 = vpop.f32.mrf.mxu1  ;;  %v5756_v53 = vpop.f32.mrf.mxu0 }
 0x418   : > { %9608 = vst [vmem:[#allocation6_spill] sm:$0xff] %v8928_v40  ;;  %v8931_v51 = vadd.f32 %v6163_v9, %v3475_v1  ;;  %v5757_v18 = vadd.f32 %v5756_v53, %v5755_v49 }
 0x419   : > { %v3627_v21 = vpop.f32.mrf.mxu1  ;;  %v5758_v25 = vpop.f32.mrf.mxu0 }
 0x41a   : > { %9609 = vst [vmem:[#allocation16_spill] sm:$0xff] %v8931_v51  ;;  %v8933_v23 = vadd.f32 %v3627_v21, %v3467_v7  ;;  %v3491_v24 = vadd.f32 %v5757_v18, %v8832_v59 }
 0x41b   : > { %v6164_v28 = vpop.f32.mrf.mxu1  ;;  %v5759_v38 = vpop.f32.mrf.mxu0 }
 0x41c   : > { %9610 = vst [vmem:[#allocation14_spill] sm:$0xff] %v8933_v23  ;;  %v8936_v44 = vadd.f32 %v6164_v28, %v3478_v54  ;;  %v5760_v58 = vadd.f32 %v5759_v38, %v5758_v25  ;;  %v3205_v25 = vadd.f32 %v8746_v41, %v8858_v42 }
 0x41d   : > { %v3630_v19 = vpop.f32.mrf.mxu1  ;;  %v5761_v39 = vpop.f32.mrf.mxu0 }
 0x41e   : > { %9611 = vst [vmem:[#allocation12_spill] sm:$0xff] %v8936_v44  ;;  %v8938_v47 = vadd.f32 %v3630_v19, %v3470_v46  ;;  %v3494_v57 = vadd.f32 %v5760_v58, %v8839_v6 }
 0x41f   : > { %v6167_v1 = vpop.f32.mrf.mxu1  ;;  %v5762_v43 = vpop.f32.mrf.mxu0 }
 0x420   : > { %9612 = vst [vmem:[#allocation15_spill] sm:$0xff] %v8938_v47  ;;  %v8941_v29 = vadd.f32 %v6167_v1, %v3491_v24  ;;  %v5763_v15 = vadd.f32 %v5762_v43, %v5761_v39 }
 0x421   : > { %v3643_v7 = vpop.f32.mrf.mxu1  ;;  %v5764_v48 = vpop.f32.mrf.mxu0 }
 0x422   : > { %9613 = vst [vmem:[#allocation18_spill] sm:$0xff] %v8941_v29  ;;  %v8943_v10 = vadd.f32 %v3643_v7, %v3483_v31  ;;  %v3499_v59 = vadd.f32 %v5763_v15, %v8846_v0 }
 0x423   : > { %v6168_v54 = vpop.f32.mrf.mxu1  ;;  %v5765_v4 = vpop.f32.mrf.mxu0 }
 0x424   : > { %9614 = vst [vmem:[#allocation13_spill] sm:$0xff] %v8943_v10  ;;  %v8946_v13 = vadd.f32 %v6168_v54, %v3494_v57  ;;  %v5766_v52 = vadd.f32 %v5765_v4, %v5764_v48 }
 0x425   : > { %v3646_v46 = vpop.f32.mrf.mxu1  ;;  %v5767_v36 = vpop.f32.mrf.mxu0 }
 0x426   : > { %9615 = vst [vmem:[#allocation20_spill] sm:$0xff] %v8946_v13  ;;  %v8948_v11 = vadd.f32 %v3646_v46, %v3486_v60  ;;  %v3502_v6 = vadd.f32 %v5766_v52, %v8853_v33 }
 0x427   : > { %v6171_v20 = vpop.f32.mrf.mxu1  ;;  %v5768_v26 = vpop.f32.mrf.mxu0 }
 0x428   : > { %9616 = vst [vmem:[#allocation17_spill] sm:$0xff] %v8948_v11  ;;  %v5769_v31 = vadd.f32 %v5768_v26, %v5767_v36 }
 0x429   : > { %v3659_v49 = vpop.f32.mrf.mxu1  ;;  %v5770_v9 = vpop.f32.mrf.mxu0 }
 0x42a   : > { %v3507_v0 = vadd.f32 %v5769_v31, %v3202_v12  ;;  %v8953_v53 = vadd.f32 %v3659_v49, %v3499_v59 }
 0x42b   : > { %v6172_v18 = vpop.f32.mrf.mxu1  ;;  %v5771_v21 = vpop.f32.mrf.mxu0 }
 0x42c   : > { %9617 = vst [vmem:[#allocation19_spill] sm:$0xff] %v8953_v53  ;;  %v8957_v60 = vadd.f32 %v6171_v20, %v3507_v0  ;;  %v5772_v24 = vadd.f32 %v5771_v21, %v5770_v9 }
 0x42d   : > { %v3662_v33 = vpop.f32.mrf.mxu1  ;;  %v6191_v28 = vpop.f32.mrf.mxu0 }
 0x42e   : > { %9618 = vst [vmem:[#allocation22_spill] sm:$0xff] %v8957_v60  ;;  %v3510_v38 = vadd.f32 %v5772_v24, %v3205_v25  ;;  %v8959_v58 = vadd.f32 %v3662_v33, %v3502_v6 }
 0x42f   : > { %v5813_v63 = vpop.f32.mrf.mxu1  ;;  %v4141_v62 = vpop.f32.mrf.mxu0 }
 0x430   : > { %9619 = vst [vmem:[#allocation21_spill] sm:$0xff] %v8959_v58  ;;  %v8961_v19 = vadd.f32 %v6172_v18, %v3510_v38 }
 0x431   : > { %v5814_v39 = vpop.f32.mrf.mxu1  ;;  %v6192_v43 = vpop.f32.mrf.mxu0 }
 0x432   : > { %9620 = vst [vmem:[#allocation23_spill] sm:$0xff] %v8961_v19  ;;  %v5815_v57 = vadd.f32 %v5814_v39, %v5813_v63 }
 0x433   : > { %v5816_v1 = vpop.f32.mrf.mxu1  ;;  %v4144_v42 = vpop.f32.mrf.mxu0 }
 0x434   : > { %v4142_v15 = vadd.f32 %v5815_v57, %v4141_v62 }
 0x435   : > { %v5817_v7 = vpop.f32.mrf.mxu1  ;;  %v6195_v54 = vpop.f32.mrf.mxu0 }
 0x436   : > { %v8964_v41 = vadd.f32 %v4142_v15, %v8865_v32  ;;  %v5818_v15 = vadd.f32 %v5817_v7, %v5816_v1 }
 0x437   : > { %v5819_v48 = vpop.f32.mrf.mxu1  ;;  %v4157_v46 = vpop.f32.mrf.mxu0 }
 0x438   : > { %v4145_v13 = vadd.f32 %v5818_v15, %v4144_v42 }
 0x439   : > { %v5820_v59 = vpop.f32.mrf.mxu1  ;;  %v6196_v20 = vpop.f32.mrf.mxu0 }
 0x43a   : > { %v5821_v58 = vadd.f32 %v5820_v59, %v5819_v48  ;;  %v8971_v23 = vadd.f32 %v4145_v13, %v8874_v2 }
 0x43b   : > { %v5822_v4 = vpop.f32.mrf.mxu1  ;;  %v4160_v31 = vpop.f32.mrf.mxu0 }
 0x43c   : > { %v4150_v44 = vadd.f32 %v6191_v28, %v5821_v58 }
 0x43d   : > { %v5823_v52 = vpop.f32.mrf.mxu1  ;;  %v8966_v0 = vpop.f32.mrf.mxu0 }
 0x43e   : > { %v5824_v29 = vadd.f32 %v5823_v52, %v5822_v4  ;;  %v8976_v7 = vadd.f32 %v4150_v44, %v8862_v56  ;;  %v4300_v4 = vadd.f32 %v8971_v23, %v8964_v41 }
 0x43f   : > { %v5825_v36 = vpop.f32.mrf.mxu1  ;;  %v4173_v21 = vpop.f32.mrf.mxu0 }
 0x440   : > { %v4153_v27 = vadd.f32 %v6192_v43, %v5824_v29  ;;  %v4301_v43 = vadd.f32 %v4300_v4, %v8976_v7 }
 0x441   : > { %v5826_v6 = vpop.f32.mrf.mxu1  ;;  %v6200_v33 = vpop.f32.mrf.mxu0 }
 0x442   : > { %v5827_v51 = vadd.f32 %v5826_v6, %v5825_v36  ;;  %v8981_v28 = vadd.f32 %v4153_v27, %v8871_v14 }
 0x443   : > { %v5828_v26 = vpop.f32.mrf.mxu1  ;;  %v4176_v62 = vpop.f32.mrf.mxu0 }
 0x444   : > { %v4158_v48 = vadd.f32 %v5827_v51, %v4157_v46  ;;  %v4302_v46 = vadd.f32 %v4301_v43, %v8981_v28 }
 0x445   : > { %v5829_v12 = vpop.f32.mrf.mxu1  ;;  %v8968_v19 = vpop.f32.mrf.mxu0 }
 0x446   : > { %v5830_v3 = vadd.f32 %v5829_v12, %v5828_v26  ;;  %v8985_v52 = vadd.f32 %v4158_v48, %v8883_v8 }
 0x447   : > { %v5831_v49 = vpop.f32.mrf.mxu1  ;;  %v4189_v11 = vpop.f32.mrf.mxu0 }
 0x448   : > { %v4161_v58 = vadd.f32 %v5830_v3, %v4160_v31  ;;  %v4303_v26 = vadd.f32 %v4302_v46, %v8985_v52 }
 0x449   : > { %v5832_v9 = vpop.f32.mrf.mxu1  ;;  %v8973_v40 = vpop.f32.mrf.mxu0 }
 0x44a   : > { %v5833_v59 = vadd.f32 %v5832_v9, %v5831_v49  ;;  %v8989_v36 = vadd.f32 %v4161_v58, %v8890_v61 }
 0x44b   : > { %v5834_v18 = vpop.f32.mrf.mxu1  ;;  %v4192_v13 = vpop.f32.mrf.mxu0 }
 0x44c   : > { %v4166_v56 = vadd.f32 %v6195_v54, %v5833_v59  ;;  %v4304_v54 = vadd.f32 %v4303_v26, %v8989_v36 }
 0x44d   : > { %v5835_v32 = vpop.f32.mrf.mxu1  ;;  %v6207_v27 = vpop.f32.mrf.mxu0 }
 0x44e   : > { %v5836_v2 = vadd.f32 %v5835_v32, %v5834_v18  ;;  %v8993_v12 = vadd.f32 %v4166_v56, %v8880_v50 }
 0x44f   : > { %v5837_v25 = vpop.f32.mrf.mxu1  ;;  %v4205_v32 = vpop.f32.mrf.mxu0 }
 0x450   : > { %v4169_v6 = vadd.f32 %v6196_v20, %v5836_v2 }
 0x451   : > { %v5838_v24 = vpop.f32.mrf.mxu1 }
 0x452   : > { %v5839_v44 = vadd.f32 %v5838_v24, %v5837_v25  ;;  %v8997_v9 = vadd.f32 %v4169_v6, %v8887_v17  ;;  %v4305_v25 = vadd.f32 %v4304_v54, %v8993_v12 }
 0x453   : > { %v5840_v38 = vpop.f32.mrf.mxu1 }
 0x454   : > { %v4174_v31 = vadd.f32 %v5839_v44, %v4173_v21 }
 0x455   : > { %v5841_v63 = vpop.f32.mrf.mxu1 }
 0x456   : > { %v5842_v14 = vadd.f32 %v5841_v63, %v5840_v38  ;;  %v9001_v24 = vadd.f32 %v4174_v31, %v8897_v37  ;;  %v4306_v63 = vadd.f32 %v4305_v25, %v8997_v9 }
 0x457   : > { %v5843_v39 = vpop.f32.mrf.mxu1 }
 0x458   : > { %v4177_v18 = vadd.f32 %v5842_v14, %v4176_v62  ;;  %v6208_v62 = vpop.f32.mrf.mxu0 }
 0x459   : > { %v5844_v57 = vpop.f32.mrf.mxu1 }
 0x45a   : > { %v5845_v8 = vadd.f32 %v5844_v57, %v5843_v39  ;;  %v9006_v39 = vadd.f32 %v4177_v18, %v8904_v16  ;;  %v4208_v4 = vpop.f32.mrf.mxu0  ;;  %v9621_v18 = vld [vmem:[#allocation6_spill] sm:$0xff] }
 0x45b   : > { %v5846_v60 = vpop.f32.mrf.mxu1 }
 0x45c   : > { %v4182_v50 = vadd.f32 %v8966_v0, %v5845_v8  ;;  %v6211_v43 = vpop.f32.mrf.mxu0 }
 0x45d   : > { %v5847_v53 = vpop.f32.mrf.mxu1 }
 0x45e   : > { %v5848_v61 = vadd.f32 %v5847_v53, %v5846_v60  ;;  %v4307_v60 = vadd.f32 %v4306_v63, %v9001_v24  ;;  %v9010_v15 = vadd.f32 %v4182_v50, %v8894_v55  ;;  %v4221_v26 = vpop.f32.mrf.mxu0 }
 0x45f   : > { %v5849_v10 = vpop.f32.mrf.mxu1 }
 0x460   : > { %v4185_v17 = vadd.f32 %v6200_v33, %v5848_v61 }
 0x461   : > { %v5850_v47 = vpop.f32.mrf.mxu1 }
 0x462   : > { %v5851_v38 = vadd.f32 %v5850_v47, %v5849_v10  ;;  %v4308_v47 = vadd.f32 %v4307_v60, %v9006_v39  ;;  %v9014_v10 = vadd.f32 %v4185_v17, %v8901_v34 }
 0x463   : > { %v5852_v1 = vpop.f32.mrf.mxu1 }
 0x464   : > { %v4190_v37 = vadd.f32 %v5851_v38, %v4189_v11  ;;  %v9622_v38 = vld [vmem:[#allocation8_spill] sm:$0xff] }
 0x465   : > { %v5853_v42 = vpop.f32.mrf.mxu1 }
 0x466   : > { %v5854_v57 = vadd.f32 %v5853_v42, %v5852_v1  ;;  %v4309_v1 = vadd.f32 %v4308_v47, %v9010_v15  ;;  %v9018_v42 = vadd.f32 %v4190_v37, %v8910_v35 }
 0x467   : > { %v5855_v29 = vpop.f32.mrf.mxu1 }
 0x468   : > { %v4193_v0 = vadd.f32 %v5854_v57, %v4192_v13  ;;  %v4310_v2 = vadd.f32 %v4309_v1, %v9014_v10 }
 0x469   : > { %v5856_v51 = vpop.f32.mrf.mxu1 }
 0x46a   : > { %v5857_v48 = vadd.f32 %v5856_v51, %v5855_v29  ;;  %v9023_v29 = vadd.f32 %v4193_v0, %v8916_v45  ;;  %v4311_v44 = vadd.f32 %v4310_v2, %v9018_v42 }
 0x46b   : > { %v5858_v3 = vpop.f32.mrf.mxu1 }
 0x46c   : > { %v4198_v55 = vadd.f32 %v8968_v19, %v5857_v48  ;;  %v4312_v6 = vadd.f32 %v4311_v44, %v9023_v29  ;;  %v9624_v48 = vld [vmem:[#allocation14_spill] sm:$0xff] }
 0x46d   : > { %v5859_v49 = vpop.f32.mrf.mxu1 }
 0x46e   : > { %v5860_v16 = vadd.f32 %v5859_v49, %v5858_v3  ;;  %v9028_v51 = vadd.f32 %v4198_v55, %v8907_v5 }
 0x46f   : > { %v5861_v20 = vpop.f32.mrf.mxu1 }
 0x470   : > { %v4201_v34 = vadd.f32 %v8973_v40, %v5860_v16  ;;  %v4313_v31 = vadd.f32 %v4312_v6, %v9028_v51 }
 0x471   : > { %v5862_v21 = vpop.f32.mrf.mxu1 }
 0x472   : > { %v5863_v58 = vadd.f32 %v5862_v21, %v5861_v20  ;;  %v9032_v14 = vadd.f32 %v4201_v34, %v8913_v30  ;;  %v6212_v30 = vpop.f32.mrf.mxu0 }
 0x473   : > { %v5864_v53 = vpop.f32.mrf.mxu1 }
 0x474   : > { %v4206_v35 = vadd.f32 %v5863_v58, %v4205_v32  ;;  %v4314_v54 = vadd.f32 %v4313_v31, %v9032_v14  ;;  %v4224_v60 = vpop.f32.mrf.mxu0 }
 0x475   : > { %v5865_v59 = vpop.f32.mrf.mxu1 }
 0x476   : > { %v5866_v13 = vadd.f32 %v5865_v59, %v5864_v53  ;;  %v9036_v8 = vadd.f32 %v4206_v35, %v8922_v22  ;;  %v6215_v55 = vpop.f32.mrf.mxu0 }
 0x477   : > { %v5867_v33 = vpop.f32.mrf.mxu1 }
 0x478   : > { %v4209_v45 = vadd.f32 %v5866_v13, %v4208_v4  ;;  %v4315_v50 = vadd.f32 %v4314_v54, %v9036_v8  ;;  %v9625_v4 = vld [vmem:[#allocation15_spill] sm:$0xff] }
 0x479   : > { %v5868_v11 = vpop.f32.mrf.mxu1 }
 0x47a   : > { %v5869_v46 = vadd.f32 %v5868_v11, %v5867_v33  ;;  %v9040_v61 = vadd.f32 %v4209_v45, %v9621_v18 }
 0x47b   : > { %v5870_v56 = vpop.f32.mrf.mxu1 }
 0x47c   : > { %v4214_v49 = vadd.f32 %v6207_v27, %v5869_v46  ;;  %v4316_v22 = vadd.f32 %v4315_v50, %v9040_v61  ;;  %v9623_v27 = vld [vmem:[#allocation10_spill] sm:$0xff]  ;;  %v4237_v46 = vpop.f32.mrf.mxu0 }
 0x47d   : > { %v5871_v19 = vpop.f32.mrf.mxu1 }
 0x47e   : > { %v5872_v3 = vadd.f32 %v5871_v19, %v5870_v56  ;;  %v9044_v21 = vadd.f32 %v4214_v49, %v9622_v38  ;;  %v9626_v56 = vld [vmem:[#allocation16_spill] sm:$0xff]  ;;  %v6216_v49 = vpop.f32.mrf.mxu0 }
 0x47f   : > { %v5873_v40 = vpop.f32.mrf.mxu1 }
 0x480   : > { %v4217_v32 = vadd.f32 %v6208_v62, %v5872_v3  ;;  %v4317_v62 = vadd.f32 %v4316_v22, %v9044_v21  ;;  %v4240_v50 = vpop.f32.mrf.mxu0 }
 0x481   : > { %v5874_v5 = vpop.f32.mrf.mxu1 }
 0x482   : > { %v5875_v20 = vadd.f32 %v5874_v5, %v5873_v40  ;;  %v9048_v57 = vadd.f32 %v4217_v32, %v9623_v27  ;;  %v9628_v32 = vld [vmem:[#allocation13_spill] sm:$0xff] }
 0x483   : > { %v5876_v25 = vpop.f32.mrf.mxu1 }
 0x484   : > { %v4222_v63 = vadd.f32 %v5875_v20, %v4221_v26  ;;  %v4318_v16 = vadd.f32 %v4317_v62, %v9048_v57  ;;  %v9627_v26 = vld [vmem:[#allocation12_spill] sm:$0xff] }
 0x485   : > { %v5877_v17 = vpop.f32.mrf.mxu1 }
 0x486   : > { %v5878_v53 = vadd.f32 %v5877_v17, %v5876_v25  ;;  %v9052_v59 = vadd.f32 %v4222_v63, %v9624_v48 }
 0x487   : > { %v5879_v37 = vpop.f32.mrf.mxu1 }
 0x488   : > { %v4225_v47 = vadd.f32 %v5878_v53, %v4224_v60  ;;  %v4319_v11 = vadd.f32 %v4318_v16, %v9052_v59  ;;  %v6219_v60 = vpop.f32.mrf.mxu0 }
 0x489   : > { %v5880_v0 = vpop.f32.mrf.mxu1 }
 0x48a   : > { %v9056_v33 = vadd.f32 %v4225_v47, %v9625_v4  ;;  %v5881_v1 = vadd.f32 %v5880_v0, %v5879_v37  ;;  %v9630_v0 = vld [vmem:[#allocation18_spill] sm:$0xff] }
 0x48b   : > { %v5882_v58 = vpop.f32.mrf.mxu1 }
 0x48c   : > { %v4230_v2 = vadd.f32 %v6211_v43, %v5881_v1  ;;  %v4320_v13 = vadd.f32 %v4319_v11, %v9056_v33  ;;  %v4253_v1 = vpop.f32.mrf.mxu0 }
 0x48d   : > { %v5883_v34 = vpop.f32.mrf.mxu1 }
 0x48e   : > { %v9061_v44 = vadd.f32 %v4230_v2, %v9626_v56  ;;  %v5884_v35 = vadd.f32 %v5883_v34, %v5882_v58 }
 0x48f   : > { %v5885_v19 = vpop.f32.mrf.mxu1 }
 0x490   : > { %v4321_v6 = vadd.f32 %v4320_v13, %v9061_v44  ;;  %v4233_v45 = vadd.f32 %v6212_v30, %v5884_v35  ;;  %v9629_v30 = vld [vmem:[#allocation17_spill] sm:$0xff]  ;;  %v9631_v13 = vld [vmem:[#allocation20_spill] sm:$0xff] }
 0x491   : > { %v5886_v3 = vpop.f32.mrf.mxu1 }
 0x492   : > { %v9065_v40 = vadd.f32 %v4233_v45, %v9627_v26  ;;  %v5887_v31 = vadd.f32 %v5886_v3, %v5885_v19  ;;  %v9632_v26 = vld [vmem:[#allocation19_spill] sm:$0xff] }
 0x493   : > { %v5888_v5 = vpop.f32.mrf.mxu1 }
 0x494   : > { %v4322_v43 = vadd.f32 %v4321_v6, %v9065_v40  ;;  %v4238_v54 = vadd.f32 %v5887_v31, %v4237_v46  ;;  %v6220_v46 = vpop.f32.mrf.mxu0 }
 0x495   : > { %v5889_v18 = vpop.f32.mrf.mxu1 }
 0x496   : > { %v4292_v20 = vadd.f32 %v4238_v54, %v9628_v32  ;;  %v5890_v25 = vadd.f32 %v5889_v18, %v5888_v5  ;;  %v4256_v5 = vpop.f32.mrf.mxu0 }
 0x497   : > { %v5891_v38 = vpop.f32.mrf.mxu1 }
 0x498   : > { %v4323_v63 = vadd.f32 %v4322_v43, %v4292_v20  ;;  %v4241_v17 = vadd.f32 %v5890_v25, %v4240_v50  ;;  %v9633_v25 = vld [vmem:[#allocation21_spill] sm:$0xff] }
 0x499   : > { %v5892_v22 = vpop.f32.mrf.mxu1 }
 0x49a   : > { %v4293_v27 = vadd.f32 %v4241_v17, %v9629_v30  ;;  %v5893_v53 = vadd.f32 %v5892_v22, %v5891_v38  ;;  %v9634_v30 = vld [vmem:[#allocation22_spill] sm:$0xff] }
 0x49b   : > { %v5894_v37 = vpop.f32.mrf.mxu1 }
 0x49c   : > { %v4324_v62 = vadd.f32 %v4323_v63, %v4293_v27  ;;  %v4246_v48 = vadd.f32 %v6215_v55, %v5893_v53 }
 0x49d   : > { %v5895_v47 = vpop.f32.mrf.mxu1 }
 0x49e   : > { %v4294_v16 = vadd.f32 %v4246_v48, %v9630_v0  ;;  %v5896_v4 = vadd.f32 %v5895_v47, %v5894_v37  ;;  %v9635_v47 = vld [vmem:[#allocation23_spill] sm:$0xff] }
 0x49f   : > { %v5897_v58 = vpop.f32.mrf.mxu1 }
 0x4a0   : > { %v4325_v11 = vadd.f32 %v4324_v62, %v4294_v16  ;;  %v4249_v2 = vadd.f32 %v6216_v49, %v5896_v4 }
 0x4a1   : > { %v5898_v34 = vpop.f32.mrf.mxu1 }
 0x4a2   : > { %v4295_v56 = vadd.f32 %v4249_v2, %v9631_v13  ;;  %v5899_v35 = vadd.f32 %v5898_v34, %v5897_v58 }
 0x4a3   : > { %v5900_v19 = vpop.f32.mrf.mxu1 }
 0x4a4   : > { %v4326_v6 = vadd.f32 %v4325_v11, %v4295_v56  ;;  %v4254_v45 = vadd.f32 %v5899_v35, %v4253_v1 }
 0x4a5   : > { %v5901_v3 = vpop.f32.mrf.mxu1 }
 0x4a6   : > { %v4296_v31 = vadd.f32 %v4254_v45, %v9632_v26  ;;  %v5902_v55 = vadd.f32 %v5901_v3, %v5900_v19 }
 0x4a7   : > { %v5903_v43 = vpop.f32.mrf.mxu1 }
 0x4a8   : > { %v4327_v54 = vadd.f32 %v4326_v6, %v4296_v31  ;;  %v4257_v18 = vadd.f32 %v5902_v55, %v4256_v5 }
 0x4a9   : > { %v5904_v32 = vpop.f32.mrf.mxu1 }
 0x4aa   : > { %v4297_v50 = vadd.f32 %v4257_v18, %v9633_v25  ;;  %v5905_v49 = vadd.f32 %v5904_v32, %v5903_v43 }
 0x4ab   : > { %v5906_v38 = vpop.f32.mrf.mxu1 }
 0x4ac   : > { %v4328_v63 = vadd.f32 %v4327_v54, %v4297_v50  ;;  %v4262_v17 = vadd.f32 %v6219_v60, %v5905_v49 }
 0x4ad   : > { %v5907_v22 = vpop.f32.mrf.mxu1 }
 0x4ae   : > { %v4298_v53 = vadd.f32 %v4262_v17, %v9634_v30  ;;  %v5908_v37 = vadd.f32 %v5907_v22, %v5906_v38 }
 0x4b0   : > { %v4329_v62 = vadd.f32 %v4328_v63, %v4298_v53  ;;  %v4265_v48 = vadd.f32 %v6220_v46, %v5908_v37 }
 0x4b2   : > { %v4299_v0 = vadd.f32 %v4265_v48, %v9635_v47 }
 0x4b4   : > { %v4330_v4 = vadd.f32 %v4329_v62, %v4299_v0 }
 0x4b6   : > { %v4331_v1 = vrot.slane %v4330_v4, 4 }
 0x4b8   : > { %v4332_v58 = vadd.f32 %v4331_v1, %v4330_v4 }
 0x4ba   : > { %v4333_v11 = vrot.slane %v4332_v58, 2 }
 0x4bc   : > { %v4334_v2 = vadd.f32 %v4333_v11, %v4332_v58 }
 0x4be   : > { %v4335_v34 = vrot.slane %v4334_v2, 1 }
 0x4c0   : > { %v4336_v13 = vadd.f32 %v4335_v34, %v4334_v2 }
 0x4c2   : > { %v9076_v35 = vmul.f32 0.00390625, %v4336_v13 }
 0x4c4   : > { %v9080_v60 = vsub.f32 %v9056_v33, %v9076_v35  ;;  %v9084_v19 = vsub.f32 %v9061_v44, %v9076_v35  ;;  %v9088_v46 = vsub.f32 %v9065_v40, %v9076_v35  ;;  %v9091_v6 = vsub.f32 %v4292_v20, %v9076_v35 }
 0x4c5   : > { %v9094_v45 = vsub.f32 %v4293_v27, %v9076_v35  ;;  %v9097_v3 = vsub.f32 %v4294_v16, %v9076_v35  ;;  %v9100_v33 = vsub.f32 %v4295_v56, %v9076_v35  ;;  %v9103_v26 = vsub.f32 %v4296_v31, %v9076_v35 }
 0x4c6   : > { %v9106_v44 = vsub.f32 %v4297_v50, %v9076_v35  ;;  %v9109_v40 = vsub.f32 %v4298_v53, %v9076_v35  ;;  %v9112_v20 = vsub.f32 %v4299_v0, %v9076_v35  ;;  %v9116_v27 = vsub.f32 %v8964_v41, %v9076_v35 }
 0x4c7   : > { %v9120_v16 = vsub.f32 %v8971_v23, %v9076_v35  ;;  %v9124_v56 = vsub.f32 %v8976_v7, %v9076_v35  ;;  %v9132_v5 = vsub.f32 %v8981_v28, %v9076_v35  ;;  %v9136_v41 = vsub.f32 %v8985_v52, %v9076_v35 }
 0x4c8   : > { %v4370_v31 = vmul.f32 %v9116_v27, %v9116_v27  ;;  %v9142_v7 = vsub.f32 %v8989_v36, %v9076_v35  ;;  %v9148_v28 = vsub.f32 %v8993_v12, %v9076_v35  ;;  %v9154_v25 = vsub.f32 %v8997_v9, %v9076_v35 }
 0x4c9   : > { %v4371_v55 = vmul.f32 %v9120_v16, %v9120_v16  ;;  %v4372_v23 = vmul.f32 %v9124_v56, %v9124_v56  ;;  %v4373_v54 = vmul.f32 %v9132_v5, %v9132_v5  ;;  %v4374_v52 = vmul.f32 %v9136_v41, %v9136_v41 }
 0x4ca   : > { %v4375_v36 = vmul.f32 %v9142_v7, %v9142_v7  ;;  %v9160_v49 = vsub.f32 %v9001_v24, %v9076_v35  ;;  %v4376_v12 = vmul.f32 %v9148_v28, %v9148_v28  ;;  %v9166_v63 = vsub.f32 %v9006_v39, %v9076_v35 }
 0x4cb   : > { %v4402_v43 = vadd.f32 %v4371_v55, %v4370_v31  ;;  %v4377_v9 = vmul.f32 %v9154_v25, %v9154_v25  ;;  %v9172_v22 = vsub.f32 %v9010_v15, %v9076_v35  ;;  %v9178_v53 = vsub.f32 %v9014_v10, %v9076_v35 }
 0x4cc   : > { %v4378_v24 = vmul.f32 %v9160_v49, %v9160_v49  ;;  %v4379_v39 = vmul.f32 %v9166_v63, %v9166_v63  ;;  %v9184_v62 = vsub.f32 %v9018_v42, %v9076_v35  ;;  %v9190_v47 = vsub.f32 %v9023_v29, %v9076_v35 }
 0x4cd   : > { %v4403_v18 = vadd.f32 %v4402_v43, %v4372_v23  ;;  %v4380_v15 = vmul.f32 %v9172_v22, %v9172_v22  ;;  %v4381_v10 = vmul.f32 %v9178_v53, %v9178_v53  ;;  %v9196_v4 = vsub.f32 %v9028_v51, %v9076_v35 }
 0x4ce   : > { %v4382_v42 = vmul.f32 %v9184_v62, %v9184_v62  ;;  %v9202_v58 = vsub.f32 %v9032_v14, %v9076_v35  ;;  %v4383_v29 = vmul.f32 %v9190_v47, %v9190_v47  ;;  %v9208_v2 = vsub.f32 %v9036_v8, %v9076_v35 }
 0x4cf   : > { %v4404_v32 = vadd.f32 %v4403_v18, %v4373_v54  ;;  %v4384_v51 = vmul.f32 %v9196_v4, %v9196_v4  ;;  %v9214_v13 = vsub.f32 %v9040_v61, %v9076_v35  ;;  %v9220_v55 = vsub.f32 %v9044_v21, %v9076_v35 }
 0x4d0   : > { %v4385_v14 = vmul.f32 %v9202_v58, %v9202_v58  ;;  %v4386_v8 = vmul.f32 %v9208_v2, %v9208_v2  ;;  %v9226_v43 = vsub.f32 %v9048_v57, %v9076_v35  ;;  %v9232_v18 = vsub.f32 %v9052_v59, %v9076_v35 }
 0x4d1   : > { %v4405_v50 = vadd.f32 %v4404_v32, %v4374_v52  ;;  %v4387_v61 = vmul.f32 %v9214_v13, %v9214_v13  ;;  %v4388_v21 = vmul.f32 %v9220_v55, %v9220_v55  ;;  %v4392_v59 = vmul.f32 %v9084_v19, %v9084_v19 }
 0x4d2   : > { %v4389_v32 = vmul.f32 %v9226_v43, %v9226_v43  ;;  %v4390_v57 = vmul.f32 %v9232_v18, %v9232_v18 }
 0x4d3   : > { %v4406_v38 = vadd.f32 %v4405_v50, %v4375_v36 }
 0x4d5   : > { %v4407_v17 = vadd.f32 %v4406_v38, %v4376_v12  ;;  %v4391_v12 = vmul.f32 %v9080_v60, %v9080_v60 }
 0x4d7   : > { %v4408_v30 = vadd.f32 %v4407_v17, %v4377_v9  ;;  %v4393_v9 = vmul.f32 %v9088_v46, %v9088_v46 }
 0x4d9   : > { %v4409_v37 = vadd.f32 %v4408_v30, %v4378_v24  ;;  %v4394_v24 = vmul.f32 %v9091_v6, %v9091_v6 }
 0x4db   : > { %v4410_v48 = vadd.f32 %v4409_v37, %v4379_v39  ;;  %v4395_v39 = vmul.f32 %v9094_v45, %v9094_v45 }
 0x4dd   : > { %v4411_v0 = vadd.f32 %v4410_v48, %v4380_v15  ;;  %v4396_v15 = vmul.f32 %v9097_v3, %v9097_v3 }
 0x4df   : > { %v4412_v1 = vadd.f32 %v4411_v0, %v4381_v10  ;;  %v4397_v10 = vmul.f32 %v9100_v33, %v9100_v33 }
 0x4e1   : > { %v4413_v11 = vadd.f32 %v4412_v1, %v4382_v42  ;;  %v4398_v42 = vmul.f32 %v9103_v26, %v9103_v26 }
 0x4e3   : > { %v4414_v34 = vadd.f32 %v4413_v11, %v4383_v29  ;;  %v4399_v29 = vmul.f32 %v9106_v44, %v9106_v44 }
 0x4e5   : > { %v4415_v31 = vadd.f32 %v4414_v34, %v4384_v51  ;;  %v4400_v51 = vmul.f32 %v9109_v40, %v9109_v40 }
 0x4e7   : > { %v4416_v23 = vadd.f32 %v4415_v31, %v4385_v14  ;;  %v4401_v14 = vmul.f32 %v9112_v20, %v9112_v20 }
 0x4e9   : > { %v4417_v54 = vadd.f32 %v4416_v23, %v4386_v8 }
 0x4eb   : > { %v4418_v52 = vadd.f32 %v4417_v54, %v4387_v61 }
 0x4ed   : > { %v4419_v36 = vadd.f32 %v4418_v52, %v4388_v21 }
 0x4ef   : > { %v4420_v50 = vadd.f32 %v4419_v36, %v4389_v32 }
 0x4f1   : > { %v4421_v38 = vadd.f32 %v4420_v50, %v4390_v57  ;;  %v9263_v50 = vld [vmem:[%s6581_s5] sm:$0xf] }
 0x4f3   : > { %v4422_v35 = vadd.f32 %v4421_v38, %v4391_v12  ;;  %v9267_v38 = vld [vmem:[%s6581_s5 + $0x4] sm:$0xf] }
 0x4f5   : > { %v4423_v17 = vadd.f32 %v4422_v35, %v4392_v59  ;;  %v9271_v35 = vld [vmem:[%s6581_s5 + $0x8] sm:$0xf] }
 0x4f7   : > { %v4424_v30 = vadd.f32 %v4423_v17, %v4393_v9  ;;  %v9275_v17 = vld [vmem:[%s6581_s5 + $0xc] sm:$0xf]  ;;  %v9363_v9 = vld [vmem:[%s6581_s5 + $0x64] sm:$0xf] }
 0x4f8   : > { %9643 = vst [vmem:[#allocation4_spill] sm:$0xff] %v9363_v9  ;;  %v9387_v9 = vld [vmem:[%s6581_s5 + $0x7c] sm:$0xf] }
 0x4f9   : > { %v4425_v37 = vadd.f32 %v4424_v30, %v4394_v24  ;;  %v9279_v30 = vld [vmem:[%s6581_s5 + $0x10] sm:$0xf]  ;;  %9649 = vst [vmem:[#allocation14_spill] sm:$0xff] %v9387_v9 }
 0x4fb   : > { %v4426_v48 = vadd.f32 %v4425_v37, %v4395_v39  ;;  %v9283_v37 = vld [vmem:[%s6581_s5 + $0x14] sm:$0xf] }
 0x4fd   : > { %v4427_v0 = vadd.f32 %v4426_v48, %v4396_v15  ;;  %v9287_v48 = vld [vmem:[%s6581_s5 + $0x18] sm:$0xf]  ;;  %v9367_v15 = vld [vmem:[%s6581_s5 + $0x68] sm:$0xf] }
 0x4fe   : > { %9644 = vst [vmem:[#allocation11_spill] sm:$0xff] %v9367_v15 }
 0x4ff   : > { %v4428_v1 = vadd.f32 %v4427_v0, %v4397_v10  ;;  %v9291_v0 = vld [vmem:[%s6581_s5 + $0x1c] sm:$0xf] }
 0x501   : > { %v4429_v11 = vadd.f32 %v4428_v1, %v4398_v42  ;;  %v9295_v1 = vld [vmem:[%s6581_s5 + $0x20] sm:$0xf]  ;;  %v9343_v42 = vld [vmem:[%s6581_s5 + $0x50] sm:$0xf] }
 0x502   : > { %9638 = vst [vmem:[#allocation3_spill] sm:$0xff] %v9343_v42  ;;  %v9375_v42 = vld [vmem:[%s6581_s5 + $0x70] sm:$0xf] }
 0x503   : > { %v4430_v34 = vadd.f32 %v4429_v11, %v4399_v29  ;;  %v9299_v11 = vld [vmem:[%s6581_s5 + $0x24] sm:$0xf]  ;;  %v9339_v29 = vld [vmem:[%s6581_s5 + $0x4c] sm:$0xf]  ;;  %9646 = vst [vmem:[#allocation6_spill] sm:$0xff] %v9375_v42 }
 0x504   : > { %9637 = vst [vmem:[#allocation25_spill] sm:$0xff] %v9339_v29 }
 0x505   : > { %v4431_v31 = vadd.f32 %v4430_v34, %v4400_v51  ;;  %v9303_v34 = vld [vmem:[%s6581_s5 + $0x28] sm:$0xf] }
 0x506   : > { %v9335_v51 = vld [vmem:[%s6581_s5 + $0x48] sm:$0xf] }
 0x507   : > { %v4432_v8 = vadd.f32 %v4431_v31, %v4401_v14  ;;  %v9307_v31 = vld [vmem:[%s6581_s5 + $0x2c] sm:$0xf]  ;;  %v9331_v14 = vld [vmem:[%s6581_s5 + $0x44] sm:$0xf]  ;;  %9636 = vst [vmem:[#allocation24_spill] sm:$0xff] %v9335_v51 }
 0x509   : > { %v4433_v23 = vrot.slane %v4432_v8, 4 }
 0x50b   : > { %v4434_v61 = vadd.f32 %v4433_v23, %v4432_v8  ;;  %v9311_v23 = vld [vmem:[%s6581_s5 + $0x30] sm:$0xf]  ;;  %v9327_v8 = vld [vmem:[%s6581_s5 + $0x40] sm:$0xf] }
 0x50d   : > { %v4435_v54 = vrot.slane %v4434_v61, 2 }
 0x50f   : > { %v4436_v21 = vadd.f32 %v4435_v54, %v4434_v61  ;;  %v9315_v54 = vld [vmem:[%s6581_s5 + $0x34] sm:$0xf] }
 0x510   : > { %v9347_v61 = vld [vmem:[%s6581_s5 + $0x54] sm:$0xf] }
 0x511   : > { %v4437_v52 = vrot.slane %v4436_v21, 1  ;;  %9639 = vst [vmem:[#allocation2_spill] sm:$0xff] %v9347_v61  ;;  %v9371_v61 = vld [vmem:[%s6581_s5 + $0x6c] sm:$0xf] }
 0x512   : > { %9645 = vst [vmem:[#allocation9_spill] sm:$0xff] %v9371_v61 }
 0x513   : > { %v4438_v32 = vadd.f32 %v4437_v52, %v4436_v21  ;;  %v9319_v52 = vld [vmem:[%s6581_s5 + $0x38] sm:$0xf] }
 0x514   : > { %v9351_v21 = vld [vmem:[%s6581_s5 + $0x58] sm:$0xf] }
 0x515   : > { %v4439_v36 = vmul.f32 0.00390625, %v4438_v32  ;;  %9640 = vst [vmem:[#allocation26_spill] sm:$0xff] %v9351_v21  ;;  %v9355_v32 = vld [vmem:[%s6581_s5 + $0x5c] sm:$0xf] }
 0x516   : > { %9641 = vst [vmem:[#allocation5_spill] sm:$0xff] %v9355_v32  ;;  %v9379_v32 = vld [vmem:[%s6581_s5 + $0x74] sm:$0xf] }
 0x517   : > { %v4440_v57 = vadd.f32 1e-05, %v4439_v36  ;;  %v9323_v36 = vld [vmem:[%s6581_s5 + $0x3c] sm:$0xf]  ;;  %9647 = vst [vmem:[#allocation8_spill] sm:$0xff] %v9379_v32 }
 0x519   : > { %6423 = vrsqrt.f32 %v4440_v57  ;;  %v9359_v57 = vld [vmem:[%s6581_s5 + $0x60] sm:$0xf] }
 0x51a   : > { %9642 = vst [vmem:[#allocation7_spill] sm:$0xff] %v9359_v57  ;;  %v9383_v57 = vld [vmem:[%s6581_s5 + $0x78] sm:$0xf] }
 0x51b   : > { %9648 = vst [vmem:[#allocation10_spill] sm:$0xff] %v9383_v57 }
 0x526   : > { %v6424_v21 = vpop.eup %6423 }
 0x527   : > { %v4442_v15 = vmul.f32 %v6424_v21, %v9116_v27  ;;  %v4443_v39 = vmul.f32 %v6424_v21, %v9120_v16  ;;  %v4444_v61 = vmul.f32 %v6424_v21, %v9124_v56  ;;  %v4445_v24 = vmul.f32 %v6424_v21, %v9132_v5 }
 0x528   : > { %v4446_v42 = vmul.f32 %v6424_v21, %v9136_v41  ;;  %v4447_v10 = vmul.f32 %v6424_v21, %v9142_v7  ;;  %v4448_v32 = vmul.f32 %v6424_v21, %v9148_v28  ;;  %v4449_v59 = vmul.f32 %v6424_v21, %v9154_v25 }
 0x529   : > { %v4450_v57 = vmul.f32 %v6424_v21, %v9160_v49  ;;  %v4451_v12 = vmul.f32 %v6424_v21, %v9166_v63  ;;  %v4452_v27 = vmul.f32 %v6424_v21, %v9172_v22  ;;  %v4453_v16 = vmul.f32 %v6424_v21, %v9178_v53 }
 0x52a   : > { %v4454_v56 = vmul.f32 %v6424_v21, %v9184_v62  ;;  %v4455_v5 = vmul.f32 %v6424_v21, %v9190_v47  ;;  %v4456_v41 = vmul.f32 %v6424_v21, %v9196_v4  ;;  %v4457_v7 = vmul.f32 %v6424_v21, %v9202_v58 }
 0x52b   : > { %v4458_v28 = vmul.f32 %v6424_v21, %v9208_v2  ;;  %v4459_v25 = vmul.f32 %v6424_v21, %v9214_v13  ;;  %v4460_v49 = vmul.f32 %v6424_v21, %v9220_v55  ;;  %v4461_v63 = vmul.f32 %v6424_v21, %v9226_v43 }
 0x52c   : > { %v4462_v22 = vmul.f32 %v6424_v21, %v9232_v18  ;;  %v4463_v53 = vmul.f32 %v6424_v21, %v9080_v60  ;;  %v4464_v62 = vmul.f32 %v6424_v21, %v9084_v19  ;;  %v4465_v47 = vmul.f32 %v6424_v21, %v9088_v46 }
 0x52d   : > { %v4466_v4 = vmul.f32 %v6424_v21, %v9091_v6  ;;  %v4467_v58 = vmul.f32 %v6424_v21, %v9094_v45  ;;  %v4468_v2 = vmul.f32 %v6424_v21, %v9097_v3  ;;  %v4469_v13 = vmul.f32 %v6424_v21, %v9100_v33 }
 0x52e   : > { %v4470_v55 = vmul.f32 %v6424_v21, %v9103_v26  ;;  %v4471_v43 = vmul.f32 %v6424_v21, %v9106_v44  ;;  %v4472_v18 = vmul.f32 %v6424_v21, %v9109_v40  ;;  %v4473_v60 = vmul.f32 %v6424_v21, %v9112_v20 }
 0x52f   : > { %v9650_v19 = vunpack.c.l.bf16 %v9263_v50  ;;  %v9651_v46 = vunpack.c.l.bf16 %v9267_v38  ;;  %v9652_v45 = vunpack.c.l.bf16 %v9271_v35  ;;  %v9653_v3 = vunpack.c.l.bf16 %v9275_v17 }
 0x530   : > { %v9654_v26 = vunpack.c.l.bf16 %v9279_v30  ;;  %v9655_v44 = vunpack.c.l.bf16 %v9283_v37  ;;  %v9656_v20 = vunpack.c.l.bf16 %v9287_v48  ;;  %v9657_v50 = vunpack.c.l.bf16 %v9291_v0 }
 0x531   : > { %v4506_v9 = vadd.f32 %v9650_v19, %v4442_v15  ;;  %v4507_v6 = vadd.f32 %v9651_v46, %v4443_v39  ;;  %v4508_v29 = vadd.f32 %v9652_v45, %v4444_v61  ;;  %v4509_v33 = vadd.f32 %v9653_v3, %v4445_v24  ;;  %v9672_v46 = vld [vmem:[#allocation3_spill] sm:$0xff] }
 0x532   : > { %v4510_v51 = vadd.f32 %v9654_v26, %v4446_v42  ;;  %v4511_v40 = vadd.f32 %v9655_v44, %v4447_v10  ;;  %v4512_v21 = vadd.f32 %v9656_v20, %v4448_v32  ;;  %v4513_v15 = vadd.f32 %v9657_v50, %v4449_v59  ;;  %v9682_v50 = vld [vmem:[#allocation4_spill] sm:$0xff] }
 0x533   : > { %v9658_v38 = vunpack.c.l.bf16 %v9295_v1  ;;  %v9659_v35 = vunpack.c.l.bf16 %v9299_v11  ;;  %v9660_v17 = vunpack.c.l.bf16 %v9303_v34  ;;  %v9661_v30 = vunpack.c.l.bf16 %v9307_v31 }
 0x534   : > { %v9662_v37 = vunpack.c.l.bf16 %v9311_v23  ;;  %v9663_v48 = vunpack.c.l.bf16 %v9315_v54  ;;  %v9664_v59 = vunpack.c.l.bf16 %v9319_v52  ;;  %v9665_v32 = vunpack.c.l.bf16 %v9323_v36  ;;  %v9674_v52 = vld [vmem:[#allocation2_spill] sm:$0xff] }
 0x535   : > { %v4514_v39 = vadd.f32 %v9658_v38, %v4450_v57  ;;  %v4515_v61 = vadd.f32 %v9659_v35, %v4451_v12  ;;  %v4516_v24 = vadd.f32 %v9660_v17, %v4452_v27  ;;  %v4517_v42 = vadd.f32 %v9661_v30, %v4453_v16  ;;  %v9668_v27 = vld [vmem:[#allocation24_spill] sm:$0xff]  ;;  %v9676_v36 = vld [vmem:[#allocation26_spill] sm:$0xff]  ;;  %v9684_v35 = vld [vmem:[#allocation11_spill] sm:$0xff] }
 0x536   : > { %v4518_v10 = vadd.f32 %v9662_v37, %v4454_v56  ;;  %v4519_v0 = vadd.f32 %v9663_v48, %v4455_v5  ;;  %v4520_v1 = vadd.f32 %v9664_v59, %v4456_v41  ;;  %v4521_v11 = vadd.f32 %v9665_v32, %v4457_v7  ;;  %v9670_v56 = vld [vmem:[#allocation25_spill] sm:$0xff] }
 0x537   : > { %v9666_v12 = vunpack.c.l.bf16 %v9327_v8  ;;  %v9667_v57 = vunpack.c.l.bf16 %v9331_v14  ;;  %v9669_v16 = vunpack.c.l.bf16 %v9668_v27  ;;  %v9671_v19 = vunpack.c.l.bf16 %v9670_v56  ;;  %v9678_v8 = vld [vmem:[#allocation5_spill] sm:$0xff]  ;;  %v9680_v14 = vld [vmem:[#allocation7_spill] sm:$0xff] }
 0x538   : > { %v9673_v5 = vunpack.c.l.bf16 %v9672_v46  ;;  %v9675_v41 = vunpack.c.l.bf16 %v9674_v52  ;;  %v9677_v7 = vunpack.c.l.bf16 %v9676_v36  ;;  %v9686_v30 = vld [vmem:[#allocation9_spill] sm:$0xff]  ;;  %v5025_v27 = vpack.c.bf16 %v4507_v6, %v4506_v9 }
 0x539   : > { %v4522_v34 = vadd.f32 %v9666_v12, %v4458_v28  ;;  %v4523_v31 = vadd.f32 %v9667_v57, %v4459_v25  ;;  %v4524_v23 = vadd.f32 %v9669_v16, %v4460_v49  ;;  %v4525_v54 = vadd.f32 %v9671_v19, %v4461_v63 }
 0x53a   : > { %v4526_v45 = vadd.f32 %v9673_v5, %v4462_v22  ;;  %v4527_v3 = vadd.f32 %v9675_v41, %v4463_v53  ;;  %v4528_v26 = vadd.f32 %v9677_v7, %v4464_v62  ;;  %v9679_v28 = vunpack.c.l.bf16 %v9678_v8  ;;  %v9688_v53 = vld [vmem:[#allocation6_spill] sm:$0xff]  ;;  %5026 = vst [vmem:[%s9483_s28] sm:$0xff] %v5025_v27  }
 0x53b   : > { %v9681_v25 = vunpack.c.l.bf16 %v9680_v14  ;;  %v9683_v49 = vunpack.c.l.bf16 %v9682_v50  ;;  %v9685_v63 = vunpack.c.l.bf16 %v9684_v35  ;;  %v9687_v22 = vunpack.c.l.bf16 %v9686_v30 }
 0x53c   : > { %v4529_v44 = vadd.f32 %v9679_v28, %v4465_v47  ;;  %v9689_v62 = vunpack.c.l.bf16 %v9688_v53  ;;  %v5030_v16 = vpack.c.bf16 %v4509_v33, %v4508_v29  ;;  %v5035_v56 = vpack.c.bf16 %v4511_v40, %v4510_v51 }
 0x53d   : > { %v4530_v20 = vadd.f32 %v9681_v25, %v4466_v4  ;;  %v4531_v38 = vadd.f32 %v9683_v49, %v4467_v58  ;;  %v4532_v17 = vadd.f32 %v9685_v63, %v4468_v2  ;;  %v4533_v37 = vadd.f32 %v9687_v22, %v4469_v13  ;;  %v9690_v4 = vld [vmem:[#allocation8_spill] sm:$0xff]  ;;  %v9692_v2 = vld [vmem:[#allocation10_spill] sm:$0xff] }
 0x53e   : > { %v4534_v47 = vadd.f32 %v9689_v62, %v4470_v55  ;;  %v9691_v58 = vunpack.c.l.bf16 %v9690_v4  ;;  %v9693_v59 = vunpack.c.l.bf16 %v9692_v2  ;;  %v9694_v13 = vld [vmem:[#allocation14_spill] sm:$0xff]  ;;  %v5040_v19 = vpack.c.bf16 %v4513_v15, %v4512_v21  ;;  %5102 = vst [vmem:[%s9483_s28 + $0x8] sm:$0xff] %v5030_v16   ;;  %5103 = vst [vmem:[%s9483_s28 + $0x10] sm:$0xff] %v5035_v56  }
 0x53f   : > { %v9695_v12 = vunpack.c.l.bf16 %v9694_v13  ;;  %v5045_v46 = vpack.c.bf16 %v4515_v61, %v4514_v39  ;;  %v5050_v5 = vpack.c.bf16 %v4517_v42, %v4516_v24  ;;  %v5055_v55 = vpack.c.bf16 %v4519_v0, %v4518_v10 }
 0x540   : > { %v4535_v48 = vadd.f32 %v9691_v58, %v4471_v43  ;;  %v4536_v32 = vadd.f32 %v9693_v59, %v4472_v18  ;;  %v5060_v52 = vpack.c.bf16 %v4521_v11, %v4520_v1  ;;  %5104 = vst [vmem:[%s9483_s28 + $0x18] sm:$0xff] %v5040_v19   ;;  %v5065_v9 = vpack.c.bf16 %v4523_v31, %v4522_v34 }
 0x541   : > { %v4537_v57 = vadd.f32 %v9695_v12, %v4473_v60  ;;  %v5070_v29 = vpack.c.bf16 %v4525_v54, %v4524_v23  ;;  %v5075_v51 = vpack.c.bf16 %v4527_v3, %v4526_v45  ;;  %v5080_v43 = vpack.c.bf16 %v4529_v44, %v4528_v26  ;;  %5105 = vst [vmem:[%s9483_s28 + $0x20] sm:$0xff] %v5045_v46  }
 0x542   : > { %5106 = vst [vmem:[%s9483_s28 + $0x28] sm:$0xff] %v5050_v5   ;;  %5107 = vst [vmem:[%s9483_s28 + $0x30] sm:$0xff] %v5055_v55   ;;  %v5085_v18 = vpack.c.bf16 %v4531_v38, %v4530_v20  ;;  %v5090_v60 = vpack.c.bf16 %v4533_v37, %v4532_v17  ;;  %v5095_v6 = vpack.c.bf16 %v4535_v48, %v4534_v47 }
 0x543   : > { %5108 = vst [vmem:[%s9483_s28 + $0x38] sm:$0xff] %v5060_v52   ;;  %v5100_v33 = vpack.c.bf16 %v4537_v57, %v4536_v32  ;;  %5109 = vst [vmem:[%s9483_s28 + $0x40] sm:$0xff] %v5065_v9  }
 0x544   : > { %5110 = vst [vmem:[%s9483_s28 + $0x48] sm:$0xff] %v5070_v29   ;;  %5111 = vst [vmem:[%s9483_s28 + $0x50] sm:$0xff] %v5075_v51  }
 0x545   : > { %5112 = vst [vmem:[%s9483_s28 + $0x58] sm:$0xff] %v5080_v43   ;;  %5113 = vst [vmem:[%s9483_s28 + $0x60] sm:$0xff] %v5085_v18  }
 0x546   : > { %5114 = vst [vmem:[%s9483_s28 + $0x68] sm:$0xff] %v5090_v60   ;;  %5115 = vst [vmem:[%s9483_s28 + $0x70] sm:$0xff] %v5095_v6  }
 0x547   : > { %5116 = vst [vmem:[%s9483_s28 + $0x78] sm:$0xff] %v5100_v33  }
 0x548 PF: > { %s13_s12 = sadd.s32 1, %s6479_s12  }
 0x549   : > { %p10_p4 = scmp.ge.s32.totalorder %s13_s12, 4  }
 0x54b   :  { %12 = sbr.rel (!%p10_p4) target bundleno = 1 (0x1), region = 62 }

</bundles_post_ra>
